<compile_context>
chip_gen: v5e
topology: v5e:2x2
jax: 0.10.0
libtpu: 0.0.40
codegen_flags: <defaults>
</compile_context>

<pallas_src>
import jax
import jax.numpy as jnp
from jax.experimental import pallas as pl
from jax.experimental.pallas import tpu as pltpu

# Small synthetic "DINOv2" ViT config
PATCH = 4            # patch size (real model uses 14)
EMBED = 128          # embedding dim (real model uses 1536); 128 => lane-dense
DEPTH = 2            # transformer blocks (real model uses 40)
HEADS = 2            # attention heads (head dim 64)
MLP_HIDDEN = EMBED * 4

_PARAM_ORDER = ("w_pe", "b_pe", "cls_pos", "pos_patch",
                "ln1_g", "ln1_b", "w_qkv", "b_qkv", "w_proj", "b_proj",
                "ln2_g", "ln2_b", "w_fc1", "b_fc1", "w_fc2", "b_fc2",
                "norm_g", "norm_b")


# ---------------------------------------------------------------------------
# in-kernel helpers
# ---------------------------------------------------------------------------
def _layernorm(x, gamma, beta, eps=1e-6):
    mu = jnp.mean(x, axis=-1, keepdims=True)
    var = jnp.mean(jnp.square(x - mu), axis=-1, keepdims=True)
    return (x - mu) * jax.lax.rsqrt(var + eps) * gamma + beta


# ---------------------------------------------------------------------------
# Fused backbone kernel (patch-embed + DEPTH blocks + final norm)
# ---------------------------------------------------------------------------
def _make_backbone_kernel(tile_bf, n_patch, n_pad, patch_dim, d):
    heads = HEADS
    hd = d // heads
    scale = 1.0 / float(hd) ** 0.5
    n_real = n_patch + 1                      # patches + cls token
    rows = tile_bf * n_pad                    # resident 2-D activation rows

    def kernel(patches_ref, w_pe, b_pe, cls_pos, pos_patch,
               ln1_g, ln1_b, w_qkv, b_qkv, w_proj, b_proj,
               ln2_g, ln2_b, w_fc1, b_fc1, w_fc2, b_fc2,
               norm_g, norm_b,
               cls_out_ref, feat_out_ref, tok_ref):
        # ---- patch embed: one big bf16 MXU matmul with f32 accumulation ----
        p2 = patches_ref[...].reshape(tile_bf * n_patch, patch_dim)       # bf16
        proj = jnp.dot(p2, w_pe[...], preferred_element_type=jnp.float32)
        proj = proj.reshape(tile_bf, n_patch, d) + b_pe[...] + pos_patch[...]

        # ---- build padded token slab in VMEM scratch:
        #      rows [0, n_patch) = patch tokens, row n_patch = cls token,
        #      rows [n_real, n_pad) = zero padding (masked out of attention).
        tok_ref[:, 0:n_patch, :] = proj
        tok_ref[:, n_patch:n_patch + 1, :] = jnp.broadcast_to(
            cls_pos[...], (tile_bf, 1, d))
        if n_pad > n_real:
            tok_ref[:, n_real:, :] = jnp.zeros(
                (tile_bf, n_pad - n_real, d), jnp.float32)

        x2 = tok_ref[...].reshape(rows, d)                                # f32

        # key-padding mask along the key (lane) axis
        key_idx = jax.lax.broadcasted_iota(jnp.int32, (1, 1, n_pad), 2)
        key_valid = key_idx < n_real

        for blk in range(DEPTH):
            # ---------------- attention (pre-norm) ----------------
            h = _layernorm(x2, ln1_g[blk], ln1_b[blk])
            qkv = jnp.dot(h.astype(jnp.bfloat16), w_qkv[blk],
                          preferred_element_type=jnp.float32) + b_qkv[blk]
            q3 = (qkv[:, 0:d] * scale).reshape(tile_bf, n_pad, d).astype(jnp.bfloat16)
            k3 = qkv[:, d:2 * d].reshape(tile_bf, n_pad, d).astype(jnp.bfloat16)
            v3 = qkv[:, 2 * d:3 * d].reshape(tile_bf, n_pad, d).astype(jnp.bfloat16)
            wp = w_proj[blk]                                              # (d, d) bf16

            attn = None
            for hh in range(heads):
                lo, hi = hh * hd, (hh + 1) * hd
                s = jnp.einsum('bnd,bmd->bnm', q3[:, :, lo:hi], k3[:, :, lo:hi],
                               preferred_element_type=jnp.float32)
                s = jnp.where(key_valid, s, -1e30)
                s = s - jnp.max(s, axis=-1, keepdims=True)
                p = jnp.exp(s)
                p = p * pl.reciprocal(jnp.sum(p, axis=-1, keepdims=True),
                                      approx=True)
                o_h = jnp.einsum('bnm,bmd->bnd', p.astype(jnp.bfloat16),
                                 v3[:, :, lo:hi],
                                 preferred_element_type=jnp.float32)
                # project this head's slice of W_proj and accumulate
                # (mathematically identical to concat(heads) @ W_proj).
                c = jnp.dot(o_h.reshape(rows, hd).astype(jnp.bfloat16),
                            wp[lo:hi, :], preferred_element_type=jnp.float32)
                attn = c if attn is None else attn + c
            x2 = x2 + attn + b_proj[blk]

            # ---------------- MLP (pre-norm) ----------------
            h2 = _layernorm(x2, ln2_g[blk], ln2_b[blk])
            h2 = jnp.dot(h2.astype(jnp.bfloat16), w_fc1[blk],
                         preferred_element_type=jnp.float32) + b_fc1[blk]
            # TODO(synk): PyTorch nn.GELU defaults to the exact erf form;
            # tanh approximation is used here for robust Mosaic lowering.
            h2 = jax.nn.gelu(h2, approximate=True)
            h2 = jnp.dot(h2.astype(jnp.bfloat16), w_fc2[blk],
                         preferred_element_type=jnp.float32) + b_fc2[blk]
            x2 = x2 + h2

        # ---- final LayerNorm + split outputs (cls row / patch rows) ----
        xn = _layernorm(x2, norm_g[...], norm_b[...]).reshape(tile_bf, n_pad, d)
        cls_out_ref[...] = xn[:, n_patch:n_patch + 1, :]
        feat_out_ref[...] = xn[:, 0:n_patch, :]

    return kernel


# ---------------------------------------------------------------------------
# pallas_call wrapper
# ---------------------------------------------------------------------------
def _const_spec(arr):
    zeros = (0,) * arr.ndim
    return pl.BlockSpec(arr.shape, lambda i, _z=zeros: _z)


def _pick_tile_bf(bf, cap=8):
    divisors = [dv for dv in range(1, bf + 1) if bf % dv == 0 and dv <= cap]
    pref = [dv for dv in divisors if bf // dv >= 2]   # keep grid >= 2 (v7x)
    return max(pref) if pref else max(divisors)


def _run_backbone(patches, params):
    bf, n_patch, patch_dim = patches.shape
    d = EMBED
    tile_bf = _pick_tile_bf(bf)
    n_real = n_patch + 1
    n_pad = ((n_real + 7) // 8) * 8

    kernel = _make_backbone_kernel(tile_bf, n_patch, n_pad, patch_dim, d)

    in_specs = [pl.BlockSpec((tile_bf, n_patch, patch_dim), lambda i: (i, 0, 0))]
    in_specs += [_const_spec(params[name]) for name in _PARAM_ORDER]

    cls_tok, feat_tok = pl.pallas_call(
        kernel,
        out_shape=(jax.ShapeDtypeStruct((bf, 1, d), jnp.float32),
                   jax.ShapeDtypeStruct((bf, n_patch, d), jnp.float32)),
        grid_spec=pltpu.PrefetchScalarGridSpec(
            num_scalar_prefetch=0,
            grid=(bf // tile_bf,),
            in_specs=in_specs,
            out_specs=(pl.BlockSpec((tile_bf, 1, d), lambda i: (i, 0, 0)),
                       pl.BlockSpec((tile_bf, n_patch, d), lambda i: (i, 0, 0))),
            scratch_shapes=[pltpu.VMEM((tile_bf, n_pad, d), jnp.float32)]),
        compiler_params=pltpu.CompilerParams(
            dimension_semantics=("parallel",)),
    )(patches, *(params[name] for name in _PARAM_ORDER))
    return cls_tok, feat_tok


# ---------------------------------------------------------------------------
# Glue: parameters, patchification, full forward
# ---------------------------------------------------------------------------
def init_params(key, in_chans, num_patches):
    # TODO(synk): real module loads frozen pretrained DINOv2-giant weights;
    # here we initialize a small synthetic backbone deterministically.
    pd = in_chans * PATCH * PATCH
    s = 0.02
    ks = jax.random.split(key, 3 + 4 * DEPTH)
    w_pe = s * jax.random.normal(ks[0], (pd, EMBED), jnp.float32)
    cls_token = s * jax.random.normal(ks[1], (1, 1, EMBED), jnp.float32)
    pos_embed = s * jax.random.normal(ks[2], (1, num_patches + 1, EMBED), jnp.float32)

    def stack(fn):
        return jnp.stack([fn(i) for i in range(DEPTH)], axis=0)

    bkeys = [jax.random.split(ks[3 + i], 4) for i in range(DEPTH)]
    params = {
        # matmul weights in bf16 (MXU-native), everything else f32
        "w_pe": w_pe.astype(jnp.bfloat16),
        "b_pe": jnp.zeros((1, EMBED), jnp.float32),
        # cls token with its positional embedding folded in (position 0)
        "cls_pos": cls_token[:, 0, :][:, None, :] + pos_embed[:, :1, :],
        "pos_patch": pos_embed[:, 1:, :],
        "ln1_g": jnp.ones((DEPTH, 1, EMBED), jnp.float32),
        "ln1_b": jnp.zeros((DEPTH, 1, EMBED), jnp.float32),
        "w_qkv": stack(lambda i: s * jax.random.normal(
            bkeys[i][0], (EMBED, 3 * EMBED), jnp.float32)).astype(jnp.bfloat16),
        "b_qkv": jnp.zeros((DEPTH, 1, 3 * EMBED), jnp.float32),
        "w_proj": stack(lambda i: s * jax.random.normal(
            bkeys[i][1], (EMBED, EMBED), jnp.float32)).astype(jnp.bfloat16),
        "b_proj": jnp.zeros((DEPTH, 1, EMBED), jnp.float32),
        "ln2_g": jnp.ones((DEPTH, 1, EMBED), jnp.float32),
        "ln2_b": jnp.zeros((DEPTH, 1, EMBED), jnp.float32),
        "w_fc1": stack(lambda i: s * jax.random.normal(
            bkeys[i][2], (EMBED, MLP_HIDDEN), jnp.float32)).astype(jnp.bfloat16),
        "b_fc1": jnp.zeros((DEPTH, 1, MLP_HIDDEN), jnp.float32),
        "w_fc2": stack(lambda i: s * jax.random.normal(
            bkeys[i][3], (MLP_HIDDEN, EMBED), jnp.float32)).astype(jnp.bfloat16),
        "b_fc2": jnp.zeros((DEPTH, 1, EMBED), jnp.float32),
        "norm_g": jnp.ones((1, EMBED), jnp.float32),
        "norm_b": jnp.zeros((1, EMBED), jnp.float32),
    }
    return params


def _frames_to_patches(frames):
    # frames: (BF, C, H, W) -> (BF, num_patches, C*p*p), conv-flatten order (C, ph, pw)
    bf, c, h, w = frames.shape
    gh, gw = h // PATCH, w // PATCH
    x = frames.reshape(bf, c, gh, PATCH, gw, PATCH)
    x = x.transpose(0, 2, 4, 1, 3, 5)              # (BF, gh, gw, C, p, p)
    return x.reshape(bf, gh * gw, c * PATCH * PATCH)


def viedo_dino_rgb_forward(x, params):
    # x: (B, C, T, H, W), float32 (PyTorch NCTHW video layout)
    B, C, T, H, W = x.shape
    gh, gw = H // PATCH, W // PATCH
    # torch.chunk over dim=2 then squeeze -> per-frame (B, C, H, W); merge B and T.
    frames = x.transpose(0, 2, 1, 3, 4).reshape(B * T, C, H, W)
    patches = _frames_to_patches(frames).astype(jnp.bfloat16)   # (BF, Np, C*p*p)

    cls_tok, feat_tok = _run_backbone(patches, params)          # (BF,1,D), (BF,Np,D)

    # out[0][0] = cls token, stacked along dim=1  -> (B, T, D)
    cls_out = cls_tok.reshape(B, T, EMBED)
    # out[0][1] = featmap (B, D, h, w), stacked along dim=2 -> (B, D, T, h, w)
    feat = feat_tok.reshape(B, T, gh, gw, EMBED).transpose(0, 4, 1, 2, 3)
    return [cls_out, feat]


if __name__ == "__main__":
    key = jax.random.PRNGKey(0)
    k_in, k_par = jax.random.split(key)

    B, C, T, H, W = 2, 3, 2, 16, 16
    x = jax.random.normal(k_in, (B, C, T, H, W), dtype=jnp.float32)
    params = init_params(k_par, in_chans=C, num_patches=(H // PATCH) * (W // PATCH))

    cls_out, feat = jax.jit(viedo_dino_rgb_forward)(x, params)
    jax.block_until_ready((cls_out, feat))

    assert cls_out.shape == (B, T, EMBED), cls_out.shape
    assert feat.shape == (B, EMBED, T, H // PATCH, W // PATCH), feat.shape
    assert bool(jnp.all(jnp.isfinite(cls_out))) and bool(jnp.all(jnp.isfinite(feat)))
    print("KERNEL_OK")
</pallas_src>

<mosaic_0001>
module attributes {stable_mosaic.version = 11 : i64} {
  func.func @kernel(%arg0: i32, %arg1: memref<2x16x48xbf16, #tpu.memory_space<vmem>>, %arg2: memref<48x128xbf16, #tpu.memory_space<vmem>>, %arg3: memref<1x128xf32, #tpu.memory_space<vmem>>, %arg4: memref<1x1x128xf32, #tpu.memory_space<vmem>>, %arg5: memref<1x16x128xf32, #tpu.memory_space<vmem>>, %arg6: memref<2x1x128xf32, #tpu.memory_space<vmem>>, %arg7: memref<2x1x128xf32, #tpu.memory_space<vmem>>, %arg8: memref<2x128x384xbf16, #tpu.memory_space<vmem>>, %arg9: memref<2x1x384xf32, #tpu.memory_space<vmem>>, %arg10: memref<2x128x128xbf16, #tpu.memory_space<vmem>>, %arg11: memref<2x1x128xf32, #tpu.memory_space<vmem>>, %arg12: memref<2x1x128xf32, #tpu.memory_space<vmem>>, %arg13: memref<2x1x128xf32, #tpu.memory_space<vmem>>, %arg14: memref<2x128x512xbf16, #tpu.memory_space<vmem>>, %arg15: memref<2x1x512xf32, #tpu.memory_space<vmem>>, %arg16: memref<2x512x128xbf16, #tpu.memory_space<vmem>>, %arg17: memref<2x1x128xf32, #tpu.memory_space<vmem>>, %arg18: memref<1x128xf32, #tpu.memory_space<vmem>>, %arg19: memref<1x128xf32, #tpu.memory_space<vmem>>, %arg20: memref<2x1x128xf32, #tpu.memory_space<vmem>>, %arg21: memref<2x16x128xf32, #tpu.memory_space<vmem>>, %arg22: memref<2x24x128xf32, #tpu.memory_space<vmem>>) attributes {dimension_semantics = [#tpu.dimension_semantics<parallel>], iteration_bounds = array<i64: 2>, scalar_prefetch = 0 : i64, scratch_operands = 1 : i64, tpu.core_type = #tpu.core_type<tc>, window_params = [{transform_indices = @transform_0, window_bounds = array<i64: 2, 16, 48>}, {pipeline_mode = #tpu.pipeline_mode<synchronous>, transform_indices = @transform_1, window_bounds = array<i64: 48, 128>}, {pipeline_mode = #tpu.pipeline_mode<synchronous>, transform_indices = @transform_2, window_bounds = array<i64: 1, 128>}, {pipeline_mode = #tpu.pipeline_mode<synchronous>, transform_indices = @transform_3, window_bounds = array<i64: 1, 1, 128>}, {pipeline_mode = #tpu.pipeline_mode<synchronous>, transform_indices = @transform_4, window_bounds = array<i64: 1, 16, 128>}, {pipeline_mode = #tpu.pipeline_mode<synchronous>, transform_indices = @transform_5, window_bounds = array<i64: 2, 1, 128>}, {pipeline_mode = #tpu.pipeline_mode<synchronous>, transform_indices = @transform_6, window_bounds = array<i64: 2, 1, 128>}, {pipeline_mode = #tpu.pipeline_mode<synchronous>, transform_indices = @transform_7, window_bounds = array<i64: 2, 128, 384>}, {pipeline_mode = #tpu.pipeline_mode<synchronous>, transform_indices = @transform_8, window_bounds = array<i64: 2, 1, 384>}, {pipeline_mode = #tpu.pipeline_mode<synchronous>, transform_indices = @transform_9, window_bounds = array<i64: 2, 128, 128>}, {pipeline_mode = #tpu.pipeline_mode<synchronous>, transform_indices = @transform_10, window_bounds = array<i64: 2, 1, 128>}, {pipeline_mode = #tpu.pipeline_mode<synchronous>, transform_indices = @transform_11, window_bounds = array<i64: 2, 1, 128>}, {pipeline_mode = #tpu.pipeline_mode<synchronous>, transform_indices = @transform_12, window_bounds = array<i64: 2, 1, 128>}, {pipeline_mode = #tpu.pipeline_mode<synchronous>, transform_indices = @transform_13, window_bounds = array<i64: 2, 128, 512>}, {pipeline_mode = #tpu.pipeline_mode<synchronous>, transform_indices = @transform_14, window_bounds = array<i64: 2, 1, 512>}, {pipeline_mode = #tpu.pipeline_mode<synchronous>, transform_indices = @transform_15, window_bounds = array<i64: 2, 512, 128>}, {pipeline_mode = #tpu.pipeline_mode<synchronous>, transform_indices = @transform_16, window_bounds = array<i64: 2, 1, 128>}, {pipeline_mode = #tpu.pipeline_mode<synchronous>, transform_indices = @transform_17, window_bounds = array<i64: 1, 128>}, {pipeline_mode = #tpu.pipeline_mode<synchronous>, transform_indices = @transform_18, window_bounds = array<i64: 1, 128>}, {transform_indices = @transform_19, window_bounds = array<i64: 2, 1, 128>}, {transform_indices = @transform_20, window_bounds = array<i64: 2, 16, 128>}]} {
    %c0 = arith.constant 0 : index
    %c0_0 = arith.constant 0 : index
    %c0_1 = arith.constant 0 : index
    %0 = vector.load %arg1[%c0, %c0_0, %c0_1] : memref<2x16x48xbf16, #tpu.memory_space<vmem>>, vector<2x16x48xbf16>
    %1 = vector.shape_cast %0 : vector<2x16x48xbf16> to vector<32x48xbf16>
    %c0_2 = arith.constant 0 : index
    %c0_3 = arith.constant 0 : index
    %2 = vector.load %arg2[%c0_2, %c0_3] : memref<48x128xbf16, #tpu.memory_space<vmem>>, vector<48x128xbf16>
    %cst = arith.constant dense<0.000000e+00> : vector<32x128xf32>
    %3 = tpu.matmul %1, %2, %cst {dimension_numbers = #tpu.dot_dimension_numbers<[1], [0], [0], [1], [0, 0, 1, 1], [], []>} : vector<32x48xbf16>, vector<48x128xbf16>, vector<32x128xf32> -> vector<32x128xf32>
    %4 = vector.shape_cast %3 : vector<32x128xf32> to vector<2x16x128xf32>
    %c0_4 = arith.constant 0 : index
    %c0_5 = arith.constant 0 : index
    %5 = vector.load %arg3[%c0_4, %c0_5] : memref<1x128xf32, #tpu.memory_space<vmem>>, vector<1x128xf32>
    %6 = vector.shape_cast %5 : vector<1x128xf32> to vector<1x1x128xf32>
    %7 = vector.broadcast %6 : vector<1x1x128xf32> to vector<2x16x128xf32>
    %8 = arith.addf %4, %7 : vector<2x16x128xf32>
    %c0_6 = arith.constant 0 : index
    %c0_7 = arith.constant 0 : index
    %c0_8 = arith.constant 0 : index
    %9 = vector.load %arg5[%c0_6, %c0_7, %c0_8] : memref<1x16x128xf32, #tpu.memory_space<vmem>>, vector<1x16x128xf32>
    %10 = vector.broadcast %9 : vector<1x16x128xf32> to vector<2x16x128xf32>
    %11 = arith.addf %8, %10 : vector<2x16x128xf32>
    %c0_9 = arith.constant 0 : index
    %c0_10 = arith.constant 0 : index
    %c0_11 = arith.constant 0 : index
    %12 = vector.load %arg22[%c0_9, %c0_10, %c0_11] : memref<2x24x128xf32, #tpu.memory_space<vmem>>, vector<2x16x128xf32>
    tpu.vector_store %arg22[%c0_9, %c0_10, %c0_11], %11 {strides = array<i32>} : memref<2x24x128xf32, #tpu.memory_space<vmem>>, vector<2x16x128xf32>,
    %c0_12 = arith.constant 0 : index
    %c0_13 = arith.constant 0 : index
    %c0_14 = arith.constant 0 : index
    %13 = vector.load %arg4[%c0_12, %c0_13, %c0_14] : memref<1x1x128xf32, #tpu.memory_space<vmem>>, vector<1x1x128xf32>
    %14 = vector.shape_cast %13 : vector<1x1x128xf32> to vector<1x1x128xf32>
    %15 = vector.broadcast %14 : vector<1x1x128xf32> to vector<2x1x128xf32>
    %c0_15 = arith.constant 0 : index
    %c16 = arith.constant 16 : index
    %c0_16 = arith.constant 0 : index
    %16 = vector.load %arg22[%c0_15, %c16, %c0_16] : memref<2x24x128xf32, #tpu.memory_space<vmem>>, vector<2x1x128xf32>
    tpu.vector_store %arg22[%c0_15, %c16, %c0_16], %15 {strides = array<i32>} : memref<2x24x128xf32, #tpu.memory_space<vmem>>, vector<2x1x128xf32>,
    %cst_17 = arith.constant 0.000000e+00 : f32
    %17 = vector.broadcast %cst_17 : f32 to vector<2x7x128xf32>
    %c0_18 = arith.constant 0 : index
    %c17 = arith.constant 17 : index
    %c0_19 = arith.constant 0 : index
    %18 = vector.load %arg22[%c0_18, %c17, %c0_19] : memref<2x24x128xf32, #tpu.memory_space<vmem>>, vector<2x7x128xf32>
    tpu.vector_store %arg22[%c0_18, %c17, %c0_19], %17 {strides = array<i32>} : memref<2x24x128xf32, #tpu.memory_space<vmem>>, vector<2x7x128xf32>,
    %c0_20 = arith.constant 0 : index
    %c0_21 = arith.constant 0 : index
    %c0_22 = arith.constant 0 : index
    %19 = vector.load %arg22[%c0_20, %c0_21, %c0_22] : memref<2x24x128xf32, #tpu.memory_space<vmem>>, vector<2x24x128xf32>
    %20 = vector.shape_cast %19 : vector<2x24x128xf32> to vector<48x128xf32>
    %21 = tpu.iota {dimensions = array<i32: 2>} : vector<1x1x24xi32>
    %c17_i32 = arith.constant 17 : i32
    %22 = vector.broadcast %c17_i32 : i32 to vector<1x1x24xi32>
    %23 = arith.cmpi slt, %21, %22 : vector<1x1x24xi32>
    %c0_23 = arith.constant 0 : index
    %c0_24 = arith.constant 0 : index
    %c0_25 = arith.constant 0 : index
    %24 = vector.load %arg6[%c0_23, %c0_24, %c0_25] : memref<2x1x128xf32, #tpu.memory_space<vmem>>, vector<1x1x128xf32>
    %25 = vector.shape_cast %24 : vector<1x1x128xf32> to vector<1x128xf32>
    %c0_26 = arith.constant 0 : index
    %c0_27 = arith.constant 0 : index
    %c0_28 = arith.constant 0 : index
    %26 = vector.load %arg7[%c0_26, %c0_27, %c0_28] : memref<2x1x128xf32, #tpu.memory_space<vmem>>, vector<1x1x128xf32>
    %27 = vector.shape_cast %26 : vector<1x1x128xf32> to vector<1x128xf32>
    %cst_29 = arith.constant dense<0.000000e+00> : vector<48xf32>
    %28 = vector.multi_reduction <add>, %20, %cst_29 [1] : vector<48x128xf32> to vector<48xf32>
    %29 = vector.shape_cast %28 : vector<48xf32> to vector<48x1xf32>
    %cst_30 = arith.constant 1.280000e+02 : f32
    %30 = vector.broadcast %cst_30 : f32 to vector<48x1xf32>
    %31 = arith.divf %29, %30 : vector<48x1xf32>
    %32 = vector.broadcast %31 : vector<48x1xf32> to vector<48x128xf32>
    %33 = arith.subf %20, %32 : vector<48x128xf32>
    %34 = arith.mulf %33, %33 : vector<48x128xf32>
    %cst_31 = arith.constant dense<0.000000e+00> : vector<48xf32>
    %35 = vector.multi_reduction <add>, %34, %cst_31 [1] : vector<48x128xf32> to vector<48xf32>
    %36 = vector.shape_cast %35 : vector<48xf32> to vector<48x1xf32>
    %cst_32 = arith.constant 1.280000e+02 : f32
    %37 = vector.broadcast %cst_32 : f32 to vector<48x1xf32>
    %38 = arith.divf %36, %37 : vector<48x1xf32>
    %39 = vector.broadcast %31 : vector<48x1xf32> to vector<48x128xf32>
    %40 = arith.subf %20, %39 : vector<48x128xf32>
    %cst_33 = arith.constant 9.99999997E-7 : f32
    %41 = vector.broadcast %cst_33 : f32 to vector<48x1xf32>
    %42 = arith.addf %38, %41 : vector<48x1xf32>
    %43 = math.rsqrt %42 : vector<48x1xf32>
    %44 = vector.broadcast %43 : vector<48x1xf32> to vector<48x128xf32>
    %45 = arith.mulf %40, %44 : vector<48x128xf32>
    %46 = vector.broadcast %25 : vector<1x128xf32> to vector<48x128xf32>
    %47 = arith.mulf %45, %46 : vector<48x128xf32>
    %48 = vector.broadcast %27 : vector<1x128xf32> to vector<48x128xf32>
    %49 = arith.addf %47, %48 : vector<48x128xf32>
    %50 = arith.truncf %49 : vector<48x128xf32> to vector<48x128xbf16>
    %c0_34 = arith.constant 0 : index
    %c0_35 = arith.constant 0 : index
    %c0_36 = arith.constant 0 : index
    %51 = vector.load %arg8[%c0_34, %c0_35, %c0_36] : memref<2x128x384xbf16, #tpu.memory_space<vmem>>, vector<1x128x384xbf16>
    %52 = vector.shape_cast %51 : vector<1x128x384xbf16> to vector<128x384xbf16>
    %cst_37 = arith.constant dense<0.000000e+00> : vector<48x384xf32>
    %53 = tpu.matmul %50, %52, %cst_37 {dimension_numbers = #tpu.dot_dimension_numbers<[1], [0], [0], [1], [0, 0, 1, 1], [], []>} : vector<48x128xbf16>, vector<128x384xbf16>, vector<48x384xf32> -> vector<48x384xf32>
    %c0_38 = arith.constant 0 : index
    %c0_39 = arith.constant 0 : index
    %c0_40 = arith.constant 0 : index
    %54 = vector.load %arg9[%c0_38, %c0_39, %c0_40] : memref<2x1x384xf32, #tpu.memory_space<vmem>>, vector<1x1x384xf32>
    %55 = vector.shape_cast %54 : vector<1x1x384xf32> to vector<1x384xf32>
    %56 = vector.broadcast %55 : vector<1x384xf32> to vector<48x384xf32>
    %57 = arith.addf %53, %56 : vector<48x384xf32>
    %58 = vector.extract_strided_slice %57 {offsets = [0, 0], sizes = [48, 128], strides = [1, 1]} : vector<48x384xf32> to vector<48x128xf32>
    %cst_41 = arith.constant 1.250000e-01 : f32
    %59 = vector.broadcast %cst_41 : f32 to vector<48x128xf32>
    %60 = arith.mulf %58, %59 : vector<48x128xf32>
    %61 = vector.shape_cast %60 : vector<48x128xf32> to vector<2x24x128xf32>
    %62 = arith.truncf %61 : vector<2x24x128xf32> to vector<2x24x128xbf16>
    %63 = vector.extract_strided_slice %57 {offsets = [0, 128], sizes = [48, 128], strides = [1, 1]} : vector<48x384xf32> to vector<48x128xf32>
    %64 = vector.shape_cast %63 : vector<48x128xf32> to vector<2x24x128xf32>
    %65 = arith.truncf %64 : vector<2x24x128xf32> to vector<2x24x128xbf16>
    %66 = vector.extract_strided_slice %57 {offsets = [0, 256], sizes = [48, 128], strides = [1, 1]} : vector<48x384xf32> to vector<48x128xf32>
    %67 = vector.shape_cast %66 : vector<48x128xf32> to vector<2x24x128xf32>
    %68 = arith.truncf %67 : vector<2x24x128xf32> to vector<2x24x128xbf16>
    %c0_42 = arith.constant 0 : index
    %c0_43 = arith.constant 0 : index
    %c0_44 = arith.constant 0 : index
    %69 = vector.load %arg10[%c0_42, %c0_43, %c0_44] : memref<2x128x128xbf16, #tpu.memory_space<vmem>>, vector<1x128x128xbf16>
    %70 = vector.shape_cast %69 : vector<1x128x128xbf16> to vector<128x128xbf16>
    %71 = vector.extract_strided_slice %62 {offsets = [0, 0, 0], sizes = [2, 24, 64], strides = [1, 1, 1]} : vector<2x24x128xbf16> to vector<2x24x64xbf16>
    %72 = vector.extract_strided_slice %65 {offsets = [0, 0, 0], sizes = [2, 24, 64], strides = [1, 1, 1]} : vector<2x24x128xbf16> to vector<2x24x64xbf16>
    "tpu.trace_start"() <{level = 10 : i32, message = "bnd,bmd->bnm"}> : () -> ()
    %cst_45 = arith.constant dense<0.000000e+00> : vector<2x24x24xf32>
    %73 = tpu.matmul %71, %72, %cst_45 {dimension_numbers = #tpu.dot_dimension_numbers<[2], [2], [1], [1], [0, 0, 0, 1, 1, 1], [0], [0]>} : vector<2x24x64xbf16>, vector<2x24x64xbf16>, vector<2x24x24xf32> -> vector<2x24x24xf32>
    %cst_46 = arith.constant -1.000000e+30 : f32
    "tpu.trace_stop"() : () -> ()
    %74 = vector.shape_cast %23 : vector<1x1x24xi1> to vector<1x1x24xi1>
    %75 = vector.broadcast %74 : vector<1x1x24xi1> to vector<2x24x24xi1>
    %76 = vector.broadcast %cst_46 : f32 to vector<2x24x24xf32>
    %77 = arith.select %75, %73, %76 : vector<2x24x24xi1>, vector<2x24x24xf32>
    %cst_47 = arith.constant dense<0xFF800000> : vector<2x24xf32>
    %78 = vector.multi_reduction <maximumf>, %77, %cst_47 [2] : vector<2x24x24xf32> to vector<2x24xf32>
    %79 = vector.shape_cast %78 : vector<2x24xf32> to vector<2x24x1xf32>
    %80 = vector.broadcast %79 : vector<2x24x1xf32> to vector<2x24x24xf32>
    %81 = arith.subf %77, %80 : vector<2x24x24xf32>
    %82 = math.exp %81 : vector<2x24x24xf32>
    %cst_48 = arith.constant dense<0.000000e+00> : vector<2x24xf32>
    %83 = vector.multi_reduction <add>, %82, %cst_48 [2] : vector<2x24x24xf32> to vector<2x24xf32>
    %84 = vector.shape_cast %83 : vector<2x24xf32> to vector<2x24x1xf32>
    %85 = tpu.reciprocal %84 {approx = true} : vector<2x24x1xf32> -> vector<2x24x1xf32>
    %86 = vector.broadcast %85 : vector<2x24x1xf32> to vector<2x24x24xf32>
    %87 = arith.mulf %82, %86 : vector<2x24x24xf32>
    %88 = arith.truncf %87 : vector<2x24x24xf32> to vector<2x24x24xbf16>
    %89 = vector.extract_strided_slice %68 {offsets = [0, 0, 0], sizes = [2, 24, 64], strides = [1, 1, 1]} : vector<2x24x128xbf16> to vector<2x24x64xbf16>
    "tpu.trace_start"() <{level = 10 : i32, message = "bnm,bmd->bnd"}> : () -> ()
    %cst_49 = arith.constant dense<0.000000e+00> : vector<2x24x64xf32>
    %90 = tpu.matmul %88, %89, %cst_49 {dimension_numbers = #tpu.dot_dimension_numbers<[2], [1], [1], [2], [0, 0, 0, 1, 1, 2], [0], [0]>} : vector<2x24x24xbf16>, vector<2x24x64xbf16>, vector<2x24x64xf32> -> vector<2x24x64xf32>
    "tpu.trace_stop"() : () -> ()
    %91 = vector.shape_cast %90 : vector<2x24x64xf32> to vector<48x64xf32>
    %92 = arith.truncf %91 : vector<48x64xf32> to vector<48x64xbf16>
    %93 = vector.extract_strided_slice %70 {offsets = [0, 0], sizes = [64, 128], strides = [1, 1]} : vector<128x128xbf16> to vector<64x128xbf16>
    %cst_50 = arith.constant dense<0.000000e+00> : vector<48x128xf32>
    %94 = tpu.matmul %92, %93, %cst_50 {dimension_numbers = #tpu.dot_dimension_numbers<[1], [0], [0], [1], [0, 0, 1, 1], [], []>} : vector<48x64xbf16>, vector<64x128xbf16>, vector<48x128xf32> -> vector<48x128xf32>
    %95 = vector.extract_strided_slice %62 {offsets = [0, 0, 64], sizes = [2, 24, 64], strides = [1, 1, 1]} : vector<2x24x128xbf16> to vector<2x24x64xbf16>
    %96 = vector.extract_strided_slice %65 {offsets = [0, 0, 64], sizes = [2, 24, 64], strides = [1, 1, 1]} : vector<2x24x128xbf16> to vector<2x24x64xbf16>
    "tpu.trace_start"() <{level = 10 : i32, message = "bnd,bmd->bnm"}> : () -> ()
    %cst_51 = arith.constant dense<0.000000e+00> : vector<2x24x24xf32>
    %97 = tpu.matmul %95, %96, %cst_51 {dimension_numbers = #tpu.dot_dimension_numbers<[2], [2], [1], [1], [0, 0, 0, 1, 1, 1], [0], [0]>} : vector<2x24x64xbf16>, vector<2x24x64xbf16>, vector<2x24x24xf32> -> vector<2x24x24xf32>
    %cst_52 = arith.constant -1.000000e+30 : f32
    "tpu.trace_stop"() : () -> ()
    %98 = vector.shape_cast %23 : vector<1x1x24xi1> to vector<1x1x24xi1>
    %99 = vector.broadcast %98 : vector<1x1x24xi1> to vector<2x24x24xi1>
    %100 = vector.broadcast %cst_52 : f32 to vector<2x24x24xf32>
    %101 = arith.select %99, %97, %100 : vector<2x24x24xi1>, vector<2x24x24xf32>
    %cst_53 = arith.constant dense<0xFF800000> : vector<2x24xf32>
    %102 = vector.multi_reduction <maximumf>, %101, %cst_53 [2] : vector<2x24x24xf32> to vector<2x24xf32>
    %103 = vector.shape_cast %102 : vector<2x24xf32> to vector<2x24x1xf32>
    %104 = vector.broadcast %103 : vector<2x24x1xf32> to vector<2x24x24xf32>
    %105 = arith.subf %101, %104 : vector<2x24x24xf32>
    %106 = math.exp %105 : vector<2x24x24xf32>
    %cst_54 = arith.constant dense<0.000000e+00> : vector<2x24xf32>
    %107 = vector.multi_reduction <add>, %106, %cst_54 [2] : vector<2x24x24xf32> to vector<2x24xf32>
    %108 = vector.shape_cast %107 : vector<2x24xf32> to vector<2x24x1xf32>
    %109 = tpu.reciprocal %108 {approx = true} : vector<2x24x1xf32> -> vector<2x24x1xf32>
    %110 = vector.broadcast %109 : vector<2x24x1xf32> to vector<2x24x24xf32>
    %111 = arith.mulf %106, %110 : vector<2x24x24xf32>
    %112 = arith.truncf %111 : vector<2x24x24xf32> to vector<2x24x24xbf16>
    %113 = vector.extract_strided_slice %68 {offsets = [0, 0, 64], sizes = [2, 24, 64], strides = [1, 1, 1]} : vector<2x24x128xbf16> to vector<2x24x64xbf16>
    "tpu.trace_start"() <{level = 10 : i32, message = "bnm,bmd->bnd"}> : () -> ()
    %cst_55 = arith.constant dense<0.000000e+00> : vector<2x24x64xf32>
    %114 = tpu.matmul %112, %113, %cst_55 {dimension_numbers = #tpu.dot_dimension_numbers<[2], [1], [1], [2], [0, 0, 0, 1, 1, 2], [0], [0]>} : vector<2x24x24xbf16>, vector<2x24x64xbf16>, vector<2x24x64xf32> -> vector<2x24x64xf32>
    "tpu.trace_stop"() : () -> ()
    %115 = vector.shape_cast %114 : vector<2x24x64xf32> to vector<48x64xf32>
    %116 = arith.truncf %115 : vector<48x64xf32> to vector<48x64xbf16>
    %117 = vector.extract_strided_slice %70 {offsets = [64, 0], sizes = [64, 128], strides = [1, 1]} : vector<128x128xbf16> to vector<64x128xbf16>
    %cst_56 = arith.constant dense<0.000000e+00> : vector<48x128xf32>
    %118 = tpu.matmul %116, %117, %cst_56 {dimension_numbers = #tpu.dot_dimension_numbers<[1], [0], [0], [1], [0, 0, 1, 1], [], []>} : vector<48x64xbf16>, vector<64x128xbf16>, vector<48x128xf32> -> vector<48x128xf32>
    %119 = arith.addf %94, %118 : vector<48x128xf32>
    %120 = arith.addf %20, %119 : vector<48x128xf32>
    %c0_57 = arith.constant 0 : index
    %c0_58 = arith.constant 0 : index
    %c0_59 = arith.constant 0 : index
    %121 = vector.load %arg11[%c0_57, %c0_58, %c0_59] : memref<2x1x128xf32, #tpu.memory_space<vmem>>, vector<1x1x128xf32>
    %122 = vector.shape_cast %121 : vector<1x1x128xf32> to vector<1x128xf32>
    %123 = vector.broadcast %122 : vector<1x128xf32> to vector<48x128xf32>
    %124 = arith.addf %120, %123 : vector<48x128xf32>
    %c0_60 = arith.constant 0 : index
    %c0_61 = arith.constant 0 : index
    %c0_62 = arith.constant 0 : index
    %125 = vector.load %arg12[%c0_60, %c0_61, %c0_62] : memref<2x1x128xf32, #tpu.memory_space<vmem>>, vector<1x1x128xf32>
    %126 = vector.shape_cast %125 : vector<1x1x128xf32> to vector<1x128xf32>
    %c0_63 = arith.constant 0 : index
    %c0_64 = arith.constant 0 : index
    %c0_65 = arith.constant 0 : index
    %127 = vector.load %arg13[%c0_63, %c0_64, %c0_65] : memref<2x1x128xf32, #tpu.memory_space<vmem>>, vector<1x1x128xf32>
    %128 = vector.shape_cast %127 : vector<1x1x128xf32> to vector<1x128xf32>
    %cst_66 = arith.constant dense<0.000000e+00> : vector<48xf32>
    %129 = vector.multi_reduction <add>, %124, %cst_66 [1] : vector<48x128xf32> to vector<48xf32>
    %130 = vector.shape_cast %129 : vector<48xf32> to vector<48x1xf32>
    %cst_67 = arith.constant 1.280000e+02 : f32
    %131 = vector.broadcast %cst_67 : f32 to vector<48x1xf32>
    %132 = arith.divf %130, %131 : vector<48x1xf32>
    %133 = vector.broadcast %132 : vector<48x1xf32> to vector<48x128xf32>
    %134 = arith.subf %124, %133 : vector<48x128xf32>
    %135 = arith.mulf %134, %134 : vector<48x128xf32>
    %cst_68 = arith.constant dense<0.000000e+00> : vector<48xf32>
    %136 = vector.multi_reduction <add>, %135, %cst_68 [1] : vector<48x128xf32> to vector<48xf32>
    %137 = vector.shape_cast %136 : vector<48xf32> to vector<48x1xf32>
    %cst_69 = arith.constant 1.280000e+02 : f32
    %138 = vector.broadcast %cst_69 : f32 to vector<48x1xf32>
    %139 = arith.divf %137, %138 : vector<48x1xf32>
    %140 = vector.broadcast %132 : vector<48x1xf32> to vector<48x128xf32>
    %141 = arith.subf %124, %140 : vector<48x128xf32>
    %cst_70 = arith.constant 9.99999997E-7 : f32
    %142 = vector.broadcast %cst_70 : f32 to vector<48x1xf32>
    %143 = arith.addf %139, %142 : vector<48x1xf32>
    %144 = math.rsqrt %143 : vector<48x1xf32>
    %145 = vector.broadcast %144 : vector<48x1xf32> to vector<48x128xf32>
    %146 = arith.mulf %141, %145 : vector<48x128xf32>
    %147 = vector.broadcast %126 : vector<1x128xf32> to vector<48x128xf32>
    %148 = arith.mulf %146, %147 : vector<48x128xf32>
    %149 = vector.broadcast %128 : vector<1x128xf32> to vector<48x128xf32>
    %150 = arith.addf %148, %149 : vector<48x128xf32>
    %151 = arith.truncf %150 : vector<48x128xf32> to vector<48x128xbf16>
    %c0_71 = arith.constant 0 : index
    %c0_72 = arith.constant 0 : index
    %c0_73 = arith.constant 0 : index
    %152 = vector.load %arg14[%c0_71, %c0_72, %c0_73] : memref<2x128x512xbf16, #tpu.memory_space<vmem>>, vector<1x128x512xbf16>
    %153 = vector.shape_cast %152 : vector<1x128x512xbf16> to vector<128x512xbf16>
    %cst_74 = arith.constant dense<0.000000e+00> : vector<48x512xf32>
    %154 = tpu.matmul %151, %153, %cst_74 {dimension_numbers = #tpu.dot_dimension_numbers<[1], [0], [0], [1], [0, 0, 1, 1], [], []>} : vector<48x128xbf16>, vector<128x512xbf16>, vector<48x512xf32> -> vector<48x512xf32>
    %c0_75 = arith.constant 0 : index
    %c0_76 = arith.constant 0 : index
    %c0_77 = arith.constant 0 : index
    %155 = vector.load %arg15[%c0_75, %c0_76, %c0_77] : memref<2x1x512xf32, #tpu.memory_space<vmem>>, vector<1x1x512xf32>
    %156 = vector.shape_cast %155 : vector<1x1x512xf32> to vector<1x512xf32>
    %157 = vector.broadcast %156 : vector<1x512xf32> to vector<48x512xf32>
    %158 = arith.addf %154, %157 : vector<48x512xf32>
    %159 = arith.mulf %158, %158 : vector<48x512xf32>
    %160 = arith.mulf %158, %159 : vector<48x512xf32>
    %cst_78 = arith.constant 4.471500e-02 : f32
    %161 = vector.broadcast %cst_78 : f32 to vector<48x512xf32>
    %162 = arith.mulf %161, %160 : vector<48x512xf32>
    %163 = arith.addf %158, %162 : vector<48x512xf32>
    %cst_79 = arith.constant 0.797884583 : f32
    %164 = vector.broadcast %cst_79 : f32 to vector<48x512xf32>
    %165 = arith.mulf %164, %163 : vector<48x512xf32>
    %166 = math.tanh %165 : vector<48x512xf32>
    %cst_80 = arith.constant 1.000000e+00 : f32
    %167 = vector.broadcast %cst_80 : f32 to vector<48x512xf32>
    %168 = arith.addf %167, %166 : vector<48x512xf32>
    %cst_81 = arith.constant 5.000000e-01 : f32
    %169 = vector.broadcast %cst_81 : f32 to vector<48x512xf32>
    %170 = arith.mulf %169, %168 : vector<48x512xf32>
    %171 = arith.mulf %158, %170 : vector<48x512xf32>
    %172 = arith.truncf %171 : vector<48x512xf32> to vector<48x512xbf16>
    %c0_82 = arith.constant 0 : index
    %c0_83 = arith.constant 0 : index
    %c0_84 = arith.constant 0 : index
    %173 = vector.load %arg16[%c0_82, %c0_83, %c0_84] : memref<2x512x128xbf16, #tpu.memory_space<vmem>>, vector<1x512x128xbf16>
    %174 = vector.shape_cast %173 : vector<1x512x128xbf16> to vector<512x128xbf16>
    %cst_85 = arith.constant dense<0.000000e+00> : vector<48x128xf32>
    %175 = tpu.matmul %172, %174, %cst_85 {dimension_numbers = #tpu.dot_dimension_numbers<[1], [0], [0], [1], [0, 0, 1, 1], [], []>} : vector<48x512xbf16>, vector<512x128xbf16>, vector<48x128xf32> -> vector<48x128xf32>
    %c0_86 = arith.constant 0 : index
    %c0_87 = arith.constant 0 : index
    %c0_88 = arith.constant 0 : index
    %176 = vector.load %arg17[%c0_86, %c0_87, %c0_88] : memref<2x1x128xf32, #tpu.memory_space<vmem>>, vector<1x1x128xf32>
    %177 = vector.shape_cast %176 : vector<1x1x128xf32> to vector<1x128xf32>
    %178 = vector.broadcast %177 : vector<1x128xf32> to vector<48x128xf32>
    %179 = arith.addf %175, %178 : vector<48x128xf32>
    %180 = arith.addf %124, %179 : vector<48x128xf32>
    %c1 = arith.constant 1 : index
    %c0_89 = arith.constant 0 : index
    %c0_90 = arith.constant 0 : index
    %181 = vector.load %arg6[%c1, %c0_89, %c0_90] : memref<2x1x128xf32, #tpu.memory_space<vmem>>, vector<1x1x128xf32>
    %182 = vector.shape_cast %181 : vector<1x1x128xf32> to vector<1x128xf32>
    %c1_91 = arith.constant 1 : index
    %c0_92 = arith.constant 0 : index
    %c0_93 = arith.constant 0 : index
    %183 = vector.load %arg7[%c1_91, %c0_92, %c0_93] : memref<2x1x128xf32, #tpu.memory_space<vmem>>, vector<1x1x128xf32>
    %184 = vector.shape_cast %183 : vector<1x1x128xf32> to vector<1x128xf32>
    %cst_94 = arith.constant dense<0.000000e+00> : vector<48xf32>
    %185 = vector.multi_reduction <add>, %180, %cst_94 [1] : vector<48x128xf32> to vector<48xf32>
    %186 = vector.shape_cast %185 : vector<48xf32> to vector<48x1xf32>
    %cst_95 = arith.constant 1.280000e+02 : f32
    %187 = vector.broadcast %cst_95 : f32 to vector<48x1xf32>
    %188 = arith.divf %186, %187 : vector<48x1xf32>
    %189 = vector.broadcast %188 : vector<48x1xf32> to vector<48x128xf32>
    %190 = arith.subf %180, %189 : vector<48x128xf32>
    %191 = arith.mulf %190, %190 : vector<48x128xf32>
    %cst_96 = arith.constant dense<0.000000e+00> : vector<48xf32>
    %192 = vector.multi_reduction <add>, %191, %cst_96 [1] : vector<48x128xf32> to vector<48xf32>
    %193 = vector.shape_cast %192 : vector<48xf32> to vector<48x1xf32>
    %cst_97 = arith.constant 1.280000e+02 : f32
    %194 = vector.broadcast %cst_97 : f32 to vector<48x1xf32>
    %195 = arith.divf %193, %194 : vector<48x1xf32>
    %196 = vector.broadcast %188 : vector<48x1xf32> to vector<48x128xf32>
    %197 = arith.subf %180, %196 : vector<48x128xf32>
    %cst_98 = arith.constant 9.99999997E-7 : f32
    %198 = vector.broadcast %cst_98 : f32 to vector<48x1xf32>
    %199 = arith.addf %195, %198 : vector<48x1xf32>
    %200 = math.rsqrt %199 : vector<48x1xf32>
    %201 = vector.broadcast %200 : vector<48x1xf32> to vector<48x128xf32>
    %202 = arith.mulf %197, %201 : vector<48x128xf32>
    %203 = vector.broadcast %182 : vector<1x128xf32> to vector<48x128xf32>
    %204 = arith.mulf %202, %203 : vector<48x128xf32>
    %205 = vector.broadcast %184 : vector<1x128xf32> to vector<48x128xf32>
    %206 = arith.addf %204, %205 : vector<48x128xf32>
    %207 = arith.truncf %206 : vector<48x128xf32> to vector<48x128xbf16>
    %c1_99 = arith.constant 1 : index
    %c0_100 = arith.constant 0 : index
    %c0_101 = arith.constant 0 : index
    %208 = vector.load %arg8[%c1_99, %c0_100, %c0_101] : memref<2x128x384xbf16, #tpu.memory_space<vmem>>, vector<1x128x384xbf16>
    %209 = vector.shape_cast %208 : vector<1x128x384xbf16> to vector<128x384xbf16>
    %cst_102 = arith.constant dense<0.000000e+00> : vector<48x384xf32>
    %210 = tpu.matmul %207, %209, %cst_102 {dimension_numbers = #tpu.dot_dimension_numbers<[1], [0], [0], [1], [0, 0, 1, 1], [], []>} : vector<48x128xbf16>, vector<128x384xbf16>, vector<48x384xf32> -> vector<48x384xf32>
    %c1_103 = arith.constant 1 : index
    %c0_104 = arith.constant 0 : index
    %c0_105 = arith.constant 0 : index
    %211 = vector.load %arg9[%c1_103, %c0_104, %c0_105] : memref<2x1x384xf32, #tpu.memory_space<vmem>>, vector<1x1x384xf32>
    %212 = vector.shape_cast %211 : vector<1x1x384xf32> to vector<1x384xf32>
    %213 = vector.broadcast %212 : vector<1x384xf32> to vector<48x384xf32>
    %214 = arith.addf %210, %213 : vector<48x384xf32>
    %215 = vector.extract_strided_slice %214 {offsets = [0, 0], sizes = [48, 128], strides = [1, 1]} : vector<48x384xf32> to vector<48x128xf32>
    %cst_106 = arith.constant 1.250000e-01 : f32
    %216 = vector.broadcast %cst_106 : f32 to vector<48x128xf32>
    %217 = arith.mulf %215, %216 : vector<48x128xf32>
    %218 = vector.shape_cast %217 : vector<48x128xf32> to vector<2x24x128xf32>
    %219 = arith.truncf %218 : vector<2x24x128xf32> to vector<2x24x128xbf16>
    %220 = vector.extract_strided_slice %214 {offsets = [0, 128], sizes = [48, 128], strides = [1, 1]} : vector<48x384xf32> to vector<48x128xf32>
    %221 = vector.shape_cast %220 : vector<48x128xf32> to vector<2x24x128xf32>
    %222 = arith.truncf %221 : vector<2x24x128xf32> to vector<2x24x128xbf16>
    %223 = vector.extract_strided_slice %214 {offsets = [0, 256], sizes = [48, 128], strides = [1, 1]} : vector<48x384xf32> to vector<48x128xf32>
    %224 = vector.shape_cast %223 : vector<48x128xf32> to vector<2x24x128xf32>
    %225 = arith.truncf %224 : vector<2x24x128xf32> to vector<2x24x128xbf16>
    %c1_107 = arith.constant 1 : index
    %c0_108 = arith.constant 0 : index
    %c0_109 = arith.constant 0 : index
    %226 = vector.load %arg10[%c1_107, %c0_108, %c0_109] : memref<2x128x128xbf16, #tpu.memory_space<vmem>>, vector<1x128x128xbf16>
    %227 = vector.shape_cast %226 : vector<1x128x128xbf16> to vector<128x128xbf16>
    %228 = vector.extract_strided_slice %219 {offsets = [0, 0, 0], sizes = [2, 24, 64], strides = [1, 1, 1]} : vector<2x24x128xbf16> to vector<2x24x64xbf16>
    %229 = vector.extract_strided_slice %222 {offsets = [0, 0, 0], sizes = [2, 24, 64], strides = [1, 1, 1]} : vector<2x24x128xbf16> to vector<2x24x64xbf16>
    "tpu.trace_start"() <{level = 10 : i32, message = "bnd,bmd->bnm"}> : () -> ()
    %cst_110 = arith.constant dense<0.000000e+00> : vector<2x24x24xf32>
    %230 = tpu.matmul %228, %229, %cst_110 {dimension_numbers = #tpu.dot_dimension_numbers<[2], [2], [1], [1], [0, 0, 0, 1, 1, 1], [0], [0]>} : vector<2x24x64xbf16>, vector<2x24x64xbf16>, vector<2x24x24xf32> -> vector<2x24x24xf32>
    %cst_111 = arith.constant -1.000000e+30 : f32
    "tpu.trace_stop"() : () -> ()
    %231 = vector.shape_cast %23 : vector<1x1x24xi1> to vector<1x1x24xi1>
    %232 = vector.broadcast %231 : vector<1x1x24xi1> to vector<2x24x24xi1>
    %233 = vector.broadcast %cst_111 : f32 to vector<2x24x24xf32>
    %234 = arith.select %232, %230, %233 : vector<2x24x24xi1>, vector<2x24x24xf32>
    %cst_112 = arith.constant dense<0xFF800000> : vector<2x24xf32>
    %235 = vector.multi_reduction <maximumf>, %234, %cst_112 [2] : vector<2x24x24xf32> to vector<2x24xf32>
    %236 = vector.shape_cast %235 : vector<2x24xf32> to vector<2x24x1xf32>
    %237 = vector.broadcast %236 : vector<2x24x1xf32> to vector<2x24x24xf32>
    %238 = arith.subf %234, %237 : vector<2x24x24xf32>
    %239 = math.exp %238 : vector<2x24x24xf32>
    %cst_113 = arith.constant dense<0.000000e+00> : vector<2x24xf32>
    %240 = vector.multi_reduction <add>, %239, %cst_113 [2] : vector<2x24x24xf32> to vector<2x24xf32>
    %241 = vector.shape_cast %240 : vector<2x24xf32> to vector<2x24x1xf32>
    %242 = tpu.reciprocal %241 {approx = true} : vector<2x24x1xf32> -> vector<2x24x1xf32>
    %243 = vector.broadcast %242 : vector<2x24x1xf32> to vector<2x24x24xf32>
    %244 = arith.mulf %239, %243 : vector<2x24x24xf32>
    %245 = arith.truncf %244 : vector<2x24x24xf32> to vector<2x24x24xbf16>
    %246 = vector.extract_strided_slice %225 {offsets = [0, 0, 0], sizes = [2, 24, 64], strides = [1, 1, 1]} : vector<2x24x128xbf16> to vector<2x24x64xbf16>
    "tpu.trace_start"() <{level = 10 : i32, message = "bnm,bmd->bnd"}> : () -> ()
    %cst_114 = arith.constant dense<0.000000e+00> : vector<2x24x64xf32>
    %247 = tpu.matmul %245, %246, %cst_114 {dimension_numbers = #tpu.dot_dimension_numbers<[2], [1], [1], [2], [0, 0, 0, 1, 1, 2], [0], [0]>} : vector<2x24x24xbf16>, vector<2x24x64xbf16>, vector<2x24x64xf32> -> vector<2x24x64xf32>
    "tpu.trace_stop"() : () -> ()
    %248 = vector.shape_cast %247 : vector<2x24x64xf32> to vector<48x64xf32>
    %249 = arith.truncf %248 : vector<48x64xf32> to vector<48x64xbf16>
    %250 = vector.extract_strided_slice %227 {offsets = [0, 0], sizes = [64, 128], strides = [1, 1]} : vector<128x128xbf16> to vector<64x128xbf16>
    %cst_115 = arith.constant dense<0.000000e+00> : vector<48x128xf32>
    %251 = tpu.matmul %249, %250, %cst_115 {dimension_numbers = #tpu.dot_dimension_numbers<[1], [0], [0], [1], [0, 0, 1, 1], [], []>} : vector<48x64xbf16>, vector<64x128xbf16>, vector<48x128xf32> -> vector<48x128xf32>
    %252 = vector.extract_strided_slice %219 {offsets = [0, 0, 64], sizes = [2, 24, 64], strides = [1, 1, 1]} : vector<2x24x128xbf16> to vector<2x24x64xbf16>
    %253 = vector.extract_strided_slice %222 {offsets = [0, 0, 64], sizes = [2, 24, 64], strides = [1, 1, 1]} : vector<2x24x128xbf16> to vector<2x24x64xbf16>
    "tpu.trace_start"() <{level = 10 : i32, message = "bnd,bmd->bnm"}> : () -> ()
    %cst_116 = arith.constant dense<0.000000e+00> : vector<2x24x24xf32>
    %254 = tpu.matmul %252, %253, %cst_116 {dimension_numbers = #tpu.dot_dimension_numbers<[2], [2], [1], [1], [0, 0, 0, 1, 1, 1], [0], [0]>} : vector<2x24x64xbf16>, vector<2x24x64xbf16>, vector<2x24x24xf32> -> vector<2x24x24xf32>
    %cst_117 = arith.constant -1.000000e+30 : f32
    "tpu.trace_stop"() : () -> ()
    %255 = vector.shape_cast %23 : vector<1x1x24xi1> to vector<1x1x24xi1>
    %256 = vector.broadcast %255 : vector<1x1x24xi1> to vector<2x24x24xi1>
    %257 = vector.broadcast %cst_117 : f32 to vector<2x24x24xf32>
    %258 = arith.select %256, %254, %257 : vector<2x24x24xi1>, vector<2x24x24xf32>
    %cst_118 = arith.constant dense<0xFF800000> : vector<2x24xf32>
    %259 = vector.multi_reduction <maximumf>, %258, %cst_118 [2] : vector<2x24x24xf32> to vector<2x24xf32>
    %260 = vector.shape_cast %259 : vector<2x24xf32> to vector<2x24x1xf32>
    %261 = vector.broadcast %260 : vector<2x24x1xf32> to vector<2x24x24xf32>
    %262 = arith.subf %258, %261 : vector<2x24x24xf32>
    %263 = math.exp %262 : vector<2x24x24xf32>
    %cst_119 = arith.constant dense<0.000000e+00> : vector<2x24xf32>
    %264 = vector.multi_reduction <add>, %263, %cst_119 [2] : vector<2x24x24xf32> to vector<2x24xf32>
    %265 = vector.shape_cast %264 : vector<2x24xf32> to vector<2x24x1xf32>
    %266 = tpu.reciprocal %265 {approx = true} : vector<2x24x1xf32> -> vector<2x24x1xf32>
    %267 = vector.broadcast %266 : vector<2x24x1xf32> to vector<2x24x24xf32>
    %268 = arith.mulf %263, %267 : vector<2x24x24xf32>
    %269 = arith.truncf %268 : vector<2x24x24xf32> to vector<2x24x24xbf16>
    %270 = vector.extract_strided_slice %225 {offsets = [0, 0, 64], sizes = [2, 24, 64], strides = [1, 1, 1]} : vector<2x24x128xbf16> to vector<2x24x64xbf16>
    "tpu.trace_start"() <{level = 10 : i32, message = "bnm,bmd->bnd"}> : () -> ()
    %cst_120 = arith.constant dense<0.000000e+00> : vector<2x24x64xf32>
    %271 = tpu.matmul %269, %270, %cst_120 {dimension_numbers = #tpu.dot_dimension_numbers<[2], [1], [1], [2], [0, 0, 0, 1, 1, 2], [0], [0]>} : vector<2x24x24xbf16>, vector<2x24x64xbf16>, vector<2x24x64xf32> -> vector<2x24x64xf32>
    "tpu.trace_stop"() : () -> ()
    %272 = vector.shape_cast %271 : vector<2x24x64xf32> to vector<48x64xf32>
    %273 = arith.truncf %272 : vector<48x64xf32> to vector<48x64xbf16>
    %274 = vector.extract_strided_slice %227 {offsets = [64, 0], sizes = [64, 128], strides = [1, 1]} : vector<128x128xbf16> to vector<64x128xbf16>
    %cst_121 = arith.constant dense<0.000000e+00> : vector<48x128xf32>
    %275 = tpu.matmul %273, %274, %cst_121 {dimension_numbers = #tpu.dot_dimension_numbers<[1], [0], [0], [1], [0, 0, 1, 1], [], []>} : vector<48x64xbf16>, vector<64x128xbf16>, vector<48x128xf32> -> vector<48x128xf32>
    %276 = arith.addf %251, %275 : vector<48x128xf32>
    %277 = arith.addf %180, %276 : vector<48x128xf32>
    %c1_122 = arith.constant 1 : index
    %c0_123 = arith.constant 0 : index
    %c0_124 = arith.constant 0 : index
    %278 = vector.load %arg11[%c1_122, %c0_123, %c0_124] : memref<2x1x128xf32, #tpu.memory_space<vmem>>, vector<1x1x128xf32>
    %279 = vector.shape_cast %278 : vector<1x1x128xf32> to vector<1x128xf32>
    %280 = vector.broadcast %279 : vector<1x128xf32> to vector<48x128xf32>
    %281 = arith.addf %277, %280 : vector<48x128xf32>
    %c1_125 = arith.constant 1 : index
    %c0_126 = arith.constant 0 : index
    %c0_127 = arith.constant 0 : index
    %282 = vector.load %arg12[%c1_125, %c0_126, %c0_127] : memref<2x1x128xf32, #tpu.memory_space<vmem>>, vector<1x1x128xf32>
    %283 = vector.shape_cast %282 : vector<1x1x128xf32> to vector<1x128xf32>
    %c1_128 = arith.constant 1 : index
    %c0_129 = arith.constant 0 : index
    %c0_130 = arith.constant 0 : index
    %284 = vector.load %arg13[%c1_128, %c0_129, %c0_130] : memref<2x1x128xf32, #tpu.memory_space<vmem>>, vector<1x1x128xf32>
    %285 = vector.shape_cast %284 : vector<1x1x128xf32> to vector<1x128xf32>
    %cst_131 = arith.constant dense<0.000000e+00> : vector<48xf32>
    %286 = vector.multi_reduction <add>, %281, %cst_131 [1] : vector<48x128xf32> to vector<48xf32>
    %287 = vector.shape_cast %286 : vector<48xf32> to vector<48x1xf32>
    %cst_132 = arith.constant 1.280000e+02 : f32
    %288 = vector.broadcast %cst_132 : f32 to vector<48x1xf32>
    %289 = arith.divf %287, %288 : vector<48x1xf32>
    %290 = vector.broadcast %289 : vector<48x1xf32> to vector<48x128xf32>
    %291 = arith.subf %281, %290 : vector<48x128xf32>
    %292 = arith.mulf %291, %291 : vector<48x128xf32>
    %cst_133 = arith.constant dense<0.000000e+00> : vector<48xf32>
    %293 = vector.multi_reduction <add>, %292, %cst_133 [1] : vector<48x128xf32> to vector<48xf32>
    %294 = vector.shape_cast %293 : vector<48xf32> to vector<48x1xf32>
    %cst_134 = arith.constant 1.280000e+02 : f32
    %295 = vector.broadcast %cst_134 : f32 to vector<48x1xf32>
    %296 = arith.divf %294, %295 : vector<48x1xf32>
    %297 = vector.broadcast %289 : vector<48x1xf32> to vector<48x128xf32>
    %298 = arith.subf %281, %297 : vector<48x128xf32>
    %cst_135 = arith.constant 9.99999997E-7 : f32
    %299 = vector.broadcast %cst_135 : f32 to vector<48x1xf32>
    %300 = arith.addf %296, %299 : vector<48x1xf32>
    %301 = math.rsqrt %300 : vector<48x1xf32>
    %302 = vector.broadcast %301 : vector<48x1xf32> to vector<48x128xf32>
    %303 = arith.mulf %298, %302 : vector<48x128xf32>
    %304 = vector.broadcast %283 : vector<1x128xf32> to vector<48x128xf32>
    %305 = arith.mulf %303, %304 : vector<48x128xf32>
    %306 = vector.broadcast %285 : vector<1x128xf32> to vector<48x128xf32>
    %307 = arith.addf %305, %306 : vector<48x128xf32>
    %308 = arith.truncf %307 : vector<48x128xf32> to vector<48x128xbf16>
    %c1_136 = arith.constant 1 : index
    %c0_137 = arith.constant 0 : index
    %c0_138 = arith.constant 0 : index
    %309 = vector.load %arg14[%c1_136, %c0_137, %c0_138] : memref<2x128x512xbf16, #tpu.memory_space<vmem>>, vector<1x128x512xbf16>
    %310 = vector.shape_cast %309 : vector<1x128x512xbf16> to vector<128x512xbf16>
    %cst_139 = arith.constant dense<0.000000e+00> : vector<48x512xf32>
    %311 = tpu.matmul %308, %310, %cst_139 {dimension_numbers = #tpu.dot_dimension_numbers<[1], [0], [0], [1], [0, 0, 1, 1], [], []>} : vector<48x128xbf16>, vector<128x512xbf16>, vector<48x512xf32> -> vector<48x512xf32>
    %c1_140 = arith.constant 1 : index
    %c0_141 = arith.constant 0 : index
    %c0_142 = arith.constant 0 : index
    %312 = vector.load %arg15[%c1_140, %c0_141, %c0_142] : memref<2x1x512xf32, #tpu.memory_space<vmem>>, vector<1x1x512xf32>
    %313 = vector.shape_cast %312 : vector<1x1x512xf32> to vector<1x512xf32>
    %314 = vector.broadcast %313 : vector<1x512xf32> to vector<48x512xf32>
    %315 = arith.addf %311, %314 : vector<48x512xf32>
    %316 = arith.mulf %315, %315 : vector<48x512xf32>
    %317 = arith.mulf %315, %316 : vector<48x512xf32>
    %cst_143 = arith.constant 4.471500e-02 : f32
    %318 = vector.broadcast %cst_143 : f32 to vector<48x512xf32>
    %319 = arith.mulf %318, %317 : vector<48x512xf32>
    %320 = arith.addf %315, %319 : vector<48x512xf32>
    %cst_144 = arith.constant 0.797884583 : f32
    %321 = vector.broadcast %cst_144 : f32 to vector<48x512xf32>
    %322 = arith.mulf %321, %320 : vector<48x512xf32>
    %323 = math.tanh %322 : vector<48x512xf32>
    %cst_145 = arith.constant 1.000000e+00 : f32
    %324 = vector.broadcast %cst_145 : f32 to vector<48x512xf32>
    %325 = arith.addf %324, %323 : vector<48x512xf32>
    %cst_146 = arith.constant 5.000000e-01 : f32
    %326 = vector.broadcast %cst_146 : f32 to vector<48x512xf32>
    %327 = arith.mulf %326, %325 : vector<48x512xf32>
    %328 = arith.mulf %315, %327 : vector<48x512xf32>
    %329 = arith.truncf %328 : vector<48x512xf32> to vector<48x512xbf16>
    %c1_147 = arith.constant 1 : index
    %c0_148 = arith.constant 0 : index
    %c0_149 = arith.constant 0 : index
    %330 = vector.load %arg16[%c1_147, %c0_148, %c0_149] : memref<2x512x128xbf16, #tpu.memory_space<vmem>>, vector<1x512x128xbf16>
    %331 = vector.shape_cast %330 : vector<1x512x128xbf16> to vector<512x128xbf16>
    %cst_150 = arith.constant dense<0.000000e+00> : vector<48x128xf32>
    %332 = tpu.matmul %329, %331, %cst_150 {dimension_numbers = #tpu.dot_dimension_numbers<[1], [0], [0], [1], [0, 0, 1, 1], [], []>} : vector<48x512xbf16>, vector<512x128xbf16>, vector<48x128xf32> -> vector<48x128xf32>
    %c1_151 = arith.constant 1 : index
    %c0_152 = arith.constant 0 : index
    %c0_153 = arith.constant 0 : index
    %333 = vector.load %arg17[%c1_151, %c0_152, %c0_153] : memref<2x1x128xf32, #tpu.memory_space<vmem>>, vector<1x1x128xf32>
    %334 = vector.shape_cast %333 : vector<1x1x128xf32> to vector<1x128xf32>
    %335 = vector.broadcast %334 : vector<1x128xf32> to vector<48x128xf32>
    %336 = arith.addf %332, %335 : vector<48x128xf32>
    %337 = arith.addf %281, %336 : vector<48x128xf32>
    %c0_154 = arith.constant 0 : index
    %c0_155 = arith.constant 0 : index
    %338 = vector.load %arg18[%c0_154, %c0_155] : memref<1x128xf32, #tpu.memory_space<vmem>>, vector<1x128xf32>
    %c0_156 = arith.constant 0 : index
    %c0_157 = arith.constant 0 : index
    %339 = vector.load %arg19[%c0_156, %c0_157] : memref<1x128xf32, #tpu.memory_space<vmem>>, vector<1x128xf32>
    %cst_158 = arith.constant dense<0.000000e+00> : vector<48xf32>
    %340 = vector.multi_reduction <add>, %337, %cst_158 [1] : vector<48x128xf32> to vector<48xf32>
    %341 = vector.shape_cast %340 : vector<48xf32> to vector<48x1xf32>
    %cst_159 = arith.constant 1.280000e+02 : f32
    %342 = vector.broadcast %cst_159 : f32 to vector<48x1xf32>
    %343 = arith.divf %341, %342 : vector<48x1xf32>
    %344 = vector.broadcast %343 : vector<48x1xf32> to vector<48x128xf32>
    %345 = arith.subf %337, %344 : vector<48x128xf32>
    %346 = arith.mulf %345, %345 : vector<48x128xf32>
    %cst_160 = arith.constant dense<0.000000e+00> : vector<48xf32>
    %347 = vector.multi_reduction <add>, %346, %cst_160 [1] : vector<48x128xf32> to vector<48xf32>
    %348 = vector.shape_cast %347 : vector<48xf32> to vector<48x1xf32>
    %cst_161 = arith.constant 1.280000e+02 : f32
    %349 = vector.broadcast %cst_161 : f32 to vector<48x1xf32>
    %350 = arith.divf %348, %349 : vector<48x1xf32>
    %351 = vector.broadcast %343 : vector<48x1xf32> to vector<48x128xf32>
    %352 = arith.subf %337, %351 : vector<48x128xf32>
    %cst_162 = arith.constant 9.99999997E-7 : f32
    %353 = vector.broadcast %cst_162 : f32 to vector<48x1xf32>
    %354 = arith.addf %350, %353 : vector<48x1xf32>
    %355 = math.rsqrt %354 : vector<48x1xf32>
    %356 = vector.broadcast %355 : vector<48x1xf32> to vector<48x128xf32>
    %357 = arith.mulf %352, %356 : vector<48x128xf32>
    %358 = vector.broadcast %338 : vector<1x128xf32> to vector<48x128xf32>
    %359 = arith.mulf %357, %358 : vector<48x128xf32>
    %360 = vector.broadcast %339 : vector<1x128xf32> to vector<48x128xf32>
    %361 = arith.addf %359, %360 : vector<48x128xf32>
    %362 = vector.shape_cast %361 : vector<48x128xf32> to vector<2x24x128xf32>
    %363 = vector.extract_strided_slice %362 {offsets = [0, 16, 0], sizes = [2, 1, 128], strides = [1, 1, 1]} : vector<2x24x128xf32> to vector<2x1x128xf32>
    %c0_163 = arith.constant 0 : index
    %c0_164 = arith.constant 0 : index
    %c0_165 = arith.constant 0 : index
    %364 = vector.load %arg20[%c0_163, %c0_164, %c0_165] : memref<2x1x128xf32, #tpu.memory_space<vmem>>, vector<2x1x128xf32>
    tpu.vector_store %arg20[%c0_163, %c0_164, %c0_165], %363 {strides = array<i32>} : memref<2x1x128xf32, #tpu.memory_space<vmem>>, vector<2x1x128xf32>,
    %365 = vector.extract_strided_slice %362 {offsets = [0, 0, 0], sizes = [2, 16, 128], strides = [1, 1, 1]} : vector<2x24x128xf32> to vector<2x16x128xf32>
    %c0_166 = arith.constant 0 : index
    %c0_167 = arith.constant 0 : index
    %c0_168 = arith.constant 0 : index
    %366 = vector.load %arg21[%c0_166, %c0_167, %c0_168] : memref<2x16x128xf32, #tpu.memory_space<vmem>>, vector<2x16x128xf32>
    tpu.vector_store %arg21[%c0_166, %c0_167, %c0_168], %365 {strides = array<i32>} : memref<2x16x128xf32, #tpu.memory_space<vmem>>, vector<2x16x128xf32>,
    return
  }
  func.func @transform_0(%arg0: i32) -> (i32, i32, i32) {
    %c0_i32 = arith.constant 0 : i32
    %c0_i32_0 = arith.constant 0 : i32
    %c0_i32_1 = arith.constant 0 : i32
    return %arg0, %c0_i32, %c0_i32_0 : i32, i32, i32
  }
  func.func @transform_1(%arg0: i32) -> (i32, i32) {
    %c0_i32 = arith.constant 0 : i32
    %c0_i32_0 = arith.constant 0 : i32
    %c0_i32_1 = arith.constant 0 : i32
    return %c0_i32, %c0_i32_0 : i32, i32
  }
  func.func @transform_2(%arg0: i32) -> (i32, i32) {
    %c0_i32 = arith.constant 0 : i32
    %c0_i32_0 = arith.constant 0 : i32
    %c0_i32_1 = arith.constant 0 : i32
    return %c0_i32, %c0_i32_0 : i32, i32
  }
  func.func @transform_3(%arg0: i32) -> (i32, i32, i32) {
    %c0_i32 = arith.constant 0 : i32
    %c0_i32_0 = arith.constant 0 : i32
    %c0_i32_1 = arith.constant 0 : i32
    %c0_i32_2 = arith.constant 0 : i32
    return %c0_i32, %c0_i32_0, %c0_i32_1 : i32, i32, i32
  }
  func.func @transform_4(%arg0: i32) -> (i32, i32, i32) {
    %c0_i32 = arith.constant 0 : i32
    %c0_i32_0 = arith.constant 0 : i32
    %c0_i32_1 = arith.constant 0 : i32
    %c0_i32_2 = arith.constant 0 : i32
    return %c0_i32, %c0_i32_0, %c0_i32_1 : i32, i32, i32
  }
  func.func @transform_5(%arg0: i32) -> (i32, i32, i32) {
    %c0_i32 = arith.constant 0 : i32
    %c0_i32_0 = arith.constant 0 : i32
    %c0_i32_1 = arith.constant 0 : i32
    %c0_i32_2 = arith.constant 0 : i32
    return %c0_i32, %c0_i32_0, %c0_i32_1 : i32, i32, i32
  }
  func.func @transform_6(%arg0: i32) -> (i32, i32, i32) {
    %c0_i32 = arith.constant 0 : i32
    %c0_i32_0 = arith.constant 0 : i32
    %c0_i32_1 = arith.constant 0 : i32
    %c0_i32_2 = arith.constant 0 : i32
    return %c0_i32, %c0_i32_0, %c0_i32_1 : i32, i32, i32
  }
  func.func @transform_7(%arg0: i32) -> (i32, i32, i32) {
    %c0_i32 = arith.constant 0 : i32
    %c0_i32_0 = arith.constant 0 : i32
    %c0_i32_1 = arith.constant 0 : i32
    %c0_i32_2 = arith.constant 0 : i32
    return %c0_i32, %c0_i32_0, %c0_i32_1 : i32, i32, i32
  }
  func.func @transform_8(%arg0: i32) -> (i32, i32, i32) {
    %c0_i32 = arith.constant 0 : i32
    %c0_i32_0 = arith.constant 0 : i32
    %c0_i32_1 = arith.constant 0 : i32
    %c0_i32_2 = arith.constant 0 : i32
    return %c0_i32, %c0_i32_0, %c0_i32_1 : i32, i32, i32
  }
  func.func @transform_9(%arg0: i32) -> (i32, i32, i32) {
    %c0_i32 = arith.constant 0 : i32
    %c0_i32_0 = arith.constant 0 : i32
    %c0_i32_1 = arith.constant 0 : i32
    %c0_i32_2 = arith.constant 0 : i32
    return %c0_i32, %c0_i32_0, %c0_i32_1 : i32, i32, i32
  }
  func.func @transform_10(%arg0: i32) -> (i32, i32, i32) {
    %c0_i32 = arith.constant 0 : i32
    %c0_i32_0 = arith.constant 0 : i32
    %c0_i32_1 = arith.constant 0 : i32
    %c0_i32_2 = arith.constant 0 : i32
    return %c0_i32, %c0_i32_0, %c0_i32_1 : i32, i32, i32
  }
  func.func @transform_11(%arg0: i32) -> (i32, i32, i32) {
    %c0_i32 = arith.constant 0 : i32
    %c0_i32_0 = arith.constant 0 : i32
    %c0_i32_1 = arith.constant 0 : i32
    %c0_i32_2 = arith.constant 0 : i32
    return %c0_i32, %c0_i32_0, %c0_i32_1 : i32, i32, i32
  }
  func.func @transform_12(%arg0: i32) -> (i32, i32, i32) {
    %c0_i32 = arith.constant 0 : i32
    %c0_i32_0 = arith.constant 0 : i32
    %c0_i32_1 = arith.constant 0 : i32
    %c0_i32_2 = arith.constant 0 : i32
    return %c0_i32, %c0_i32_0, %c0_i32_1 : i32, i32, i32
  }
  func.func @transform_13(%arg0: i32) -> (i32, i32, i32) {
    %c0_i32 = arith.constant 0 : i32
    %c0_i32_0 = arith.constant 0 : i32
    %c0_i32_1 = arith.constant 0 : i32
    %c0_i32_2 = arith.constant 0 : i32
    return %c0_i32, %c0_i32_0, %c0_i32_1 : i32, i32, i32
  }
  func.func @transform_14(%arg0: i32) -> (i32, i32, i32) {
    %c0_i32 = arith.constant 0 : i32
    %c0_i32_0 = arith.constant 0 : i32
    %c0_i32_1 = arith.constant 0 : i32
    %c0_i32_2 = arith.constant 0 : i32
    return %c0_i32, %c0_i32_0, %c0_i32_1 : i32, i32, i32
  }
  func.func @transform_15(%arg0: i32) -> (i32, i32, i32) {
    %c0_i32 = arith.constant 0 : i32
    %c0_i32_0 = arith.constant 0 : i32
    %c0_i32_1 = arith.constant 0 : i32
    %c0_i32_2 = arith.constant 0 : i32
    return %c0_i32, %c0_i32_0, %c0_i32_1 : i32, i32, i32
  }
  func.func @transform_16(%arg0: i32) -> (i32, i32, i32) {
    %c0_i32 = arith.constant 0 : i32
    %c0_i32_0 = arith.constant 0 : i32
    %c0_i32_1 = arith.constant 0 : i32
    %c0_i32_2 = arith.constant 0 : i32
    return %c0_i32, %c0_i32_0, %c0_i32_1 : i32, i32, i32
  }
  func.func @transform_17(%arg0: i32) -> (i32, i32) {
    %c0_i32 = arith.constant 0 : i32
    %c0_i32_0 = arith.constant 0 : i32
    %c0_i32_1 = arith.constant 0 : i32
    return %c0_i32, %c0_i32_0 : i32, i32
  }
  func.func @transform_18(%arg0: i32) -> (i32, i32) {
    %c0_i32 = arith.constant 0 : i32
    %c0_i32_0 = arith.constant 0 : i32
    %c0_i32_1 = arith.constant 0 : i32
    return %c0_i32, %c0_i32_0 : i32, i32
  }
  func.func @transform_19(%arg0: i32) -> (i32, i32, i32) {
    %c0_i32 = arith.constant 0 : i32
    %c0_i32_0 = arith.constant 0 : i32
    %c0_i32_1 = arith.constant 0 : i32
    return %arg0, %c0_i32, %c0_i32_0 : i32, i32, i32
  }
  func.func @transform_20(%arg0: i32) -> (i32, i32, i32) {
    %c0_i32 = arith.constant 0 : i32
    %c0_i32_0 = arith.constant 0 : i32
    %c0_i32_1 = arith.constant 0 : i32
    return %arg0, %c0_i32, %c0_i32_0 : i32, i32, i32
  }
}

</mosaic_0001>

<bundles_post_ra>
// kernel: viedo_dino_rgb_forward.1
= control target key start
LH: loop header
LB: loop body
LE: loop exit
PB: predicated region body
PF: predicated region fallthrough
CT: control target
= control target key end

     0   :  { %s9280_s0 = inlined_call_operand.vmem [shape: bf16[4,16,48], index: 0, kind: input, shape index: {}]   ;;  %s9281_s1 = inlined_call_operand.vmem [shape: bf16[48,128], index: 1, kind: input, shape index: {}]   ;;  %s9282_s2 = inlined_call_operand.vmem [shape: f32[1,128], index: 2, kind: input, shape index: {}]   ;;  %s9283_s3 = inlined_call_operand.vmem [shape: f32[1,1,128], index: 3, kind: input, shape index: {}]   ;;  %s9284_s4 = inlined_call_operand.vmem [shape: f32[1,16,128], index: 4, kind: input, shape index: {}]   ;;  %s9285_s5 = inlined_call_operand.vmem [shape: f32[2,1,128], index: 5, kind: input, shape index: {}]   ;;  %s9286_s6 = inlined_call_operand.vmem [shape: f32[2,1,128], index: 6, kind: input, shape index: {}]   ;;  %s9287_s7 = inlined_call_operand.vmem [shape: bf16[2,128,384], index: 7, kind: input, shape index: {}]   ;;  %s9288_s8 = inlined_call_operand.vmem [shape: f32[2,1,384], index: 8, kind: input, shape index: {}]   ;;  %s9289_s9 = inlined_call_operand.vmem [shape: bf16[2,128,128], index: 9, kind: input, shape index: {}]   ;;  %s9290_s10 = inlined_call_operand.vmem [shape: f32[2,1,128], index: 10, kind: input, shape index: {}]   ;;  %s9291_s11 = inlined_call_operand.vmem [shape: f32[2,1,128], index: 11, kind: input, shape index: {}]   ;;  %s9292_s12 = inlined_call_operand.vmem [shape: f32[2,1,128], index: 12, kind: input, shape index: {}]   ;;  %s9293_s13 = inlined_call_operand.vmem [shape: bf16[2,128,512], index: 13, kind: input, shape index: {}]   ;;  %s9294_s14 = inlined_call_operand.vmem [shape: f32[2,1,512], index: 14, kind: input, shape index: {}]   ;;  %s9295_s15 = inlined_call_operand.vmem [shape: bf16[2,512,128], index: 15, kind: input, shape index: {}]   ;;  %s9296_s16 = inlined_call_operand.vmem [shape: f32[2,1,128], index: 16, kind: input, shape index: {}]   ;;  %s9297_s17 = inlined_call_operand.vmem [shape: f32[1,128], index: 17, kind: input, shape index: {}]   ;;  %s9298_s18 = inlined_call_operand.vmem [shape: f32[1,128], index: 18, kind: input, shape index: {}]   ;;  %s9299_s19 = inlined_call_operand.hbm [shape: f32[4,1,128], index: 19, kind: output, shape index: {0}]   ;;  %s9300_s20 = inlined_call_operand.hbm [shape: f32[4,16,128], index: 20, kind: output, shape index: {1}]  }
   0x1   :  { %9313 = sst [smem:[#allocation15_spill]] %s9280_s0 }
   0x2   :  { %9314 = sst [smem:[#allocation16_spill]] %s9281_s1 }
   0x3   :  { %9315 = sst [smem:[#allocation17_spill]] %s9282_s2 }
   0x4   :  { %9316 = sst [smem:[#allocation18_spill]] %s9283_s3 }
   0x5   :  { %9317 = sst [smem:[#allocation19_spill]] %s9284_s4 }
   0x6   :  { %9318 = sst [smem:[#allocation20_spill]] %s9285_s5 }
   0x7   :  { %9319 = sst [smem:[#allocation21_spill]] %s9286_s6 }
   0x8   :  { %9320 = sst [smem:[#allocation22_spill]] %s9287_s7 }
   0x9   :  { %9321 = sst [smem:[#allocation23_spill]] %s9299_s19 }
   0xa   :  { %26 = vsyncpa [#allocation4], 0 }
   0xb   :  { %28 = vsyncpa [#allocation4 + $0x1], 0 }
   0xc   :  { %29 = vsyncpa [#allocation6], 0 }
   0xd   :  { %31 = vsyncpa [#allocation6 + $0x1], 0  ;;  %s6955_s1 = smov 0   ;;  %s6957_s22 = smov 0  }
   0xe   :  { %s6959_s23 = smov 0   ;;  %s6961_s24 = smov 0  }
   0xf LB: > { %9322 = sst [smem:[#allocation9_spill]] %s6829_s1  ;;  %s6976_s2 = sadd.s32 4294967295, %s6841_s24   ;;  %s6841_s24 = sphi %s6961_s24, %s9348_s24   ;;  %s6837_s23 = sphi %s6959_s23, %s9350_s23   ;;  %s6833_s22 = sphi %s6957_s22, %s9352_s22   ;;  %s6829_s1 = sphi %s6955_s1, %s9351_s1  }
  0x10   : > { %9323 = sst [smem:[#allocation10_spill]] %s6837_s23  ;;  %s5210_s25 = sadd.s32 4294967294, %s6841_s24  }
  0x11   : > { %9324 = sst [smem:[#allocation11_spill]] %s6841_s24  ;;  %s6980_s3 = sadd.s32 1, %s6841_s24  }
  0x12   : > { %9325 = sst [smem:[#allocation12_spill]] %s6980_s3  ;;  %s448_s26 = sadd.s32 1, %s6837_s23 }
  0x13   : > { %s445_s27 = ssub.s32 %s6841_s24, %s6980_s3  ;;  %p458_p0 = scmp.ne.s32.totalorder %s6837_s23, %s6833_s22 }
  0x14   : > { %p446_p1 = scmp.eq.s32.totalorder %s445_s27, 0  ;;  %p459_p2 = scmp.eq.s32.totalorder %s6976_s2, 1 }
  0x15   : > { %p464_p3 = scmp.ne.s32.totalorder %s6833_s22, %s6829_s1  ;;  %p465_p4 = scmp.eq.s32.totalorder %s5210_s25, 1 }
  0x16   : > { %s6991_s28 = scalar_select %p446_p1, %s6837_s23, %s448_s26  }
  0x17   : > { %p6993_p5 = por %p459_p2, %p458_p0  ;;  %p6997_p6 = por %p465_p4, %p464_p3 }
  0x18   : > { %9326 = sst [smem:[#allocation13_spill]] %s6991_s28  ;;  %p5213_p7 = scmp.ge.s32.totalorder %s6841_s24, 1 }
  0x19   : > { %s9328_s29 = scalar_select %p6997_p6, 1, 0 }
  0x1a   : > { %p573_p8 = scmp.lt.s32.totalorder %s6841_s24, 3 }
  0x1b   : > { %9329 = sst [smem:[#allocation14_spill]] %s9328_s29 }
  0x1c   : > { %p574_p9 = pnand %p5213_p7, %p573_p8 }
  0x1d   : > { %s9330_s21 = sld [smem:[#allocation16_spill]] (!%p574_p9)  ;;  %s7007_s25 = sshll.u32 (!%p574_p9), %s6976_s2, 1 }
  0x1e   : > { %577 = sbr.rel (%p574_p9) target bundleno = 4231 (0x1087), region = 96  ;;  %p638_p10 = scmp.lt.s32.totalorder (!%p574_p9), %s7007_s25, 3 }
  0x1f   : > { %s9331_s3 = sld [smem:[#allocation18_spill]] (!%p574_p9)  ;;  %s9310_s23 = smov (!%p574_p9), 64  }
  0x20   : > { %s9332_s24 = sld [smem:[#allocation15_spill]] (!%p574_p9)  ;;  %s6412_s29 = sshll.u32 (!%p574_p9), %s6976_s2, 5 }
  0x21   : > { %s9333_s28 = sld [smem:[#allocation17_spill]] (!%p574_p9) }
  0x22   : > { %s9336_s7 = sld [smem:[#allocation22_spill]] (!%p574_p9) }
  0x23   : > { %v6218_v0 = vld [vmem:[%s9330_s21 + $0x10] sm:$0xff]  ;;  %v6217_v1 = vld [vmem:[%s9330_s21 + $0x8] sm:$0xff]  ;;  %v6843_v3 = vmov 0.0   ;;  %s639_s30 = scalar_select %p638_p10, %s7007_s25, 3  ;;  %v6216_v4 = vld [vmem:[%s9330_s21] sm:$0xff]  ;;  %vm685_vm0 = vcmask 392192  }
  0x24   : > { %732 = vst [vmem:[#allocation2 + $0x11] sm:$0x7f] %v6843_v3  ;;  %697 = vmatpush.bf16.msra.mxu1 %v6218_v0  ;;  %v6844_v8 = vmov 128.0   ;;  %s9339_s5 = sld [smem:[#allocation20_spill]] }
  0x25   : > { %v729_v2 = vld [vmem:[%s9331_s3] sm:$0x1]  ;;  %733 = vst [vmem:[#allocation2 + $0x29] sm:$0x7f] %v6843_v3  ;;  %s6213_s26 = sshll.u32 %s639_s30, 3  ;;  %6487 = vrcp.f32 %v6844_v8  ;;  %s9340_s6 = sld [smem:[#allocation21_spill]] }
  0x26   : > { %730 = vst [vmem:[#allocation2 + $0x10] sm:$0x1] %v729_v2  ;;  %s642_s19 = scalar_lea.vmem %s9332_s24, %s6213_s26  ;;  %s9334_s24 = sld [smem:[#allocation19_spill]] }
  0x27   : > { %731 = vst [vmem:[#allocation2 + $0x28] sm:$0x1] %v729_v2  ;;  %v6214_v5 = vld [vmem:[%s642_s19] sm:$0xff]  ;;  %v6215_v7 = vld [vmem:[%s642_s19 + $0x8] sm:$0xff]  ;;  %s5111_s19 = scalar_lea.hbm %s9300_s20, %s6412_s29 }
  0x28   : > { %698 = vmatpush.bf16.msra.mxu1 %v6217_v1  ;;  %v6472_v10 = vld [vmem:[%s9333_s28] ss:$0 sm:$0xff]  ;;  %v5327_v35 = vld [vmem:[%s9336_s7 + $0xa8] sm:$0xf]  ;;  %v6241_v36 = vld [vmem:[%s9336_s7 + $0xb0] sm:$0xf0] }
  0x29   : > { %v5328_v39 = vor.u32 %v6241_v36, %v5327_v35  ;;  %v5315_v58 = vld [vmem:[%s9336_s7 + $0x90] sm:$0xf]  ;;  %v6238_v59 = vld [vmem:[%s9336_s7 + $0x98] sm:$0xf0]  ;;  %v5303_v61 = vld [vmem:[%s9336_s7 + $0x78] sm:$0xf] }
  0x2a   : > { %v5316_v60 = vor.u32 %v6238_v59, %v5315_v58  ;;  %v6235_v62 = vld [vmem:[%s9336_s7 + $0x80] sm:$0xf0]  ;;  %v5291_v2 = vld [vmem:[%s9336_s7 + $0x60] sm:$0xf]  ;;  %v6232_v3 = vld [vmem:[%s9336_s7 + $0x68] sm:$0xf0] }
  0x2b   : > { %v6488_v9 = vpop.eup %6487  ;;  %6413 = vmatpush.bf16.msra.mxu2 %v5328_v39  ;;  %v5304_v0 = vor.u32 %v6235_v62, %v5303_v61  ;;  %v5335_v8 = vld [vmem:[%s9336_s7 + $0xb0] sm:$0xf]  ;;  %v5329_v35 = vld [vmem:[%s9336_s7 + $0xb4] sm:$0xf0]  ;;  %v5263_v58 = vld [vmem:[%s9336_s7 + $0x20] sm:$0xf] }
  0x2c   : > { %699 = vmatpush.bf16.msra.mxu1 %v6216_v4  ;;  %v758_v11 = vmul.f32 128.0, %v6488_v9  ;;  %s9335_s30 = smov %s9334_s24  ;;  %v719_v13 = vld [vmem:[%s9334_s24] sm:$0xff]  ;;  %vm762_vm1 = vweird.f32 %v6488_v9  ;;  %v5292_v4 = vor.u32 %v6232_v3, %v5291_v2  ;;  %v5287_v36 = vld [vmem:[%s9336_s7 + $0x50] sm:$0xf]  ;;  %v6224_v61 = vld [vmem:[%s9336_s7 + $0x28] sm:$0xf0] }
  0x2d   : > { %v736_v6 = vld [vmem:[#allocation2 + $0x10] sm:$0xff]  ;;  %v720_v19 = vld [vmem:[%s9335_s30 + $0x8] sm:$0xff]  ;;  %s9181_s24 = sand.u32 1, %s6833_s22   ;;  %s5114_s21 = sshll.u32 %s5111_s19, 4  ;;  %s5115_s21 = int_to_ptr.hbm [resolvable:$true] %s5114_s21 }
  0x2e   : > { %749 = vadd.xlane.f32.xlu0 %v736_v6  ;;  %v759_v15 = vsub.f32 1.0, %v758_v11  ;;  %v739_v34 = vld [vmem:[#allocation2 + $0x28] sm:$0xff]  ;;  %v5293_v2 = vld [vmem:[%s9336_s7 + $0x6c] sm:$0xf0]  ;;  %s5215_s26 = sshll.u32 %s9181_s24, 5  ;;  %s5214_s3 = sshll.u32 %s9181_s24, 1 }
  0x2f   : > { %5239 = vmatmul.msk.bf16.vlgmr.msra.gmra.mxu1 %vm685_vm0, %v6214_v5  ;;  %6414 = vmatpush.bf16.msra.mxu2 %v5316_v60  ;;  %v5251_v3 = vld [vmem:[%s9336_s7 + $0x8] sm:$0xf]  ;;  %s9196_s27 = scalar_lea.vmem [#allocation5], %s5215_s26  ;;  %s9210_s28 = scalar_lea.vmem [#allocation3], %s5214_s3 }
  0x30   : > { %v760_v17 = vmul.f32 %v6488_v9, %v759_v15  ;;  %1061 = vmatpush.bf16.msrb.mxu1 %v5328_v39  ;;  %v6230_v39 = vld [vmem:[%s9336_s7 + $0x58] sm:$0xf0]  ;;  %s5112_s2 = sshll.u32 %s9196_s27, 4  ;;  %s9342_s3 = sld [smem:[#allocation23_spill]]  ;;  %s5113_s2 = int_to_ptr.vmem [resolvable:$true] %s5112_s2 }
  0x31   : > { %s5083_s1 = scalar_lea.sflag [#allocation6], %s9181_s24 }
  0x32   : > { %v761_v21 = vadd.f32 %v6488_v9, %v760_v17 }
  0x33   : > { %6415 = vmatpush.bf16.msra.mxu2 %v5304_v0 }
  0x34   : > { %v7032_v23 = vsel %vm762_vm1, %v6488_v9, %v761_v21  ;;  %1062 = vmatpush.bf16.msrb.mxu1 %v5316_v60 }
  0x36   : > { %s5093_s29 = scalar_lea.hbm %s9342_s3, %s7007_s25  ;;  %s6767_s25 = scalar_lea.hbm %s9300_s20, 64 }
  0x37   : > { %6416 = vmatpush.bf16.msra.mxu2 %v5292_v4 }
  0x38   : > { %1063 = vmatpush.bf16.msrb.mxu1 %v5304_v0  ;;  %v5264_v0 = vor.u32 %v6224_v61, %v5263_v58 }
  0x3c   : > { %1064 = vmatpush.bf16.msrb.mxu1 %v5292_v4 }
  0x3f   : > { %5240 = vmatmul.msk.bf16.gmra.mxu1 %vm685_vm0, %v6215_v7  ;;  %v6229_v7 = vld [vmem:[%s9336_s7 + $0x50] sm:$0xf0] }
  0xa1   : > { %v750_v24 = vpop.xlane.xlu0 %749 }
  0xa2   : > { %v766_v27 = vmul.f32 %v7032_v23, %v750_v24 }
  0xa4   : > { %v7035_v29 = vsub.f32 %v736_v6, %v766_v27  ;;  %v5279_v6 = vld [vmem:[%s9336_s7 + $0x48] sm:$0xf]  ;;  %v6220_v27 = vld [vmem:[%s9336_s7 + $0x8] sm:$0xf0] }
  0xa5   : > { %v5280_v9 = vor.u32 %v6229_v7, %v5279_v6 }
  0xa6   : > { %v778_v32 = vmul.f32 %v7035_v29, %v7035_v29 }
  0xa7   : > { %6417 = vmatpush.bf16.msra.mxu2 %v5280_v9  ;;  %1065 = vmatpush.bf16.msrb.mxu1 %v5280_v9 }
  0xac   : > { %v701_v12 = vpop.f32.mrf.mxu1 }
  0xad   : > { %v715_v14 = vadd.f32 %v6472_v10, %v701_v12  ;;  %v5267_v12 = vld [vmem:[%s9336_s7 + $0x30] sm:$0xf] }
  0xaf   : > { %v721_v16 = vadd.f32 %v719_v13, %v715_v14  ;;  %v5323_v14 = vld [vmem:[%s9336_s7 + $0x98] sm:$0xf] }
  0xb1   : > { %725 = vst [vmem:[#allocation2] sm:$0xff] %v721_v16  ;;  %745 = vadd.xlane.f32.xlu2 %v721_v16 }
  0xb4   : > { %v703_v18 = vpop.f32.mrf.mxu1 }
  0xb5   : > { %v716_v20 = vadd.f32 %v6472_v10, %v703_v18  ;;  %v5255_v18 = vld [vmem:[%s9336_s7 + $0x18] sm:$0xf] }
  0xb7   : > { %v722_v22 = vadd.f32 %v720_v19, %v716_v20  ;;  %v5311_v20 = vld [vmem:[%s9336_s7 + $0x80] sm:$0xf] }
  0xb9   : > { %726 = vst [vmem:[#allocation2 + $0x8] sm:$0xff] %v722_v22  ;;  %747 = vadd.xlane.f32.xlu2 %v722_v22 }
  0xbc   : > { %v706_v25 = vpop.f32.mrf.mxu1 }
  0xbd   : > { %v717_v26 = vadd.f32 %v6472_v10, %v706_v25 }
  0xbf   : > { %v723_v28 = vadd.f32 %v719_v13, %v717_v26  ;;  %v6226_v13 = vld [vmem:[%s9336_s7 + $0x38] sm:$0xf0]  ;;  %v5243_v26 = vld [vmem:[%s9336_s7] sm:$0xf] }
  0xc0   : > { %v5268_v15 = vor.u32 %v6226_v13, %v5267_v12 }
  0xc1   : > { %727 = vst [vmem:[#allocation2 + $0x18] sm:$0xff] %v723_v28  ;;  %751 = vadd.xlane.f32.xlu0 %v723_v28 }
  0xc2   : > { %6418 = vmatpush.bf16.msra.mxu2 %v5268_v15  ;;  %1066 = vmatpush.bf16.msrb.mxu1 %v5268_v15 }
  0xc4   : > { %v708_v30 = vpop.f32.mrf.mxu1 }
  0xc5   : > { %v718_v31 = vadd.f32 %v6472_v10, %v708_v30  ;;  %v6242_v10 = vld [vmem:[%s9336_s7 + $0xb8] sm:$0xf0] }
  0xc6   : > { %v5336_v11 = vor.u32 %v6242_v10, %v5335_v8  ;;  %v6221_v8 = vld [vmem:[%s9336_s7 + $0x10] sm:$0xf0] }
  0xc7   : > { %v724_v33 = vadd.f32 %v720_v19, %v718_v31  ;;  %v6223_v19 = vld [vmem:[%s9336_s7 + $0x20] sm:$0xf0]  ;;  %v5244_v31 = vor.u32 %v6220_v27, %v5243_v26  ;;  %v5252_v9 = vor.u32 %v6221_v8, %v5251_v3  ;;  %v5269_v26 = vld [vmem:[%s9336_s7 + $0x3c] sm:$0xf0] }
  0xc8   : > { %1109 = vmatpush.bf16.msra.mxu3 %v5336_v11  ;;  %v5256_v21 = vor.u32 %v6223_v19, %v5255_v18 }
  0xc9   : > { %728 = vst [vmem:[#allocation2 + $0x20] sm:$0xff] %v724_v33  ;;  %786 = vadd.xlane.f32.xlu0 %v778_v32  ;;  %753 = vadd.xlane.f32.xlu1 %v724_v33  ;;  %v6233_v32 = vld [vmem:[%s9336_s7 + $0x70] sm:$0xf0] }
  0xca   : > { %6419 = vmatpush.bf16.msra.mxu2 %v5256_v21  ;;  %1067 = vmatpush.bf16.msrb.mxu1 %v5256_v21 }
  0xce   : > { %6420 = vmatpush.bf16.msra.mxu2 %v5244_v31  ;;  %1068 = vmatpush.bf16.msrb.mxu1 %v5244_v31 }
  0xd1   : > { %755 = vadd.xlane.f32.xlu1 %v739_v34 }
 0x124   : > { %v746_v37 = vpop.xlane.xlu2 %745 }
 0x125   : > { %v764_v42 = vmul.f32 %v7032_v23, %v746_v37 }
 0x127   : > { %v7051_v45 = vsub.f32 %v721_v16, %v764_v42  ;;  %v6239_v16 = vld [vmem:[%s9336_s7 + $0xa0] sm:$0xf0]  ;;  %v5288_v42 = vor.u32 %v6230_v39, %v5287_v36 }
 0x128   : > { %v5324_v17 = vor.u32 %v6239_v16, %v5323_v14  ;;  %v6228_v16 = vld [vmem:[%s9336_s7 + $0x4c] sm:$0xf] }
 0x129   : > { %v776_v50 = vmul.f32 %v7051_v45, %v7051_v45 }
 0x12a   : > { %1110 = vmatpush.bf16.msra.mxu3 %v5324_v17  ;;  %v5281_v17 = vld [vmem:[%s9336_s7 + $0x54] sm:$0xf0] }
 0x12b   : > { %v5284_v18 = vor.u32 %v6228_v16, %v5281_v17 }
 0x12c   : > { %v748_v47 = vpop.xlane.xlu2 %747 }
 0x12d   : > { %v765_v49 = vmul.f32 %v7032_v23, %v748_v47  ;;  %v5275_v47 = vld [vmem:[%s9336_s7 + $0x38] sm:$0xf] }
 0x12f   : > { %v7061_v53 = vsub.f32 %v722_v22, %v765_v49  ;;  %v6236_v22 = vld [vmem:[%s9336_s7 + $0x88] sm:$0xf0] }
 0x130   : > { %v5312_v25 = vor.u32 %v6236_v22, %v5311_v20 }
 0x131   : > { %v777_v56 = vmul.f32 %v7061_v53, %v7061_v53 }
 0x132   : > { %1111 = vmatpush.bf16.msra.mxu3 %v5312_v25  ;;  %v6225_v25 = vld [vmem:[%s9336_s7 + $0x34] sm:$0xf] }
 0x134   : > { %v752_v38 = vpop.xlane.xlu0 %751 }
 0x135   : > { %v767_v40 = vmul.f32 %v7032_v23, %v752_v38 }
 0x137   : > { %v7046_v41 = vsub.f32 %v723_v28, %v767_v40  ;;  %v5299_v28 = vld [vmem:[%s9336_s7 + $0x68] sm:$0xf] }
 0x139   : > { %v779_v43 = vmul.f32 %v7046_v41, %v7046_v41 }
 0x13b   : > { %788 = vadd.xlane.f32.xlu1 %v779_v43 }
 0x13c   : > { %v754_v44 = vpop.xlane.xlu1 %753  ;;  %v787_v63 = vpop.xlane.xlu0 %786 }
 0x13d   : > { %v768_v46 = vmul.f32 %v7032_v23, %v754_v44  ;;  %v796_v1 = vmul.f32 %v787_v63, %v7032_v23  ;;  %v6237_v44 = vld [vmem:[%s9336_s7 + $0x94] sm:$0xf] }
 0x13f   : > { %v7054_v48 = vsub.f32 %v724_v33, %v768_v46  ;;  %v7089_v5 = vadd.f32 1e-06, %v796_v1  ;;  %v5300_v33 = vor.u32 %v6233_v32, %v5299_v28  ;;  %v5317_v46 = vld [vmem:[%s9336_s7 + $0x9c] sm:$0xf0]  ;;  %v6231_v1 = vld [vmem:[%s9336_s7 + $0x64] sm:$0xf] }
 0x140   : > { %v5296_v7 = vor.u32 %v6231_v1, %v5293_v2  ;;  %v5257_v32 = vld [vmem:[%s9336_s7 + $0x24] sm:$0xf0] }
 0x141   : > { %v780_v51 = vmul.f32 %v7054_v48, %v7054_v48  ;;  %6489 = vrsqrt.f32 %v7089_v5  ;;  %1112 = vmatpush.bf16.msra.mxu3 %v5300_v33  ;;  %vm832_vm2 = vweird.f32 %v7089_v5 }
 0x143   : > { %782 = vadd.xlane.f32.xlu1 %v776_v50  ;;  %790 = vadd.xlane.f32.xlu2 %v780_v51  ;;  %v5320_v51 = vor.u32 %v6237_v44, %v5317_v46  ;;  %v6219_v46 = vld [vmem:[%s9336_s7 + $0x4] sm:$0xf] }
 0x144   : > { %v756_v52 = vpop.xlane.xlu1 %755 }
 0x145   : > { %v769_v54 = vmul.f32 %v7032_v23, %v756_v52  ;;  %1113 = vmatpush.bf16.msra.mxu3 %v5288_v42  ;;  %v6227_v52 = vld [vmem:[%s9336_s7 + $0x40] sm:$0xf0] }
 0x147   : > { %v7064_v55 = vsub.f32 %v739_v34, %v769_v54  ;;  %v7128_v24 = vpop.eup %6489  ;;  %v6240_v34 = vld [vmem:[%s9336_s7 + $0xac] sm:$0xf]  ;;  %v5276_v54 = vor.u32 %v6227_v52, %v5275_v47  ;;  %v5245_v47 = vld [vmem:[%s9336_s7 + $0xc] sm:$0xf0]  ;;  %v6474_v52 = vld [vmem:[%s9340_s6] ss:$0 sm:$0xff] }
 0x148   : > { %v827_v30 = vmul.f32 %v7128_v24, %v7089_v5  ;;  %v5332_v38 = vor.u32 %v6240_v34, %v5329_v35  ;;  %vm833_vm3 = vweird.f32 %v7128_v24  ;;  %v5248_v58 = vor.u32 %v6219_v46, %v5245_v47 }
 0x149   : > { %v781_v57 = vmul.f32 %v7064_v55, %v7064_v55  ;;  %1114 = vmatpush.bf16.msra.mxu3 %v5276_v54  ;;  %vm7207_vm4 = vmor %vm832_vm2, %vm833_vm3 }
 0x14a   : > { %v828_v37 = vmul.f32 %v7128_v24, %v827_v30  ;;  %1085 = vmatpush.bf16.msrb.mxu2 %v5332_v38  ;;  %v5272_v30 = vor.u32 %v6225_v25, %v5269_v26 }
 0x14b   : > { %784 = vadd.xlane.f32.xlu2 %v777_v56  ;;  %792 = vadd.xlane.f32.xlu0 %v781_v57  ;;  %v6234_v56 = vld [vmem:[%s9336_s7 + $0x7c] sm:$0xf]  ;;  %v5305_v57 = vld [vmem:[%s9336_s7 + $0x84] sm:$0xf0] }
 0x14c   : > { %v829_v49 = vmul.f32 0.5, %v828_v37  ;;  %v5308_v60 = vor.u32 %v6234_v56, %v5305_v57  ;;  %v7242_v37 = vld [vmem:[%s9339_s5] ss:$0 sm:$0xff] }
 0x14d   : > { %1115 = vmatpush.bf16.msra.mxu3 %v5264_v0 }
 0x14e   : > { %1086 = vmatpush.bf16.msrb.mxu2 %v5320_v51  ;;  %v830_v59 = vsub.f32 1.5, %v829_v49 }
 0x150   : > { %v831_v13 = vmul.f32 %v7128_v24, %v830_v59 }
 0x151   : > { %1116 = vmatpush.bf16.msra.mxu3 %v5252_v9 }
 0x152   : > { %1087 = vmatpush.bf16.msrb.mxu2 %v5308_v60  ;;  %v835_v19 = vsel %vm7207_vm4, %v7128_v24, %v831_v13  ;;  %v6222_v24 = vld [vmem:[%s9336_s7 + $0x1c] sm:$0xf]  ;;  %vm1370_vm4 = vcmask 1043456  }
 0x153   : > { %v868_v34 = vmul.f32 %v835_v19, %v7035_v29  ;;  %v5260_v29 = vor.u32 %v6222_v24, %v5257_v32 }
 0x155   : > { %v877_v51 = vmul.f32 %v7242_v37, %v868_v34 }
 0x156   : > { %1088 = vmatpush.bf16.msrb.mxu2 %v5296_v7 }
 0x15a   : > { %1089 = vmatpush.bf16.msrb.mxu2 %v5284_v18 }
 0x15e   : > { %1090 = vmatpush.bf16.msrb.mxu2 %v5272_v30 }
 0x162   : > { %1091 = vmatpush.bf16.msrb.mxu2 %v5260_v29 }
 0x166   : > { %1092 = vmatpush.bf16.msrb.mxu2 %v5248_v58 }
 0x1ae   : > { %v789_v40 = vpop.xlane.xlu1 %788 }
 0x1af   : > { %v797_v43 = vmul.f32 %v789_v40, %v7032_v23 }
 0x1b1   : > { %v7167_v50 = vadd.f32 1e-06, %v797_v43 }
 0x1b3   : > { %6491 = vrsqrt.f32 %v7167_v50  ;;  %vm842_vm6 = vweird.f32 %v7167_v50 }
 0x1b6   : > { %v791_v62 = vpop.xlane.xlu2 %790  ;;  %v783_v63 = vpop.xlane.xlu1 %782 }
 0x1b7   : > { %v798_v4 = vmul.f32 %v791_v62, %v7032_v23  ;;  %v794_v6 = vmul.f32 %v783_v63, %v7032_v23  ;;  %v886_v62 = vadd.f32 %v6474_v52, %v877_v51 }
 0x1b9   : > { %v6492_v10 = vpop.eup %6491  ;;  %v7201_v11 = vadd.f32 1e-06, %v798_v4  ;;  %v7203_v12 = vadd.f32 1e-06, %v794_v6 }
 0x1ba   : > { %v837_v14 = vmul.f32 %v6492_v10, %v7167_v50  ;;  %vm843_vm5 = vweird.f32 %v6492_v10 }
 0x1bb   : > { %6493 = vrsqrt.f32 %v7201_v11  ;;  %vm844_vm7 = vmor %vm842_vm6, %vm843_vm5  ;;  %vm812_vm10 = vweird.f32 %v7203_v12  ;;  %vm852_vm11 = vweird.f32 %v7201_v11  ;;  %vm1189_vm5 = vcmask 523264  }
 0x1bc   : > { %v838_v5 = vmul.f32 %v6492_v10, %v837_v14  ;;  %6495 = vrsqrt.f32 %v7203_v12 }
 0x1be   : > { %v839_v20 = vmul.f32 0.5, %v838_v5  ;;  %v785_v21 = vpop.xlane.xlu2 %784  ;;  %v793_v22 = vpop.xlane.xlu0 %792 }
 0x1bf   : > { %v795_v27 = vmul.f32 %v785_v21, %v7032_v23  ;;  %v799_v28 = vmul.f32 %v793_v22, %v7032_v23 }
 0x1c0   : > { %v840_v31 = vsub.f32 1.5, %v839_v20 }
 0x1c1   : > { %v6494_v33 = vpop.eup %6493  ;;  %v801_v35 = vadd.f32 1e-06, %v795_v27  ;;  %v7237_v36 = vadd.f32 1e-06, %v799_v28 }
 0x1c2   : > { %v6496_v38 = vpop.eup %6495  ;;  %v841_v39 = vmul.f32 %v6492_v10, %v840_v31  ;;  %v847_v40 = vmul.f32 %v6494_v33, %v7201_v11  ;;  %vm853_vm8 = vweird.f32 %v6494_v33 }
 0x1c3   : > { %v807_v42 = vmul.f32 %v6496_v38, %v7203_v12  ;;  %6497 = vrsqrt.f32 %v801_v35  ;;  %vm813_vm9 = vweird.f32 %v6496_v38  ;;  %vm854_vm13 = vmor %vm852_vm11, %vm853_vm8  ;;  %vm822_vm0 = vweird.f32 %v801_v35 }
 0x1c4   : > { %v845_v43 = vsel %vm844_vm7, %v6492_v10, %v841_v39  ;;  %v848_v44 = vmul.f32 %v6494_v33, %v847_v40  ;;  %6499 = vrsqrt.f32 %v7237_v36  ;;  %vm814_vm12 = vmor %vm812_vm10, %vm813_vm9  ;;  %vm862_vm2 = vweird.f32 %v7237_v36 }
 0x1c5   : > { %v869_v49 = vmul.f32 %v845_v43, %v7046_v41  ;;  %v808_v50 = vmul.f32 %v6496_v38, %v807_v42  ;;  %vm1274_vm7 = vcmask 195584  }
 0x1c6   : > { %v849_v54 = vmul.f32 0.5, %v848_v44 }
 0x1c7   : > { %v809_v56 = vmul.f32 0.5, %v808_v50  ;;  %v878_v57 = vmul.f32 %v7242_v37, %v869_v49 }
 0x1c8   : > { %v850_v59 = vsub.f32 1.5, %v849_v54 }
 0x1c9   : > { %v6498_v60 = vpop.eup %6497  ;;  %v810_v61 = vsub.f32 1.5, %v809_v56  ;;  %v887_v63 = vadd.f32 %v6474_v52, %v878_v57 }
 0x1ca   : > { %v6500_v0 = vpop.eup %6499  ;;  %v817_v41 = vmul.f32 %v6498_v60, %v801_v35  ;;  %v851_v1 = vmul.f32 %v6494_v33, %v850_v59  ;;  %vm823_vm14 = vweird.f32 %v6498_v60 }
 0x1cb   : > { %v811_v2 = vmul.f32 %v6496_v38, %v810_v61  ;;  %v857_v3 = vmul.f32 %v6500_v0, %v7237_v36  ;;  %v891_v4 = vpack.c.bf16 %v887_v63, %v886_v62  ;;  %vm863_vm15 = vweird.f32 %v6500_v0  ;;  %vm824_vm1 = vmor %vm822_vm0, %vm823_vm14 }
 0x1cc   : > { %v818_v6 = vmul.f32 %v6498_v60, %v817_v41  ;;  %v855_v10 = vsel %vm854_vm13, %v6494_v33, %v851_v1  ;;  %vm864_vm3 = vmor %vm862_vm2, %vm863_vm15 }
 0x1cd   : > { %v858_v7 = vmul.f32 %v6500_v0, %v857_v3  ;;  %1074 = vmatmul.bf16.vlgmr.msra.gmra.mxu2 %v891_v4  ;;  %v815_v8 = vsel %vm814_vm12, %v6496_v38, %v811_v2  ;;  %v870_v16 = vmul.f32 %v855_v10, %v7054_v48 }
 0x1ce   : > { %v819_v9 = vmul.f32 0.5, %v818_v6  ;;  %v866_v15 = vmul.f32 %v815_v8, %v7051_v45 }
 0x1cf   : > { %v859_v13 = vmul.f32 0.5, %v858_v7  ;;  %v879_v45 = vmul.f32 %v7242_v37, %v870_v16 }
 0x1d0   : > { %v820_v14 = vsub.f32 1.5, %v819_v9  ;;  %v875_v20 = vmul.f32 %v7242_v37, %v866_v15 }
 0x1d1   : > { %v860_v5 = vsub.f32 1.5, %v859_v13  ;;  %v888_v27 = vadd.f32 %v6474_v52, %v879_v45 }
 0x1d2   : > { %v821_v12 = vmul.f32 %v6498_v60, %v820_v14  ;;  %v884_v25 = vadd.f32 %v6474_v52, %v875_v20 }
 0x1d3   : > { %v861_v11 = vmul.f32 %v6500_v0, %v860_v5 }
 0x1d4   : > { %v825_v17 = vsel %vm824_vm1, %v6498_v60, %v821_v12 }
 0x1d5   : > { %v867_v18 = vmul.f32 %v825_v17, %v7061_v53  ;;  %v865_v19 = vsel %vm864_vm3, %v6500_v0, %v861_v11 }
 0x1d6   : > { %v871_v21 = vmul.f32 %v865_v19, %v7064_v55  ;;  %v925_v55 = vld [vmem:[%s9288_s8] sm:$0x7] }
 0x1d7   : > { %v876_v22 = vmul.f32 %v7242_v37, %v867_v18  ;;  %v7277_v33 = vperm.slane %v925_v55, 0  ;;  %v929_v50 = vperm.slane %v925_v55, 2  ;;  %v7287_v58 = vperm.slane %v925_v55, 1 }
 0x1d8   : > { %v880_v48 = vmul.f32 %v7242_v37, %v871_v21 }
 0x1d9   : > { %v885_v26 = vadd.f32 %v6474_v52, %v876_v22 }
 0x1da   : > { %v889_v28 = vadd.f32 %v6474_v52, %v880_v48 }
 0x1db   : > { %v890_v30 = vpack.c.bf16 %v885_v26, %v884_v25 }
 0x1dc   : > { %v892_v31 = vpack.c.bf16 %v889_v28, %v888_v27 }
 0x1dd   : > { %1069 = vmatmul.bf16.vlgmr.msrb.gmra.mxu1 %v890_v30  ;;  %1117 = vmatmul.bf16.vlgmr.msra.gmra.mxu3 %v890_v30 }
 0x1de   : > { %1079 = vmatmul.bf16.gmra.mxu2 %v892_v31 }
 0x1ed   : > { %1122 = vmatmul.bf16.gmra.mxu3 %v891_v4 }
 0x1ee   : > { %1093 = vmatmul.bf16.vlgmr.msrb.gmra.mxu2 %v890_v30 }
 0x1fd   : > { %1127 = vmatmul.bf16.gmra.mxu3 %v892_v31 }
 0x1fe   : > { %1098 = vmatmul.bf16.gmra.mxu2 %v891_v4 }
 0x20e   : > { %1103 = vmatmul.bf16.gmra.mxu2 %v892_v31 }
 0x250   : > { %v7272_v53 = vpop.f32.mrf.mxu2 }
 0x258   : > { %v1077_v24 = vpop.f32.mrf.mxu2 }
 0x259   : > { %v1078_v6 = vadd.f32 %v1077_v24, %v7277_v33 }
 0x25a   : > { %v1070_v32 = vpop.f32.mrf.mxu1 }
 0x25b   : > { %v1071_v34 = vadd.f32 %v1070_v32, %v7277_v33  ;;  %v1136_v15 = vmul.f32 0.125, %v1078_v6 }
 0x25d   : > { %v1133_v36 = vmul.f32 0.125, %v1071_v34  ;;  %v1142_v19 = vpack.c.bf16 %v1136_v15, %v1136_v15  ;;  %v740_v15 = vlaneseq }
 0x25f   : > { %v1139_v40 = vpack.c.bf16 %v1133_v36, %v1133_v36  ;;  %v1223_v22 = vunpack.c.l.b16 %v1142_v19 }
 0x260   : > { %v1118_v35 = vpop.f32.mrf.mxu3 }
 0x261   : > { %v1080_v37 = vpop.f32.mrf.mxu2  ;;  %v1176_v44 = vunpack.c.l.b16 %v1139_v40  ;;  %v1119_v57 = vadd.f32 %v1118_v35, %v929_v50 }
 0x262   : > { %v1072_v38 = vpop.f32.mrf.mxu1  ;;  %v1081_v41 = vadd.f32 %v1080_v37, %v7277_v33 }
 0x263   : > { %v1073_v39 = vadd.f32 %v1072_v38, %v7277_v33  ;;  %v1151_v62 = vpack.c.bf16 %v1119_v57, %v1119_v57 }
 0x264   : > { %v1137_v10 = vmul.f32 0.125, %v1081_v41 }
 0x265   : > { %v1134_v42 = vmul.f32 0.125, %v1073_v39  ;;  %v1358_v7 = vunpack.c.l.b16 %v1151_v62 }
 0x266   : > { %v1143_v12 = vpack.c.bf16 %v1137_v10, %v1137_v10 }
 0x267   : > { %v1140_v29 = vpack.c.bf16 %v1134_v42, %v1134_v42 }
 0x268   : > { %v1120_v43 = vpop.f32.mrf.mxu3  ;;  %v1224_v21 = vunpack.c.l.b16 %v1143_v12 }
 0x269   : > { %v1177_v46 = vunpack.c.l.b16 %v1140_v29  ;;  %v7281_v47 = vpop.f32.mrf.mxu2  ;;  %v1121_v51 = vadd.f32 %v1120_v43, %v929_v50 }
 0x26a   : > { %v1226_v28 = vpack.c.b16 %v1224_v21, %v1223_v22  ;;  %v1083_v39 = vadd.f32 %v7281_v47, %v7277_v33  ;;  %v1076_v47 = vadd.f32 %v7272_v53, %v7277_v33 }
 0x26b   : > { %v7283_v49 = vpack.c.b16 %v1177_v46, %v1176_v44  ;;  %v1152_v60 = vpack.c.bf16 %v1121_v51, %v1121_v51 }
 0x26c   : > { %v1138_v51 = vmul.f32 0.125, %v1083_v39 }
 0x26d   : > { %1439 = vrot.lane.b32.xlu2 %v7283_v49, %s9310_s23  ;;  %v1359_v1 = vunpack.c.l.b16 %v1152_v60 }
 0x26f   : > { %v7297_v14 = vpack.c.b16 %v1359_v1, %v1358_v7 }
 0x270   : > { %v1123_v52 = vpop.f32.mrf.mxu3 }
 0x271   : > { %v1094_v54 = vpop.f32.mrf.mxu2  ;;  %v1124_v56 = vadd.f32 %v1123_v52, %v929_v50 }
 0x272   : > { %v1095_v63 = vadd.f32 %v1094_v54, %v7287_v58 }
 0x273   : > { %v1153_v59 = vpack.c.bf16 %v1124_v56, %v1124_v56 }
 0x274   : > { %v1145_v8 = vpack.c.bf16 %v1095_v63, %v1095_v63  ;;  %v1135_v63 = vmul.f32 0.125, %v1076_v47 }
 0x275   : > { %v1360_v61 = vunpack.c.l.b16 %v1153_v59  ;;  %v1144_v59 = vpack.c.bf16 %v1138_v51, %v1138_v51 }
 0x276   : > { %v1184_v5 = vunpack.c.l.b16 %v1145_v8 }
 0x277   : > { %v7290_v0 = vpack.c.b16 %v1360_v61, %v1360_v61  ;;  %v1225_v41 = vunpack.c.l.b16 %v1144_v59 }
 0x278   : > { %v1125_v2 = vpop.f32.mrf.mxu3 }
 0x279   : > { %v1096_v3 = vpop.f32.mrf.mxu2  ;;  %v1372_v4 = vsel %vm1370_vm4, %v7290_v0, 0  ;;  %v1126_v55 = vadd.f32 %v1125_v2, %v929_v50 }
 0x27a   : > { %v1097_v9 = vadd.f32 %v1096_v3, %v7287_v58  ;;  %1380 = vmatpush.bf16.msra.mxu1 %v1372_v4  ;;  %v1141_v3 = vpack.c.bf16 %v1135_v63, %v1135_v63  ;;  %v1227_v4 = vpack.c.b16 %v1225_v41, %v1225_v41 }
 0x27b   : > { %v1154_v36 = vpack.c.bf16 %v1126_v55, %v1126_v55 }
 0x27c   : > { %v1146_v13 = vpack.c.bf16 %v1097_v9, %v1097_v9  ;;  %v1178_v33 = vunpack.c.l.b16 %v1141_v3 }
 0x27d   : > { %v1403_v43 = vunpack.c.l.b16 %v1154_v36 }
 0x27e   : > { %v1185_v16 = vunpack.c.l.b16 %v1146_v13  ;;  %1381 = vmatpush.bf16.msra.mxu1 %v7297_v14 }
 0x280   : > { %v1128_v11 = vpop.f32.mrf.mxu3  ;;  %v1187_v17 = vpack.c.b16 %v1185_v16, %v1184_v5  ;;  %v7334_v5 = vand.u32 127, %v740_v15 }
 0x281   : > { %v1099_v18 = vpop.f32.mrf.mxu2  ;;  %v1129_v26 = vadd.f32 %v1128_v11, %v929_v50 }
 0x282   : > { %v1100_v20 = vadd.f32 %v1099_v18, %v7287_v58  ;;  %1443 = vrot.lane.b32.xlu1 %v1187_v17, %s9310_s23  ;;  %vm742_vm6 = vcmp.lt.s32.totalorder %v7334_v5, 17 }
 0x283   : > { %v1155_v34 = vpack.c.bf16 %v1129_v26, %v1129_v26 }
 0x284   : > { %v1147_v45 = vpack.c.bf16 %v1100_v20, %v1100_v20 }
 0x285   : > { %v1404_v40 = vunpack.c.l.b16 %v1155_v34 }
 0x286   : > { %v1186_v48 = vunpack.c.l.b16 %v1147_v45 }
 0x287   : > { %v7314_v52 = vpack.c.b16 %v1404_v40, %v1403_v43 }
 0x288   : > { %v1188_v25 = vpack.c.b16 %v1186_v48, %v1186_v48  ;;  %v1130_v27 = vpop.f32.mrf.mxu3 }
 0x289   : > { %v1101_v30 = vpop.f32.mrf.mxu2  ;;  %v1131_v31 = vadd.f32 %v1130_v27, %v929_v50  ;;  %v1197_v50 = vsel %vm1189_vm5, %v1187_v17, 0 }
 0x28a   : > { %1445 = vrot.lane.b32.xlu0 %v1188_v25, %s9310_s23  ;;  %1477 = vrot.lane.b32.xlu1 %v1226_v28, %s9310_s23  ;;  %v1200_v24 = vsel %vm1189_vm5, %v1188_v25, 0  ;;  %v1102_v37 = vadd.f32 %v1101_v30, %v7287_v58 }
 0x28b   : > { %v1156_v32 = vpack.c.bf16 %v1131_v31, %v1131_v31  ;;  %1208 = vmatpush.bf16.xpose.msra.mxu0 %v1200_v24 }
 0x28c   : > { %v1148_v44 = vpack.c.bf16 %v1102_v37, %v1102_v37 }
 0x28d   : > { %v1405_v35 = vunpack.c.l.b16 %v1156_v32 }
 0x28e   : > { %v1231_v56 = vunpack.c.l.b16 %v1148_v44 }
 0x28f   : > { %v7306_v38 = vpack.c.b16 %v1405_v35, %v1405_v35 }
 0x291   : > { %v1104_v42 = vpop.f32.mrf.mxu2  ;;  %v1416_v29 = vsel %vm1370_vm4, %v7306_v38, 0 }
 0x292   : > { %v1105_v46 = vadd.f32 %v1104_v42, %v7287_v58  ;;  %1424 = vmatpush.bf16.msra.mxu2 %v1416_v29 }
 0x293   : > { %1209 = vmatpush.bf16.xpose.msra.mxu0 %v1197_v50 }
 0x294   : > { %v1149_v54 = vpack.c.bf16 %v1105_v46, %v1105_v46 }
 0x296   : > { %v1232_v57 = vunpack.c.l.b16 %v1149_v54  ;;  %1425 = vmatpush.bf16.msra.mxu2 %v7314_v52 }
 0x298   : > { %v1234_v60 = vpack.c.b16 %v1232_v57, %v1231_v56 }
 0x299   : > { %v1106_v61 = vpop.f32.mrf.mxu2 }
 0x29a   : > { %v1107_v62 = vadd.f32 %v1106_v61, %v7287_v58  ;;  %1481 = vrot.lane.b32.xlu2 %v1234_v60, %s9310_s23  ;;  %5337 = vmatmul.msk.bf16.vlgmr.msra.gmra.mxu0 %vm1189_vm5, %v7283_v49  ;;  %v1180_v58 = vpack.c.b16 %v1178_v33, %v1178_v33  ;;  %v1243_v49 = vsel %vm1189_vm5, %v1234_v60, 0 }
 0x29c   : > { %v1150_v1 = vpack.c.bf16 %v1107_v62, %v1107_v62 }
 0x29e   : > { %v1233_v2 = vunpack.c.l.b16 %v1150_v1 }
 0x2a0   : > { %v1235_v6 = vpack.c.b16 %v1233_v2, %v1233_v2 }
 0x2a2   : > { %1483 = vrot.lane.b32.xlu0 %v1235_v6, %s9310_s23  ;;  %1479 = vrot.lane.b32.xlu2 %v1227_v4, %s9310_s23  ;;  %v1246_v53 = vsel %vm1189_vm5, %v1235_v6, 0 }
 0x2a3   : > { %1254 = vmatpush.bf16.xpose.msrb.mxu0 %v1246_v53 }
 0x2aa   : > { %1441 = vrot.lane.b32.xlu0 %v1180_v58, %s9310_s23  ;;  %5338 = vmatmul.msk.bf16.gmra.mxu0 %vm1189_vm5, %v1180_v58 }
 0x2ab   : > { %1255 = vmatpush.bf16.xpose.msrb.mxu0 %v1243_v49 }
 0x2ba   : > { %5339 = vmatmul.msk.bf16.vlgmr.msrb.gmra.mxu0 %vm1189_vm5, %v1226_v28 }
 0x2c7   : > { %v1440_v13 = vpop.permute.xlu2 %1439 }
 0x2ca   : > { %5340 = vmatmul.msk.bf16.gmra.mxu0 %vm1189_vm5, %v1227_v4 }
 0x2f4   : > { %v1444_v9 = vpop.permute.xlu1 %1443  ;;  %v1482_v19 = vpop.permute.xlu2 %1481 }
 0x2f5   : > { %v1454_v10 = vsel %vm1189_vm5, %v1444_v9, 0  ;;  %v1492_v21 = vsel %vm1189_vm5, %v1482_v19, 0 }
 0x2fc   : > { %v1446_v7 = vpop.permute.xlu0 %1445  ;;  %v1478_v25 = vpop.permute.xlu1 %1477 }
 0x2fd   : > { %v1457_v8 = vsel %vm1189_vm5, %v1446_v7, 0  ;;  %v1480_v31 = vpop.permute.xlu2 %1479 }
 0x2fe   : > { %1465 = vmatpush.bf16.xpose.msrb.mxu3 %v1457_v8 }
 0x306   : > { %1466 = vmatpush.bf16.xpose.msrb.mxu3 %v1454_v10 }
 0x30d   : > { %5345 = vmatmul.msk.bf16.vlgmr.msrb.gmra.mxu3 %vm1189_vm5, %v1440_v13 }
 0x314   : > { %v1484_v16 = vpop.permute.xlu0 %1483 }
 0x315   : > { %v1495_v12 = vsel %vm1189_vm5, %v1484_v16, 0 }
 0x316   : > { %1503 = vmatpush.bf16.xpose.msra.mxu0 %v1495_v12 }
 0x317   : > { %v1211_v11 = vpop.f32.mrf.mxu0 }
 0x318   : > { %v1268_v17 = vsel %vm742_vm6, %v1211_v11, -1e+30 }
 0x319   : > { %v1275_v18 = vsel %vm1274_vm7, %v1268_v17, -inf }
 0x31a   : > { %1276 = vmax.xlane.f32.xlu1 %v1275_v18 }
 0x31c   : > { %v1442_v20 = vpop.permute.xlu0 %1441 }
 0x31d   : > { %5346 = vmatmul.msk.bf16.gmra.mxu3 %vm1189_vm5, %v1442_v20 }
 0x31e   : > { %1504 = vmatpush.bf16.xpose.msra.mxu0 %v1492_v21 }
 0x31f   : > { %v1213_v45 = vpop.f32.mrf.mxu0 }
 0x320   : > { %v1269_v22 = vsel %vm742_vm6, %v1213_v45, -1e+30 }
 0x321   : > { %v1278_v48 = vsel %vm1274_vm7, %v1269_v22, -inf }
 0x322   : > { %1279 = vmax.xlane.f32.xlu0 %v1278_v48 }
 0x325   : > { %5347 = vmatmul.msk.bf16.vlgmr.msra.gmra.mxu0 %vm1189_vm5, %v1478_v25 }
 0x327   : > { %v1216_v26 = vpop.f32.mrf.mxu0 }
 0x328   : > { %v1270_v27 = vsel %vm742_vm6, %v1216_v26, -1e+30 }
 0x329   : > { %v1281_v28 = vsel %vm1274_vm7, %v1270_v27, -inf }
 0x32a   : > { %1282 = vmax.xlane.f32.xlu2 %v1281_v28 }
 0x32f   : > { %v1218_v30 = vpop.f32.mrf.mxu0 }
 0x335   : > { %5348 = vmatmul.msk.bf16.gmra.mxu0 %vm1189_vm5, %v1480_v31 }
 0x337   : > { %v1257_v55 = vpop.f32.mrf.mxu0 }
 0x338   : > { %v1271_v24 = vsel %vm742_vm6, %v1257_v55, -1e+30 }
 0x339   : > { %v1284_v32 = vsel %vm1274_vm7, %v1271_v24, -inf }
 0x33a   : > { %1285 = vmax.xlane.f32.xlu1 %v1284_v32 }
 0x33f   : > { %v1259_v34 = vpop.f32.mrf.mxu0 }
 0x340   : > { %v1272_v35 = vsel %vm742_vm6, %v1259_v34, -1e+30 }
 0x341   : > { %v1287_v36 = vsel %vm1274_vm7, %v1272_v35, -inf }
 0x342   : > { %1288 = vmax.xlane.f32.xlu0 %v1287_v36 }
 0x347   : > { %v1262_v37 = vpop.f32.mrf.mxu0 }
 0x348   : > { %v7359_v39 = vsel %vm742_vm6, %v1262_v37, -1e+30 }
 0x349   : > { %v1290_v40 = vsel %vm1274_vm7, %v7359_v39, -inf }
 0x34a   : > { %1291 = vmax.xlane.f32.xlu0 %v1290_v40 }
 0x34f   : > { %v1264_v42 = vpop.f32.mrf.mxu0 }
 0x38d   : > { %v1277_v29 = vpop.xlane.xlu1 %1276 }
 0x38e   : > { %v1293_v43 = vsub.f32 %v1268_v17, %v1277_v29 }
 0x390   : > { %v1299_v44 = vmul.f32 1.442695, %v1293_v43  ;;  %v1468_v46 = vpop.f32.mrf.mxu3 }
 0x391   : > { %v7365_v50 = vsel %vm742_vm6, %v1468_v46, -1e+30 }
 0x392   : > { %6501 = vpow2.f32 %v1299_v44  ;;  %v1521_v51 = vsel %vm1274_vm7, %v7365_v50, -inf }
 0x393   : > { %1522 = vmax.xlane.f32.xlu2 %v1521_v51 }
 0x395   : > { %v1280_v54 = vpop.xlane.xlu0 %1279 }
 0x396   : > { %v1294_v56 = vsub.f32 %v1269_v22, %v1280_v54 }
 0x398   : > { %v7369_v57 = vpop.eup %6501  ;;  %v1301_v47 = vmul.f32 1.442695, %v1294_v56  ;;  %v1470_v59 = vpop.f32.mrf.mxu3 }
 0x399   : > { %v1311_v60 = vsel %vm1274_vm7, %v7369_v57, 0.0  ;;  %v7375_v61 = vsel %vm742_vm6, %v1470_v59, -1e+30 }
 0x39a   : > { %6503 = vpow2.f32 %v1301_v47  ;;  %1312 = vadd.xlane.f32.xlu0 %v1311_v60  ;;  %v1524_v62 = vsel %vm1274_vm7, %v7375_v61, -inf }
 0x39b   : > { %1525 = vmax.xlane.f32.xlu1 %v1524_v62 }
 0x39d   : > { %v1283_v63 = vpop.xlane.xlu2 %1282 }
 0x39e   : > { %v1295_v1 = vsub.f32 %v1270_v27, %v1283_v63 }
 0x3a0   : > { %v7379_v41 = vpop.eup %6503  ;;  %v1473_v2 = vpop.f32.mrf.mxu3  ;;  %v1303_v33 = vmul.f32 1.442695, %v1295_v1 }
 0x3a1   : > { %v7383_v3 = vsel %vm742_vm6, %v1473_v2, -1e+30  ;;  %v1314_v4 = vsel %vm1274_vm7, %v7379_v41, 0.0 }
 0x3a2   : > { %1315 = vadd.xlane.f32.xlu2 %v1314_v4  ;;  %v1506_v6 = vpop.f32.mrf.mxu0  ;;  %v1527_v53 = vsel %vm1274_vm7, %v7383_v3, -inf  ;;  %6505 = vpow2.f32 %v1303_v33 }
 0x3a3   : > { %1528 = vmax.xlane.f32.xlu1 %v1527_v53  ;;  %v7391_v58 = vsel %vm742_vm6, %v1506_v6, -1e+30 }
 0x3a4   : > { %v1530_v7 = vsel %vm1274_vm7, %v7391_v58, -inf }
 0x3a8   : > { %v1475_v49 = vpop.f32.mrf.mxu3  ;;  %v7401_v15 = vpop.eup %6505 }
 0x3a9   : > { %v1317_v11 = vsel %vm1274_vm7, %v7401_v15, 0.0 }
 0x3aa   : > { %1531 = vmax.xlane.f32.xlu2 %v1530_v7  ;;  %v1508_v8 = vpop.f32.mrf.mxu0 }
 0x3ab   : > { %v7397_v9 = vsel %vm742_vm6, %v1508_v8, -1e+30 }
 0x3ac   : > { %v1533_v10 = vsel %vm1274_vm7, %v7397_v9, -inf }
 0x3ad   : > { %v1286_v13 = vpop.xlane.xlu1 %1285  ;;  %1534 = vmax.xlane.f32.xlu1 %v1533_v10 }
 0x3ae   : > { %v1296_v16 = vsub.f32 %v1271_v24, %v1286_v13 }
 0x3b0   : > { %v1305_v12 = vmul.f32 1.442695, %v1296_v16 }
 0x3b2   : > { %6507 = vpow2.f32 %v1305_v12  ;;  %1318 = vadd.xlane.f32.xlu2 %v1317_v11  ;;  %v1511_v17 = vpop.f32.mrf.mxu0 }
 0x3b3   : > { %v7407_v18 = vsel %vm742_vm6, %v1511_v17, -1e+30 }
 0x3b4   : > { %v1536_v19 = vsel %vm1274_vm7, %v7407_v18, -inf }
 0x3b5   : > { %v1289_v20 = vpop.xlane.xlu0 %1288  ;;  %1537 = vmax.xlane.f32.xlu0 %v1536_v19 }
 0x3b6   : > { %v1297_v21 = vsub.f32 %v1272_v35, %v1289_v20 }
 0x3b8   : > { %v7411_v45 = vpop.eup %6507  ;;  %v1307_v22 = vmul.f32 1.442695, %v1297_v21 }
 0x3b9   : > { %v1320_v48 = vsel %vm1274_vm7, %v7411_v45, 0.0 }
 0x3ba   : > { %6509 = vpow2.f32 %v1307_v22  ;;  %1321 = vadd.xlane.f32.xlu1 %v1320_v48  ;;  %v1513_v25 = vpop.f32.mrf.mxu0 }
 0x3bd   : > { %v1292_v26 = vpop.xlane.xlu0 %1291 }
 0x3be   : > { %v1298_v27 = vsub.f32 %v7359_v39, %v1292_v26 }
 0x3c0   : > { %v7416_v28 = vpop.eup %6509  ;;  %v1309_v30 = vmul.f32 1.442695, %v1298_v27 }
 0x3c1   : > { %v1323_v31 = vsel %vm1274_vm7, %v7416_v28, 0.0 }
 0x3c2   : > { %6511 = vpow2.f32 %v1309_v30  ;;  %1324 = vadd.xlane.f32.xlu0 %v1323_v31 }
 0x3c8   : > { %v7420_v55 = vpop.eup %6511 }
 0x3c9   : > { %v1326_v24 = vsel %vm1274_vm7, %v7420_v55, 0.0 }
 0x3ca   : > { %1603 = vrot.lane.b32.xlu2 %v7290_v0, %s9310_s23  ;;  %1327 = vadd.xlane.f32.xlu0 %v1326_v24 }
 0x3d3   : > { %1601 = vrot.lane.b32.xlu1 %v7297_v14, %s9310_s23 }
 0x406   : > { %v1523_v32 = vpop.xlane.xlu2 %1522 }
 0x407   : > { %v1539_v34 = vsub.f32 %v7365_v50, %v1523_v32 }
 0x409   : > { %v1545_v35 = vmul.f32 1.442695, %v1539_v34 }
 0x40b   : > { %6513 = vpow2.f32 %v1545_v35 }
 0x40d   : > { %v1313_v36 = vpop.xlane.xlu0 %1312 }
 0x40e   : > { %v1526_v37 = vpop.xlane.xlu1 %1525  ;;  %6515 = vrcp.f32 %v1313_v36 }
 0x40f   : > { %v1540_v39 = vsub.f32 %v7375_v61, %v1526_v37 }
 0x411   : > { %v7430_v40 = vpop.eup %6513  ;;  %v1547_v42 = vmul.f32 1.442695, %v1540_v39 }
 0x412   : > { %v1557_v0 = vsel %vm1274_vm7, %v7430_v40, 0.0 }
 0x413   : > { %6517 = vpow2.f32 %v1547_v42  ;;  %1558 = vadd.xlane.f32.xlu2 %v1557_v0  ;;  %v6246_v42 = vld [vmem:[%s9289_s9 + $0x18] sm:$0xff]  ;;  %v6245_v0 = vld [vmem:[%s9289_s9 + $0x10] sm:$0xff] }
 0x414   : > { %v6516_v14 = vpop.eup %6515  ;;  %1770 = vmatpush.bf16.msrb.mxu0 %v6246_v42 }
 0x415   : > { %v1316_v29 = vpop.xlane.xlu2 %1315  ;;  %v1335_v46 = vmul.f32 %v6516_v14, %v7369_v57  ;;  %v6243_v14 = vld [vmem:[%s9289_s9] sm:$0xff] }
 0x416   : > { %6519 = vrcp.f32 %v1316_v29  ;;  %v1529_v43 = vpop.xlane.xlu1 %1528  ;;  %v6244_v29 = vld [vmem:[%s9289_s9 + $0x8] sm:$0xff] }
 0x417   : > { %v1341_v54 = vpack.c.bf16 %v1335_v46, %v1335_v46  ;;  %v1541_v53 = vsub.f32 %v7383_v3, %v1529_v43 }
 0x418   : > { %1771 = vmatpush.bf16.msrb.mxu0 %v6245_v0 }
 0x419   : > { %v7434_v44 = vpop.eup %6517  ;;  %v1350_v63 = vunpack.c.l.b16 %v1341_v54 }
 0x41a   : > { %v1560_v50 = vsel %vm1274_vm7, %v7434_v44, 0.0 }
 0x41b   : > { %1561 = vadd.xlane.f32.xlu1 %v1560_v50 }
 0x41c   : > { %v6520_v51 = vpop.eup %6519  ;;  %1772 = vmatpush.bf16.msrb.mxu0 %v6244_v29 }
 0x41d   : > { %v1336_v56 = vmul.f32 %v6520_v51, %v7379_v41  ;;  %v1532_v47 = vpop.xlane.xlu2 %1531 }
 0x41e   : > { %v1542_v59 = vsub.f32 %v7391_v58, %v1532_v47  ;;  %v1549_v58 = vmul.f32 1.442695, %v1541_v53 }
 0x41f   : > { %v1342_v60 = vpack.c.bf16 %v1336_v56, %v1336_v56 }
 0x420   : > { %v1551_v61 = vmul.f32 1.442695, %v1542_v59  ;;  %v1535_v62 = vpop.xlane.xlu1 %1534  ;;  %1773 = vmatpush.bf16.msrb.mxu0 %v6243_v14 }
 0x421   : > { %v1351_v1 = vunpack.c.l.b16 %v1342_v60  ;;  %v1543_v2 = vsub.f32 %v7397_v9, %v1535_v62 }
 0x422   : > { %6521 = vpow2.f32 %v1551_v61 }
 0x423   : > { %v1353_v57 = vpack.c.b16 %v1351_v1, %v1350_v63  ;;  %v1553_v4 = vmul.f32 1.442695, %v1543_v2 }
 0x425   : > { %5341 = vmatmul.msk.bf16.vlgmr.msra.gmra.mxu1 %vm1274_vm7, %v1353_v57  ;;  %v1319_v6 = vpop.xlane.xlu2 %1318 }
 0x426   : > { %6523 = vrcp.f32 %v1319_v6 }
 0x427   : > { %6525 = vpow2.f32 %v1553_v4 }
 0x428   : > { %v7444_v41 = vpop.eup %6521  ;;  %v1538_v7 = vpop.xlane.xlu0 %1537  ;;  %6527 = vpow2.f32 %v1549_v58 }
 0x429   : > { %v1566_v33 = vsel %vm1274_vm7, %v7444_v41, 0.0  ;;  %v1544_v12 = vsub.f32 %v7407_v18, %v1538_v7 }
 0x42a   : > { %1567 = vadd.xlane.f32.xlu0 %v1566_v33 }
 0x42b   : > { %1643 = vrot.lane.b32.xlu2 %v7306_v38, %s9310_s23  ;;  %v1555_v19 = vmul.f32 1.442695, %v1544_v12 }
 0x42c   : > { %v6524_v49 = vpop.eup %6523 }
 0x42d   : > { %v1604_v8 = vpop.permute.xlu2 %1603  ;;  %v1322_v9 = vpop.xlane.xlu1 %1321  ;;  %v1337_v10 = vmul.f32 %v6524_v49, %v7401_v15 }
 0x42e   : > { %v7451_v13 = vpop.eup %6525  ;;  %v1613_v3 = vsel %vm1370_vm4, %v1604_v8, 0  ;;  %6529 = vrcp.f32 %v1322_v9 }
 0x42f   : > { %1621 = vmatpush.bf16.msrb.mxu1 %v1613_v3  ;;  %v1343_v16 = vpack.c.bf16 %v1337_v10, %v1337_v10  ;;  %v1569_v11 = vsel %vm1274_vm7, %v7451_v13, 0.0  ;;  %v7459_v15 = vpop.eup %6527 }
 0x430   : > { %v1563_v22 = vsel %vm1274_vm7, %v7459_v15, 0.0 }
 0x431   : > { %v1352_v38 = vunpack.c.l.b16 %v1343_v16 }
 0x432   : > { %1570 = vadd.xlane.f32.xlu0 %v1569_v11 }
 0x433   : > { %v1354_v17 = vpack.c.b16 %v1352_v38, %v1352_v38 }
 0x434   : > { %1641 = vrot.lane.b32.xlu1 %v7314_v52, %s9310_s23  ;;  %v6530_v21 = vpop.eup %6529  ;;  %s9341_s23 = smov 64  }
 0x435   : > { %5342 = vmatmul.msk.bf16.gmra.mxu1 %vm1274_vm7, %v1354_v17  ;;  %v1325_v20 = vpop.xlane.xlu0 %1324  ;;  %v1338_v18 = vmul.f32 %v6530_v21, %v7411_v45 }
 0x436   : > { %6531 = vrcp.f32 %v1325_v20 }
 0x437   : > { %6533 = vpow2.f32 %v1555_v19  ;;  %v1344_v25 = vpack.c.bf16 %v1338_v18, %v1338_v18 }
 0x439   : > { %v1395_v31 = vunpack.c.l.b16 %v1344_v25 }
 0x43a   : > { %1564 = vadd.xlane.f32.xlu0 %v1563_v22  ;;  %v6250_v22 = vld [vmem:[%s9289_s9 + $0x38] sm:$0xff] }
 0x43b   : > { %1713 = vmatpush.bf16.msra.mxu3 %v6250_v22 }
 0x43c   : > { %v6532_v48 = vpop.eup %6531 }
 0x43d   : > { %v1339_v26 = vmul.f32 %v6532_v48, %v7416_v28  ;;  %v1328_v27 = vpop.xlane.xlu0 %1327  ;;  %v7466_v52 = vpop.eup %6533 }
 0x43e   : > { %6535 = vrcp.f32 %v1328_v27  ;;  %v1572_v32 = vsel %vm1274_vm7, %v7466_v52, 0.0 }
 0x43f   : > { %v1345_v30 = vpack.c.bf16 %v1339_v26, %v1339_v26 }
 0x441   : > { %v1396_v24 = vunpack.c.l.b16 %v1345_v30 }
 0x442   : > { %1573 = vadd.xlane.f32.xlu0 %v1572_v32  ;;  %v6248_v32 = vld [vmem:[%s9289_s9 + $0x28] sm:$0xff] }
 0x443   : > { %v1398_v45 = vpack.c.b16 %v1396_v24, %v1395_v31  ;;  %v6249_v24 = vld [vmem:[%s9289_s9 + $0x30] sm:$0xff] }
 0x444   : > { %v6536_v34 = vpop.eup %6535  ;;  %1714 = vmatpush.bf16.msra.mxu3 %v6249_v24 }
 0x445   : > { %v1602_v35 = vpop.permute.xlu1 %1601  ;;  %5343 = vmatmul.msk.bf16.vlgmr.msra.gmra.mxu2 %vm1274_vm7, %v1398_v45  ;;  %v1340_v36 = vmul.f32 %v6536_v34, %v7420_v55  ;;  %v6247_v45 = vld [vmem:[%s9289_s9 + $0x20] sm:$0xff] }
 0x446   : > { %1622 = vmatpush.bf16.msrb.mxu1 %v1602_v35 }
 0x447   : > { %v1346_v28 = vpack.c.bf16 %v1340_v36, %v1340_v36 }
 0x448   : > { %1715 = vmatpush.bf16.msra.mxu3 %v6248_v32 }
 0x449   : > { %v1397_v37 = vunpack.c.l.b16 %v1346_v28 }
 0x44b   : > { %v1399_v39 = vpack.c.b16 %v1397_v37, %v1397_v37 }
 0x44c   : > { %1716 = vmatpush.bf16.msra.mxu3 %v6247_v45 }
 0x455   : > { %5344 = vmatmul.msk.bf16.gmra.mxu2 %vm1274_vm7, %v1399_v39 }
 0x486   : > { %v1559_v55 = vpop.xlane.xlu2 %1558 }
 0x487   : > { %6537 = vrcp.f32 %v1559_v55 }
 0x48d   : > { %v6538_v50 = vpop.eup %6537 }
 0x48e   : > { %v1644_v43 = vpop.permute.xlu2 %1643  ;;  %v1562_v46 = vpop.xlane.xlu1 %1561  ;;  %v1581_v54 = vmul.f32 %v6538_v50, %v7430_v40 }
 0x48f   : > { %v1653_v51 = vsel %vm1370_vm4, %v1644_v43, 0  ;;  %6539 = vrcp.f32 %v1562_v46 }
 0x490   : > { %1661 = vmatpush.bf16.msrb.mxu2 %v1653_v51  ;;  %v1587_v47 = vpack.c.bf16 %v1581_v54, %v1581_v54  ;;  %v6475_v51 = vld [vmem:[%s9290_s10] ss:$0 sm:$0xff] }
 0x491   : > { %v6741_v54 = vld [vmem:[#allocation2] sm:$0xff] }
 0x492   : > { %v1596_v61 = vunpack.c.l.b16 %v1587_v47 }
 0x495   : > { %v6540_v56 = vpop.eup %6539 }
 0x496   : > { %v1582_v59 = vmul.f32 %v6540_v56, %v7434_v44 }
 0x498   : > { %v1588_v60 = vpack.c.bf16 %v1582_v59, %v1582_v59 }
 0x49a   : > { %v1597_v62 = vunpack.c.l.b16 %v1588_v60 }
 0x49c   : > { %v1599_v63 = vpack.c.b16 %v1597_v62, %v1596_v61  ;;  %v6742_v62 = vld [vmem:[#allocation2 + $0x8] sm:$0xff] }
 0x49d   : > { %v1568_v1 = vpop.xlane.xlu0 %1567 }
 0x49e   : > { %5349 = vmatmul.msk.bf16.vlgmr.msrb.gmra.mxu1 %vm1274_vm7, %v1599_v63  ;;  %6541 = vrcp.f32 %v1568_v1 }
 0x4a2   : > { %v1383_v2 = vpop.f32.mrf.mxu1 }
 0x4a4   : > { %v6542_v4 = vpop.eup %6541 }
 0x4a5   : > { %v1571_v57 = vpop.xlane.xlu0 %1570  ;;  %v1584_v40 = vmul.f32 %v6542_v4, %v7444_v41 }
 0x4a6   : > { %6543 = vrcp.f32 %v1571_v57  ;;  %v1642_v6 = vpop.permute.xlu1 %1641 }
 0x4a7   : > { %1662 = vmatpush.bf16.msrb.mxu2 %v1642_v6  ;;  %v1590_v44 = vpack.c.bf16 %v1584_v40, %v1584_v40  ;;  %v6743_v6 = vld [vmem:[#allocation2 + $0x10] sm:$0xff] }
 0x4a9   : > { %v1636_v9 = vunpack.c.l.b16 %v1590_v44 }
 0x4aa   : > { %v1385_v53 = vpop.f32.mrf.mxu1 }
 0x4ab   : > { %v1436_v33 = vpack.c.bf16 %v1385_v53, %v1383_v2 }
 0x4ac   : > { %v6544_v58 = vpop.eup %6543 }
 0x4ad   : > { %v1585_v49 = vmul.f32 %v6544_v58, %v7451_v13  ;;  %5388 = vmatmul.msk.bf16.vlgmr.msrb.gmra.mxu0 %vm1189_vm5, %v1436_v33  ;;  %v1565_v7 = vpop.xlane.xlu0 %1564 }
 0x4ae   : > { %6545 = vrcp.f32 %v1565_v7 }
 0x4af   : > { %v1591_v8 = vpack.c.bf16 %v1585_v49, %v1585_v49  ;;  %v6744_v49 = vld [vmem:[#allocation2 + $0x18] sm:$0xff] }
 0x4b1   : > { %v1637_v10 = vunpack.c.l.b16 %v1591_v8 }
 0x4b2   : > { %v1388_v3 = vpop.f32.mrf.mxu1 }
 0x4b3   : > { %v1639_v16 = vpack.c.b16 %v1637_v10, %v1636_v9 }
 0x4b4   : > { %v6546_v12 = vpop.eup %6545 }
 0x4b5   : > { %5351 = vmatmul.msk.bf16.vlgmr.msrb.gmra.mxu2 %vm1274_vm7, %v1639_v16  ;;  %v1574_v11 = vpop.xlane.xlu0 %1573  ;;  %v1583_v41 = vmul.f32 %v6546_v12, %v7459_v15  ;;  %v6745_v16 = vld [vmem:[#allocation2 + $0x20] sm:$0xff] }
 0x4b6   : > { %6547 = vrcp.f32 %v1574_v11 }
 0x4b7   : > { %v1589_v38 = vpack.c.bf16 %v1583_v41, %v1583_v41 }
 0x4b9   : > { %v1598_v17 = vunpack.c.l.b16 %v1589_v38 }
 0x4ba   : > { %v1390_v19 = vpop.f32.mrf.mxu1 }
 0x4bb   : > { %v1600_v13 = vpack.c.b16 %v1598_v17, %v1598_v17  ;;  %v6746_v19 = vld [vmem:[#allocation2 + $0x28] sm:$0xff] }
 0x4bc   : > { %v6548_v20 = vpop.eup %6547 }
 0x4bd   : > { %5350 = vmatmul.msk.bf16.gmra.mxu1 %vm1274_vm7, %v1600_v13  ;;  %v1586_v21 = vmul.f32 %v6548_v20, %v7466_v52 }
 0x4bf   : > { %v1592_v18 = vpack.c.bf16 %v1586_v21, %v1586_v21 }
 0x4c1   : > { %v1638_v48 = vunpack.c.l.b16 %v1592_v18 }
 0x4c3   : > { %v1640_v25 = vpack.c.b16 %v1638_v48, %v1638_v48 }
 0x4c5   : > { %5352 = vmatmul.msk.bf16.gmra.mxu2 %vm1274_vm7, %v1640_v25 }
 0x4c8   : > { %v1427_v15 = vpop.f32.mrf.mxu2 }
 0x4c9   : > { %v1437_v26 = vpack.c.bf16 %v1427_v15, %v1388_v3 }
 0x4cb   : > { %5389 = vmatmul.msk.bf16.gmra.mxu0 %vm1189_vm5, %v1437_v26 }
 0x4d0   : > { %v1429_v27 = vpop.f32.mrf.mxu2 }
 0x4d8   : > { %v1432_v30 = vpop.f32.mrf.mxu2 }
 0x4d9   : > { %v1438_v31 = vpack.c.bf16 %v1432_v30, %v1429_v27 }
 0x4db   : > { %5390 = vmatmul.msk.bf16.gmra.mxu0 %vm1189_vm5, %v1438_v31 }
 0x4e0   : > { %v1434_v52 = vpop.f32.mrf.mxu2 }
 0x51b   : > { %v1624_v34 = vpop.f32.mrf.mxu1 }
 0x523   : > { %v1626_v35 = vpop.f32.mrf.mxu1 }
 0x524   : > { %v1673_v36 = vpack.c.bf16 %v1626_v35, %v1624_v34 }
 0x526   : > { %5369 = vmatmul.msk.bf16.vlgmr.msra.gmra.mxu3 %vm1189_vm5, %v1673_v36 }
 0x52a   : > { %v1775_v43 = vpop.f32.mrf.mxu0 }
 0x532   : > { %v1777_v59 = vpop.f32.mrf.mxu0 }
 0x538   : > { %v1664_v28 = vpop.f32.mrf.mxu2 }
 0x53a   : > { %v1629_v37 = vpop.f32.mrf.mxu1 }
 0x53b   : > { %v1674_v39 = vpack.c.bf16 %v1664_v28, %v1629_v37 }
 0x53d   : > { %5370 = vmatmul.msk.bf16.gmra.mxu3 %vm1189_vm5, %v1674_v39 }
 0x540   : > { %v1666_v42 = vpop.f32.mrf.mxu2 }
 0x542   : > { %v1631_v0 = vpop.f32.mrf.mxu1 }
 0x548   : > { %v1669_v29 = vpop.f32.mrf.mxu2  ;;  %v1780_v2 = vpop.f32.mrf.mxu0 }
 0x549   : > { %v1675_v55 = vpack.c.bf16 %v1669_v29, %v1666_v42 }
 0x54d   : > { %5371 = vmatmul.msk.bf16.gmra.mxu3 %vm1189_vm5, %v1675_v55 }
 0x550   : > { %v1671_v14 = vpop.f32.mrf.mxu2  ;;  %v1782_v53 = vpop.f32.mrf.mxu0 }
 0x551   : > { %v5505_v14 = vld [vmem:[%s9293_s13 + $0xe0] sm:$0xf] }
 0x558   : > { %v1785_v9 = vpop.f32.mrf.mxu0 }
 0x560   : > { %v1787_v41 = vpop.f32.mrf.mxu0 }
 0x5a9   : > { %v1718_v46 = vpop.f32.mrf.mxu3 }
 0x5aa   : > { %v1776_v50 = vadd.f32 %v1775_v43, %v1718_v46  ;;  %v6281_v43 = vld [vmem:[%s9293_s13 + $0xec] sm:$0xf0]  ;;  %v6279_v46 = vld [vmem:[%s9293_s13 + $0xe4] sm:$0xf] }
 0x5ac   : > { %v1790_v56 = vadd.f32 %v6741_v54, %v1776_v50  ;;  %v5506_v50 = vor.u32 %v6281_v43, %v5505_v14  ;;  %v5513_v54 = vld [vmem:[%s9293_s13 + $0xe8] sm:$0xf]  ;;  %v6263_v14 = vld [vmem:[%s9293_s13 + $0x64] sm:$0xf] }
 0x5ae   : > { %v7517_v47 = vadd.f32 %v6475_v51, %v1790_v56  ;;  %v6282_v56 = vld [vmem:[%s9293_s13 + $0xf4] sm:$0xf0]  ;;  %2151 = vmatpush.bf16.msra.mxu1 %v5506_v50  ;;  %v5449_v50 = vld [vmem:[%s9293_s13 + $0x68] sm:$0xf] }
 0x5b0   : > { %1808 = vadd.xlane.f32.xlu2 %v7517_v47 }
 0x5b1   : > { %v1720_v60 = vpop.f32.mrf.mxu3 }
 0x5b2   : > { %v1778_v61 = vadd.f32 %v1777_v59, %v1720_v60  ;;  %v5514_v60 = vor.u32 %v6282_v56, %v5513_v54 }
 0x5b4   : > { %v1791_v63 = vadd.f32 %v6742_v62, %v1778_v61  ;;  %v6280_v61 = vld [vmem:[%s9293_s13 + $0xec] sm:$0xf]  ;;  %v5515_v62 = vld [vmem:[%s9293_s13 + $0xf8] sm:$0xf0]  ;;  %2199 = vmatpush.bf16.msrb.mxu3 %v5514_v60 }
 0x5b5   : > { %v5451_v60 = vld [vmem:[%s9293_s13 + $0x78] sm:$0xf0] }
 0x5b6   : > { %v7520_v1 = vadd.f32 %v6475_v51, %v1791_v63  ;;  %v5518_v63 = vor.u32 %v6280_v61, %v5515_v62  ;;  %v5425_v62 = vld [vmem:[%s9293_s13 + $0x40] sm:$0xf] }
 0x5b8   : > { %1810 = vadd.xlane.f32.xlu1 %v7520_v1  ;;  %2223 = vmatpush.bf16.msra.mxu0 %v5518_v63  ;;  %v6261_v63 = vld [vmem:[%s9293_s13 + $0x4c] sm:$0xf0] }
 0x5c0   : > { %v1723_v57 = vpop.f32.mrf.mxu3 }
 0x5c1   : > { %v1781_v4 = vadd.f32 %v1780_v2, %v1723_v57  ;;  %v5489_v2 = vld [vmem:[%s9293_s13 + $0xc0] sm:$0xf]  ;;  %v6277_v57 = vld [vmem:[%s9293_s13 + $0xcc] sm:$0xf0] }
 0x5c3   : > { %v1792_v40 = vadd.f32 %v6743_v6, %v1781_v4  ;;  %v6275_v4 = vld [vmem:[%s9293_s13 + $0xc4] sm:$0xf]  ;;  %v5490_v6 = vor.u32 %v6277_v57, %v5489_v2  ;;  %v5426_v57 = vor.u32 %v6261_v63, %v5425_v62 }
 0x5c4   : > { %v6259_v2 = vld [vmem:[%s9293_s13 + $0x44] sm:$0xf] }
 0x5c5   : > { %v7523_v33 = vadd.f32 %v6475_v51, %v1792_v40  ;;  %v5491_v40 = vld [vmem:[%s9293_s13 + $0xd0] sm:$0xf0]  ;;  %2152 = vmatpush.bf16.msra.mxu1 %v5490_v6  ;;  %v5433_v6 = vld [vmem:[%s9293_s13 + $0x48] sm:$0xf] }
 0x5c7   : > { %1812 = vadd.xlane.f32.xlu0 %v7523_v33 }
 0x5c8   : > { %v1725_v58 = vpop.f32.mrf.mxu3 }
 0x5c9   : > { %v1783_v44 = vadd.f32 %v1782_v53, %v1725_v58  ;;  %v5497_v53 = vld [vmem:[%s9293_s13 + $0xc8] sm:$0xf]  ;;  %v6278_v58 = vld [vmem:[%s9293_s13 + $0xd4] sm:$0xf0] }
 0x5cb   : > { %v1793_v7 = vadd.f32 %v6744_v49, %v1783_v44  ;;  %v5494_v44 = vor.u32 %v6275_v4, %v5491_v40  ;;  %v5498_v49 = vor.u32 %v6278_v58, %v5497_v53  ;;  %v5427_v4 = vld [vmem:[%s9293_s13 + $0x50] sm:$0xf0]  ;;  %v6262_v40 = vld [vmem:[%s9293_s13 + $0x54] sm:$0xf0] }
 0x5cc   : > { %v5430_v53 = vor.u32 %v6259_v2, %v5427_v4  ;;  %v5434_v58 = vor.u32 %v6262_v40, %v5433_v6 }
 0x5cd   : > { %v7526_v8 = vadd.f32 %v6475_v51, %v1793_v7  ;;  %v6276_v7 = vld [vmem:[%s9293_s13 + $0xcc] sm:$0xf]  ;;  %2200 = vmatpush.bf16.msrb.mxu3 %v5498_v49  ;;  %v5435_v49 = vld [vmem:[%s9293_s13 + $0x58] sm:$0xf0] }
 0x5cf   : > { %1814 = vadd.xlane.f32.xlu0 %v7526_v8 }
 0x5d0   : > { %v1728_v10 = vpop.f32.mrf.mxu3 }
 0x5d1   : > { %v1786_v3 = vadd.f32 %v1785_v9, %v1728_v10  ;;  %v5499_v9 = vld [vmem:[%s9293_s13 + $0xd8] sm:$0xf0] }
 0x5d2   : > { %v5502_v10 = vor.u32 %v6276_v7, %v5499_v9  ;;  %v5409_v9 = vld [vmem:[%s9293_s13 + $0x20] sm:$0xf] }
 0x5d3   : > { %v1794_v12 = vadd.f32 %v6745_v16, %v1786_v3  ;;  %v5473_v3 = vld [vmem:[%s9293_s13 + $0xa0] sm:$0xf]  ;;  %v6273_v16 = vld [vmem:[%s9293_s13 + $0xac] sm:$0xf0] }
 0x5d4   : > { %2224 = vmatpush.bf16.msra.mxu0 %v5502_v10  ;;  %v6257_v10 = vld [vmem:[%s9293_s13 + $0x2c] sm:$0xf0] }
 0x5d5   : > { %v7529_v11 = vadd.f32 %v6475_v51, %v1794_v12  ;;  %v6271_v12 = vld [vmem:[%s9293_s13 + $0xa4] sm:$0xf] }
 0x5d7   : > { %1816 = vadd.xlane.f32.xlu0 %v7529_v11 }
 0x5d8   : > { %v1730_v38 = vpop.f32.mrf.mxu3 }
 0x5d9   : > { %v1788_v17 = vadd.f32 %v1787_v41, %v1730_v38  ;;  %v5474_v41 = vor.u32 %v6273_v16, %v5473_v3  ;;  %v5475_v38 = vld [vmem:[%s9293_s13 + $0xb0] sm:$0xf0]  ;;  %v6255_v3 = vld [vmem:[%s9293_s13 + $0x24] sm:$0xf]  ;;  %v5410_v16 = vor.u32 %v6257_v10, %v5409_v9 }
 0x5db   : > { %v1795_v13 = vadd.f32 %v6746_v19, %v1788_v17  ;;  %v5481_v17 = vld [vmem:[%s9293_s13 + $0xa8] sm:$0xf]  ;;  %v6274_v19 = vld [vmem:[%s9293_s13 + $0xb4] sm:$0xf0]  ;;  %2153 = vmatpush.bf16.msra.mxu1 %v5474_v41 }
 0x5dc   : > { %v5417_v41 = vld [vmem:[%s9293_s13 + $0x28] sm:$0xf] }
 0x5dd   : > { %v7532_v20 = vadd.f32 %v6475_v51, %v1795_v13  ;;  %v5507_v51 = vld [vmem:[%s9293_s13 + $0xf0] sm:$0xf0]  ;;  %v5478_v13 = vor.u32 %v6271_v12, %v5475_v38  ;;  %v6258_v38 = vld [vmem:[%s9293_s13 + $0x34] sm:$0xf0] }
 0x5de   : > { %v5510_v59 = vor.u32 %v6279_v46, %v5507_v51  ;;  %v5443_v46 = vld [vmem:[%s9293_s13 + $0x70] sm:$0xf0]  ;;  %v6266_v51 = vld [vmem:[%s9293_s13 + $0x74] sm:$0xf0] }
 0x5df   : > { %1818 = vadd.xlane.f32.xlu0 %v7532_v20  ;;  %v5446_v54 = vor.u32 %v6263_v14, %v5443_v46  ;;  %v5450_v56 = vor.u32 %v6266_v51, %v5449_v50  ;;  %v5411_v12 = vld [vmem:[%s9293_s13 + $0x30] sm:$0xf0] }
 0x5e0   : > { %2175 = vmatpush.bf16.msra.mxu2 %v5510_v59  ;;  %v6264_v59 = vld [vmem:[%s9293_s13 + $0x6c] sm:$0xf] }
 0x5e1   : > { %v5454_v61 = vor.u32 %v6264_v59, %v5451_v60 }
 0x5e4   : > { %2176 = vmatpush.bf16.msra.mxu2 %v5494_v44  ;;  %v6260_v44 = vld [vmem:[%s9293_s13 + $0x4c] sm:$0xf] }
 0x5e5   : > { %v5438_v7 = vor.u32 %v6260_v44, %v5435_v49 }
 0x5e8   : > { %2177 = vmatpush.bf16.msra.mxu2 %v5478_v13  ;;  %v5418_v13 = vor.u32 %v6258_v38, %v5417_v41 }
 0x623   : > { %v1809_v21 = vpop.xlane.xlu2 %1808 }
 0x624   : > { %v1820_v18 = vmul.f32 %v1809_v21, %v7032_v23  ;;  %v5482_v21 = vor.u32 %v6274_v19, %v5481_v17  ;;  %v5414_v19 = vor.u32 %v6255_v3, %v5411_v12  ;;  %v7777_v3 = vld [vmem:[%s9292_s12] ss:$0 sm:$0xff] }
 0x626   : > { %v7537_v22 = vsub.f32 %v7517_v47, %v1820_v18  ;;  %v6272_v18 = vld [vmem:[%s9293_s13 + $0xac] sm:$0xf]  ;;  %2201 = vmatpush.bf16.msrb.mxu3 %v5482_v21 }
 0x627   : > { %v6256_v21 = vld [vmem:[%s9293_s13 + $0x2c] sm:$0xf] }
 0x628   : > { %v1832_v48 = vmul.f32 %v7537_v22, %v7537_v22 }
 0x62a   : > { %1838 = vadd.xlane.f32.xlu0 %v1832_v48  ;;  %v5483_v48 = vld [vmem:[%s9293_s13 + $0xb8] sm:$0xf0] }
 0x62b   : > { %v1811_v25 = vpop.xlane.xlu1 %1810 }
 0x62c   : > { %v1821_v15 = vmul.f32 %v1811_v25, %v7032_v23  ;;  %v5486_v25 = vor.u32 %v6272_v18, %v5483_v48  ;;  %v5419_v18 = vld [vmem:[%s9293_s13 + $0x38] sm:$0xf0] }
 0x62e   : > { %v7543_v26 = vsub.f32 %v7520_v1, %v1821_v15  ;;  %v5457_v15 = vld [vmem:[%s9293_s13 + $0x80] sm:$0xf]  ;;  %2225 = vmatpush.bf16.msra.mxu0 %v5486_v25  ;;  %v5422_v25 = vor.u32 %v6256_v21, %v5419_v18 }
 0x630   : > { %v1833_v27 = vmul.f32 %v7543_v26, %v7543_v26 }
 0x632   : > { %1840 = vadd.xlane.f32.xlu2 %v1833_v27  ;;  %v6269_v27 = vld [vmem:[%s9293_s13 + $0x8c] sm:$0xf0] }
 0x63a   : > { %v1813_v30 = vpop.xlane.xlu0 %1812 }
 0x63b   : > { %v1822_v31 = vmul.f32 %v1813_v30, %v7032_v23  ;;  %v6267_v30 = vld [vmem:[%s9293_s13 + $0x84] sm:$0xf] }
 0x63d   : > { %v7549_v52 = vsub.f32 %v7523_v33, %v1822_v31  ;;  %v5458_v31 = vor.u32 %v6269_v27, %v5457_v15  ;;  %v5393_v15 = vld [vmem:[%s9293_s13] sm:$0xf]  ;;  %v6253_v27 = vld [vmem:[%s9293_s13 + $0xc] sm:$0xf0] }
 0x63f   : > { %v1834_v24 = vmul.f32 %v7549_v52, %v7549_v52  ;;  %2154 = vmatpush.bf16.msra.mxu1 %v5458_v31 }
 0x641   : > { %1842 = vadd.xlane.f32.xlu0 %v1834_v24  ;;  %v5459_v24 = vld [vmem:[%s9293_s13 + $0x90] sm:$0xf0] }
 0x642   : > { %v1815_v32 = vpop.xlane.xlu0 %1814 }
 0x643   : > { %v1823_v45 = vmul.f32 %v1815_v32, %v7032_v23  ;;  %v5465_v32 = vld [vmem:[%s9293_s13 + $0x88] sm:$0xf] }
 0x645   : > { %v7555_v34 = vsub.f32 %v7526_v8, %v1823_v45  ;;  %v6270_v45 = vld [vmem:[%s9293_s13 + $0x94] sm:$0xf0] }
 0x647   : > { %v1835_v35 = vmul.f32 %v7555_v34, %v7555_v34 }
 0x649   : > { %1844 = vadd.xlane.f32.xlu1 %v1835_v35  ;;  %v5462_v35 = vor.u32 %v6267_v30, %v5459_v24  ;;  %v6251_v30 = vld [vmem:[%s9293_s13 + $0x4] sm:$0xf]  ;;  %v5394_v24 = vor.u32 %v6253_v27, %v5393_v15 }
 0x64a   : > { %v1817_v36 = vpop.xlane.xlu0 %1816 }
 0x64b   : > { %v1824_v28 = vmul.f32 %v1817_v36, %v7032_v23  ;;  %v5466_v36 = vor.u32 %v6270_v45, %v5465_v32  ;;  %2178 = vmatpush.bf16.msra.mxu2 %v5462_v35  ;;  %v5395_v32 = vld [vmem:[%s9293_s13 + $0x10] sm:$0xf0]  ;;  %v5401_v45 = vld [vmem:[%s9293_s13 + $0x8] sm:$0xf] }
 0x64c   : > { %v5398_v35 = vor.u32 %v6251_v30, %v5395_v32 }
 0x64d   : > { %v7561_v37 = vsub.f32 %v7529_v11, %v1824_v28  ;;  %v6268_v28 = vld [vmem:[%s9293_s13 + $0x8c] sm:$0xf]  ;;  %2202 = vmatpush.bf16.msrb.mxu3 %v5466_v36  ;;  %v6254_v36 = vld [vmem:[%s9293_s13 + $0x14] sm:$0xf0] }
 0x64f   : > { %v1836_v39 = vmul.f32 %v7561_v37, %v7561_v37  ;;  %2179 = vmatpush.bf16.msra.mxu2 %v5446_v54 }
 0x651   : > { %1846 = vadd.xlane.f32.xlu2 %v1836_v39  ;;  %v5467_v39 = vld [vmem:[%s9293_s13 + $0x98] sm:$0xf0]  ;;  %2203 = vmatpush.bf16.msrb.mxu3 %v5450_v56 }
 0x652   : > { %v1819_v42 = vpop.xlane.xlu0 %1818 }
 0x653   : > { %v1825_v0 = vmul.f32 %v1819_v42, %v7032_v23  ;;  %v5470_v42 = vor.u32 %v6268_v28, %v5467_v39  ;;  %2180 = vmatpush.bf16.msra.mxu2 %v5430_v53  ;;  %v6252_v28 = vld [vmem:[%s9293_s13 + $0xc] sm:$0xf]  ;;  %v5403_v39 = vld [vmem:[%s9293_s13 + $0x18] sm:$0xf0] }
 0x655   : > { %v7567_v29 = vsub.f32 %v7532_v20, %v1825_v0  ;;  %v5441_v0 = vld [vmem:[%s9293_s13 + $0x60] sm:$0xf]  ;;  %2226 = vmatpush.bf16.msra.mxu0 %v5470_v42  ;;  %2204 = vmatpush.bf16.msrb.mxu3 %v5434_v58  ;;  %v5402_v42 = vor.u32 %v6254_v36, %v5401_v45 }
 0x656   : > { %v7770_v58 = vld [vmem:[%s9291_s11] ss:$0 sm:$0xff] }
 0x657   : > { %v1837_v55 = vmul.f32 %v7567_v29, %v7567_v29  ;;  %2181 = vmatpush.bf16.msra.mxu2 %v5414_v19 }
 0x659   : > { %1848 = vadd.xlane.f32.xlu0 %v1837_v55  ;;  %v6265_v55 = vld [vmem:[%s9293_s13 + $0x6c] sm:$0xf0]  ;;  %2227 = vmatpush.bf16.msra.mxu0 %v5454_v61 }
 0x65a   : > { %v5442_v43 = vor.u32 %v6265_v55, %v5441_v0  ;;  %2205 = vmatpush.bf16.msrb.mxu3 %v5418_v13  ;;  %v5406_v0 = vor.u32 %v6252_v28, %v5403_v39 }
 0x65b   : > { %2182 = vmatpush.bf16.msra.mxu2 %v5398_v35 }
 0x65c   : > { %2155 = vmatpush.bf16.msra.mxu1 %v5442_v43 }
 0x65d   : > { %2228 = vmatpush.bf16.msra.mxu0 %v5438_v7 }
 0x65e   : > { %2206 = vmatpush.bf16.msrb.mxu3 %v5402_v42 }
 0x660   : > { %2156 = vmatpush.bf16.msra.mxu1 %v5426_v57 }
 0x661   : > { %2229 = vmatpush.bf16.msra.mxu0 %v5422_v25 }
 0x664   : > { %2157 = vmatpush.bf16.msra.mxu1 %v5410_v16 }
 0x665   : > { %2230 = vmatpush.bf16.msra.mxu0 %v5406_v0 }
 0x668   : > { %2158 = vmatpush.bf16.msra.mxu1 %v5394_v24 }
 0x69d   : > { %v1839_v17 = vpop.xlane.xlu0 %1838 }
 0x69e   : > { %v1850_v48 = vmul.f32 %v1839_v17, %v7032_v23 }
 0x6a0   : > { %v1856_v31 = vadd.f32 1e-06, %v1850_v48 }
 0x6a2   : > { %6549 = vrsqrt.f32 %v1856_v31  ;;  %vm1868_vm9 = vweird.f32 %v1856_v31 }
 0x6a5   : > { %v1841_v55 = vpop.xlane.xlu2 %1840 }
 0x6a6   : > { %v1851_v14 = vmul.f32 %v1841_v55, %v7032_v23 }
 0x6a8   : > { %v6550_v43 = vpop.eup %6549  ;;  %v1857_v46 = vadd.f32 1e-06, %v1851_v14 }
 0x6a9   : > { %v1863_v50 = vmul.f32 %v6550_v43, %v1856_v31  ;;  %vm1869_vm8 = vweird.f32 %v6550_v43 }
 0x6aa   : > { %6551 = vrsqrt.f32 %v1857_v46  ;;  %vm1870_vm10 = vmor %vm1868_vm9, %vm1869_vm8  ;;  %vm1878_vm12 = vweird.f32 %v1857_v46 }
 0x6ab   : > { %v1864_v51 = vmul.f32 %v6550_v43, %v1863_v50 }
 0x6ad   : > { %v1865_v54 = vmul.f32 0.5, %v1864_v51 }
 0x6af   : > { %v1866_v56 = vsub.f32 1.5, %v1865_v54 }
 0x6b0   : > { %v6552_v59 = vpop.eup %6551 }
 0x6b1   : > { %v1867_v60 = vmul.f32 %v6550_v43, %v1866_v56  ;;  %v1873_v61 = vmul.f32 %v6552_v59, %v1857_v46  ;;  %vm1879_vm11 = vweird.f32 %v6552_v59 }
 0x6b2   : > { %vm1880_vm13 = vmor %vm1878_vm12, %vm1879_vm11 }
 0x6b3   : > { %v1874_v62 = vmul.f32 %v6552_v59, %v1873_v61  ;;  %v1871_v2 = vsel %vm1870_vm10, %v6550_v43, %v1867_v60 }
 0x6b4   : > { %v1843_v63 = vpop.xlane.xlu0 %1842  ;;  %v1922_v53 = vmul.f32 %v1871_v2, %v7537_v22 }
 0x6b5   : > { %v1875_v57 = vmul.f32 0.5, %v1874_v62  ;;  %v1852_v4 = vmul.f32 %v1843_v63, %v7032_v23 }
 0x6b6   : > { %v1931_v10 = vmul.f32 %v7770_v58, %v1922_v53 }
 0x6b7   : > { %v1876_v6 = vsub.f32 1.5, %v1875_v57  ;;  %v1858_v40 = vadd.f32 1e-06, %v1852_v4 }
 0x6b8   : > { %v1940_v17 = vadd.f32 %v7777_v3, %v1931_v10 }
 0x6b9   : > { %v1877_v44 = vmul.f32 %v6552_v59, %v1876_v6  ;;  %6553 = vrsqrt.f32 %v1858_v40  ;;  %vm1888_vm15 = vweird.f32 %v1858_v40 }
 0x6bb   : > { %v1881_v49 = vsel %vm1880_vm13, %v6552_v59, %v1877_v44 }
 0x6bc   : > { %v1923_v7 = vmul.f32 %v1881_v49, %v7543_v26  ;;  %v1845_v9 = vpop.xlane.xlu1 %1844 }
 0x6bd   : > { %v1853_v22 = vmul.f32 %v1845_v9, %v7032_v23 }
 0x6be   : > { %v1932_v16 = vmul.f32 %v7770_v58, %v1923_v7 }
 0x6bf   : > { %v6554_v12 = vpop.eup %6553  ;;  %v1859_v41 = vadd.f32 1e-06, %v1853_v22 }
 0x6c0   : > { %v1883_v38 = vmul.f32 %v6554_v12, %v1858_v40  ;;  %v1941_v19 = vadd.f32 %v7777_v3, %v1932_v16  ;;  %vm1889_vm14 = vweird.f32 %v6554_v12 }
 0x6c1   : > { %6555 = vrsqrt.f32 %v1859_v41  ;;  %vm1890_vm0 = vmor %vm1888_vm15, %vm1889_vm14  ;;  %vm1898_vm2 = vweird.f32 %v1859_v41 }
 0x6c2   : > { %v1884_v26 = vmul.f32 %v6554_v12, %v1883_v38  ;;  %v1946_v13 = vpack.c.bf16 %v1941_v19, %v1940_v17  ;;  %v6288_v38 = vld [vmem:[%s9295_s15 + $0x28] sm:$0xff]  ;;  %v6297_v19 = vld [vmem:[%s9295_s15 + $0x70] sm:$0xff] }
 0x6c3   : > { %v6312_v17 = vld [vmem:[%s9295_s15 + $0xe8] sm:$0xff] }
 0x6c4   : > { %v1885_v21 = vmul.f32 0.5, %v1884_v26  ;;  %2159 = vmatmul.bf16.vlgmr.msra.gmra.mxu1 %v1946_v13  ;;  %2183 = vmatmul.bf16.vlgmr.msra.gmra.mxu2 %v1946_v13  ;;  %v1847_v18 = vpop.xlane.xlu2 %1846  ;;  %v6305_v26 = vld [vmem:[%s9295_s15 + $0xb0] sm:$0xff] }
 0x6c5   : > { %2207 = vmatmul.bf16.vlgmr.msrb.gmra.mxu3 %v1946_v13  ;;  %2231 = vmatmul.bf16.vlgmr.msra.gmra.mxu0 %v1946_v13  ;;  %v1854_v48 = vmul.f32 %v1847_v18, %v7032_v23  ;;  %v6287_v13 = vld [vmem:[%s9295_s15 + $0x20] sm:$0xff]  ;;  %v6296_v18 = vld [vmem:[%s9295_s15 + $0x68] sm:$0xff] }
 0x6c6   : > { %v1886_v25 = vsub.f32 1.5, %v1885_v21  ;;  %v6311_v21 = vld [vmem:[%s9295_s15 + $0xe0] sm:$0xff] }
 0x6c7   : > { %v6556_v15 = vpop.eup %6555  ;;  %v1860_v27 = vadd.f32 1e-06, %v1854_v48  ;;  %v6304_v48 = vld [vmem:[%s9295_s15 + $0xa8] sm:$0xff] }
 0x6c8   : > { %v1887_v30 = vmul.f32 %v6554_v12, %v1886_v25  ;;  %v1893_v31 = vmul.f32 %v6556_v15, %v1859_v41  ;;  %vm1899_vm1 = vweird.f32 %v6556_v15  ;;  %v6306_v41 = vld [vmem:[%s9295_s15 + $0xb8] sm:$0xff] }
 0x6c9   : > { %6557 = vrsqrt.f32 %v1860_v27  ;;  %vm1900_vm3 = vmor %vm1898_vm2, %vm1899_vm1  ;;  %vm1908_vm9 = vweird.f32 %v1860_v27  ;;  %2783 = vmatpush.bf16.msra.mxu3 %v6306_v41  ;;  %v6286_v25 = vld [vmem:[%s9295_s15 + $0x18] sm:$0xff] }
 0x6ca   : > { %v1894_v24 = vmul.f32 %v6556_v15, %v1893_v31  ;;  %v1891_v32 = vsel %vm1890_vm0, %v6554_v12, %v1887_v30  ;;  %v6298_v12 = vld [vmem:[%s9295_s15 + $0x78] sm:$0xff]  ;;  %v6303_v30 = vld [vmem:[%s9295_s15 + $0xa0] sm:$0xff]  ;;  %v6285_v31 = vld [vmem:[%s9295_s15 + $0x10] sm:$0xff] }
 0x6cb   : > { %v1924_v42 = vmul.f32 %v1891_v32, %v7549_v52  ;;  %2759 = vmatpush.bf16.msrb.mxu2 %v6298_v12  ;;  %v1981_v32 = vld [vmem:[%s9294_s14] sm:$0xf] }
 0x6cc   : > { %v1895_v45 = vmul.f32 0.5, %v1894_v24  ;;  %v1849_v35 = vpop.xlane.xlu0 %1848  ;;  %v6309_v24 = vld [vmem:[%s9295_s15 + $0xd0] sm:$0xff] }
 0x6cd   : > { %v1855_v36 = vmul.f32 %v1849_v35, %v7032_v23  ;;  %v1933_v51 = vmul.f32 %v7770_v58, %v1924_v42  ;;  %2784 = vmatpush.bf16.msra.mxu3 %v6305_v26  ;;  %v6302_v35 = vld [vmem:[%s9295_s15 + $0x98] sm:$0xff]  ;;  %v7874_v42 = vperm.slane %v1981_v32, 3 }
 0x6ce   : > { %v1896_v28 = vsub.f32 1.5, %v1895_v45  ;;  %v6294_v45 = vld [vmem:[%s9295_s15 + $0x58] sm:$0xff] }
 0x6cf   : > { %v6558_v39 = vpop.eup %6557  ;;  %v1861_v0 = vadd.f32 1e-06, %v1855_v36  ;;  %v1942_v61 = vadd.f32 %v7777_v3, %v1933_v51  ;;  %2760 = vmatpush.bf16.msrb.mxu2 %v6297_v19  ;;  %v6284_v36 = vld [vmem:[%s9295_s15 + $0x8] sm:$0xff] }
 0x6d0   : > { %v1897_v55 = vmul.f32 %v6556_v15, %v1896_v28  ;;  %v1903_v14 = vmul.f32 %v6558_v39, %v1860_v27  ;;  %vm1909_vm8 = vweird.f32 %v6558_v39  ;;  %v6295_v27 = vld [vmem:[%s9295_s15 + $0x60] sm:$0xff]  ;;  %v6308_v28 = vld [vmem:[%s9295_s15 + $0xc8] sm:$0xff] }
 0x6d1   : > { %6559 = vrsqrt.f32 %v1861_v0  ;;  %vm1910_vm10 = vmor %vm1908_vm9, %vm1909_vm8  ;;  %vm1918_vm12 = vweird.f32 %v1861_v0  ;;  %2785 = vmatpush.bf16.msra.mxu3 %v6304_v48 }
 0x6d2   : > { %v1901_v43 = vsel %vm1900_vm3, %v6556_v15, %v1897_v55  ;;  %v1904_v46 = vmul.f32 %v6558_v39, %v1903_v14  ;;  %v6310_v15 = vld [vmem:[%s9295_s15 + $0xd8] sm:$0xff]  ;;  %v6301_v55 = vld [vmem:[%s9295_s15 + $0x90] sm:$0xff] }
 0x6d3   : > { %v1925_v50 = vmul.f32 %v1901_v43, %v7555_v34  ;;  %2761 = vmatpush.bf16.msrb.mxu2 %v6296_v18  ;;  %v6283_v43 = vld [vmem:[%s9295_s15] sm:$0xff] }
 0x6d4   : > { %v1905_v54 = vmul.f32 0.5, %v1904_v46  ;;  %v6307_v46 = vld [vmem:[%s9295_s15 + $0xc0] sm:$0xff] }
 0x6d5   : > { %v1934_v56 = vmul.f32 %v7770_v58, %v1925_v50  ;;  %2786 = vmatpush.bf16.msra.mxu3 %v6303_v30 }
 0x6d6   : > { %v1906_v59 = vsub.f32 1.5, %v1905_v54 }
 0x6d7   : > { %v6560_v60 = vpop.eup %6559  ;;  %v1943_v52 = vadd.f32 %v7777_v3, %v1934_v56  ;;  %2762 = vmatpush.bf16.msrb.mxu2 %v6295_v27  ;;  %v6292_v56 = vld [vmem:[%s9295_s15 + $0x48] sm:$0xff] }
 0x6d8   : > { %v1907_v62 = vmul.f32 %v6558_v39, %v1906_v59  ;;  %v1913_v63 = vmul.f32 %v6560_v60, %v1861_v0  ;;  %vm1919_vm11 = vweird.f32 %v6560_v60  ;;  %v6293_v0 = vld [vmem:[%s9295_s15 + $0x50] sm:$0xff]  ;;  %v6300_v59 = vld [vmem:[%s9295_s15 + $0x88] sm:$0xff] }
 0x6d9   : > { %v1947_v2 = vpack.c.bf16 %v1943_v52, %v1942_v61  ;;  %vm1920_vm13 = vmor %vm1918_vm12, %vm1919_vm11  ;;  %2787 = vmatpush.bf16.msra.mxu3 %v6302_v35  ;;  %v7902_v61 = vperm.slane %v1981_v32, 1 }
 0x6da   : > { %v1914_v57 = vmul.f32 %v6560_v60, %v1913_v63  ;;  %v1911_v34 = vsel %vm1910_vm10, %v6558_v39, %v1907_v62  ;;  %v7872_v39 = vperm.slane %v1981_v32, 0  ;;  %v7906_v62 = vperm.slane %v1981_v32, 2 }
 0x6db   : > { %2164 = vmatmul.bf16.gmra.mxu1 %v1947_v2  ;;  %2188 = vmatmul.bf16.gmra.mxu2 %v1947_v2  ;;  %v1926_v40 = vmul.f32 %v1911_v34, %v7561_v37  ;;  %v6290_v37 = vld [vmem:[%s9295_s15 + $0x38] sm:$0xff]  ;;  %v6291_v34 = vld [vmem:[%s9295_s15 + $0x40] sm:$0xff] }
 0x6dc   : > { %v1915_v4 = vmul.f32 0.5, %v1914_v57  ;;  %2212 = vmatmul.bf16.gmra.mxu3 %v1947_v2  ;;  %2236 = vmatmul.bf16.gmra.mxu0 %v1947_v2 }
 0x6dd   : > { %v1935_v7 = vmul.f32 %v7770_v58, %v1926_v40  ;;  %2735 = vmatpush.bf16.msrb.mxu1 %v6290_v37  ;;  %2763 = vmatpush.bf16.msrb.mxu2 %v6294_v45 }
 0x6de   : > { %v1916_v6 = vsub.f32 1.5, %v1915_v4  ;;  %2788 = vmatpush.bf16.msra.mxu3 %v6301_v55  ;;  %v6299_v4 = vld [vmem:[%s9295_s15 + $0x80] sm:$0xff] }
 0x6df   : > { %v1944_v10 = vadd.f32 %v7777_v3, %v1935_v7 }
 0x6e0   : > { %v1917_v53 = vmul.f32 %v6560_v60, %v1916_v6 }
 0x6e1   : > { %2764 = vmatpush.bf16.msrb.mxu2 %v6293_v0 }
 0x6e2   : > { %v1921_v44 = vsel %vm1920_vm13, %v6560_v60, %v1917_v53  ;;  %2789 = vmatpush.bf16.msra.mxu3 %v6300_v59 }
 0x6e3   : > { %v1927_v49 = vmul.f32 %v1921_v44, %v7567_v29  ;;  %v6314_v29 = vld [vmem:[%s9295_s15 + $0xf8] sm:$0xff] }
 0x6e4   : > { %2807 = vmatpush.bf16.msrb.mxu0 %v6314_v29 }
 0x6e5   : > { %v1936_v9 = vmul.f32 %v7770_v58, %v1927_v49  ;;  %v6289_v58 = vld [vmem:[%s9295_s15 + $0x30] sm:$0xff]  ;;  %2765 = vmatpush.bf16.msrb.mxu2 %v6292_v56 }
 0x6e6   : > { %2736 = vmatpush.bf16.msrb.mxu1 %v6289_v58  ;;  %2790 = vmatpush.bf16.msra.mxu3 %v6299_v4 }
 0x6e7   : > { %v1945_v22 = vadd.f32 %v7777_v3, %v1936_v9  ;;  %v6313_v3 = vld [vmem:[%s9295_s15 + $0xf0] sm:$0xff] }
 0x6e8   : > { %2808 = vmatpush.bf16.msrb.mxu0 %v6313_v3 }
 0x6e9   : > { %v1948_v16 = vpack.c.bf16 %v1945_v22, %v1944_v10  ;;  %2766 = vmatpush.bf16.msrb.mxu2 %v6291_v34 }
 0x6ea   : > { %2737 = vmatpush.bf16.msrb.mxu1 %v6288_v38 }
 0x6eb   : > { %2169 = vmatmul.bf16.gmra.mxu1 %v1948_v16  ;;  %2193 = vmatmul.bf16.gmra.mxu2 %v1948_v16 }
 0x6ec   : > { %2217 = vmatmul.bf16.gmra.mxu3 %v1948_v16  ;;  %2241 = vmatmul.bf16.gmra.mxu0 %v1948_v16 }
 0x6ed   : > { %2809 = vmatpush.bf16.msrb.mxu0 %v6312_v17 }
 0x6ee   : > { %2738 = vmatpush.bf16.msrb.mxu1 %v6287_v13 }
 0x6f1   : > { %2810 = vmatpush.bf16.msrb.mxu0 %v6311_v21 }
 0x6f2   : > { %2739 = vmatpush.bf16.msrb.mxu1 %v6286_v25 }
 0x6f5   : > { %2811 = vmatpush.bf16.msrb.mxu0 %v6310_v15 }
 0x6f6   : > { %2740 = vmatpush.bf16.msrb.mxu1 %v6285_v31 }
 0x6f9   : > { %2812 = vmatpush.bf16.msrb.mxu0 %v6309_v24 }
 0x6fa   : > { %2741 = vmatpush.bf16.msrb.mxu1 %v6284_v36 }
 0x6fd   : > { %2813 = vmatpush.bf16.msrb.mxu0 %v6308_v28 }
 0x6fe   : > { %2742 = vmatpush.bf16.msrb.mxu1 %v6283_v43 }
 0x701   : > { %2814 = vmatpush.bf16.msrb.mxu0 %v6307_v46 }
 0x741   : > { %v2160_v14 = vpop.f32.mrf.mxu1 }
 0x742   : > { %v7889_v50 = vadd.f32 %v2160_v14, %v7872_v39  ;;  %v2232_v51 = vpop.f32.mrf.mxu0 }
 0x743   : > { %v7892_v54 = vadd.f32 %v2232_v51, %v7874_v42 }
 0x744   : > { %v2247_v60 = vmul.f32 %v7889_v50, %v7889_v50 }
 0x745   : > { %v2250_v52 = vmul.f32 %v7892_v54, %v7892_v54 }
 0x746   : > { %v2271_v63 = vmul.f32 %v2247_v60, %v7889_v50 }
 0x747   : > { %v2274_v2 = vmul.f32 %v2250_v52, %v7892_v54  ;;  %v2184_v57 = vpop.f32.mrf.mxu2 }
 0x748   : > { %v2295_v6 = vmul.f32 0.044715, %v2271_v63  ;;  %v7917_v40 = vadd.f32 %v2184_v57, %v7902_v61  ;;  %v2208_v53 = vpop.f32.mrf.mxu3 }
 0x749   : > { %v2298_v44 = vmul.f32 0.044715, %v2274_v2  ;;  %v7920_v49 = vadd.f32 %v2208_v53, %v7906_v62  ;;  %v2162_v7 = vpop.f32.mrf.mxu1 }
 0x74a   : > { %v2319_v9 = vadd.f32 %v2295_v6, %v7889_v50  ;;  %v2248_v10 = vmul.f32 %v7917_v40, %v7917_v40  ;;  %v7926_v22 = vadd.f32 %v2162_v7, %v7872_v39  ;;  %v2234_v16 = vpop.f32.mrf.mxu0 }
 0x74b   : > { %v2322_v37 = vadd.f32 %v2298_v44, %v7892_v54  ;;  %v2249_v29 = vmul.f32 %v7920_v49, %v7920_v49  ;;  %v7932_v58 = vadd.f32 %v2234_v16, %v7874_v42 }
 0x74c   : > { %v2343_v3 = vmul.f32 0.7978846, %v2319_v9  ;;  %v2272_v12 = vmul.f32 %v2248_v10, %v7917_v40  ;;  %v2251_v41 = vmul.f32 %v7926_v22, %v7926_v22 }
 0x74d   : > { %v2346_v38 = vmul.f32 0.7978846, %v2322_v37  ;;  %v2273_v17 = vmul.f32 %v2249_v29, %v7920_v49  ;;  %v2254_v19 = vmul.f32 %v7932_v58, %v7932_v58 }
 0x74e   : > { %6561 = vtanh.f32 %v2343_v3  ;;  %v2296_v26 = vmul.f32 0.044715, %v2272_v12  ;;  %v2275_v13 = vmul.f32 %v2251_v41, %v7926_v22 }
 0x74f   : > { %6563 = vtanh.f32 %v2346_v38  ;;  %v2297_v21 = vmul.f32 0.044715, %v2273_v17  ;;  %v2278_v18 = vmul.f32 %v2254_v19, %v7932_v58  ;;  %v2186_v48 = vpop.f32.mrf.mxu2 }
 0x750   : > { %v2320_v25 = vadd.f32 %v2296_v26, %v7917_v40  ;;  %v2299_v15 = vmul.f32 0.044715, %v2275_v13  ;;  %v7944_v27 = vadd.f32 %v2186_v48, %v7902_v61  ;;  %v2210_v30 = vpop.f32.mrf.mxu3 }
 0x751   : > { %v2321_v31 = vadd.f32 %v2297_v21, %v7920_v49  ;;  %v2302_v24 = vmul.f32 0.044715, %v2278_v18  ;;  %v7948_v32 = vadd.f32 %v2210_v30, %v7906_v62 }
 0x752   : > { %v2344_v45 = vmul.f32 0.7978846, %v2320_v25  ;;  %v2323_v35 = vadd.f32 %v2299_v15, %v7926_v22  ;;  %v2252_v36 = vmul.f32 %v7944_v27, %v7944_v27 }
 0x753   : > { %v2345_v28 = vmul.f32 0.7978846, %v2321_v31  ;;  %v2326_v0 = vadd.f32 %v2302_v24, %v7932_v58  ;;  %v2253_v55 = vmul.f32 %v7948_v32, %v7948_v32 }
 0x754   : > { %v6562_v14 = vpop.eup %6561  ;;  %6565 = vtanh.f32 %v2344_v45  ;;  %v2347_v43 = vmul.f32 0.7978846, %v2323_v35  ;;  %v2276_v46 = vmul.f32 %v2252_v36, %v7944_v27 }
 0x755   : > { %v6564_v51 = vpop.eup %6563  ;;  %6567 = vtanh.f32 %v2345_v28  ;;  %v2350_v56 = vmul.f32 0.7978846, %v2326_v0  ;;  %v2277_v59 = vmul.f32 %v2253_v55, %v7948_v32  ;;  %v2391_v60 = vadd.f32 1.0, %v6562_v14 }
 0x756   : > { %v2394_v52 = vadd.f32 1.0, %v6564_v51  ;;  %6569 = vtanh.f32 %v2347_v43  ;;  %v2300_v63 = vmul.f32 0.044715, %v2276_v46 }
 0x757   : > { %6571 = vtanh.f32 %v2350_v56  ;;  %v2301_v2 = vmul.f32 0.044715, %v2277_v59  ;;  %v2415_v7 = vmul.f32 0.5, %v2391_v60 }
 0x758   : > { %v2324_v57 = vadd.f32 %v2300_v63, %v7944_v27  ;;  %v2165_v34 = vpop.f32.mrf.mxu1  ;;  %v2418_v9 = vmul.f32 0.5, %v2394_v52 }
 0x759   : > { %v2325_v4 = vadd.f32 %v2301_v2, %v7948_v32  ;;  %v7961_v6 = vadd.f32 %v2165_v34, %v7872_v39  ;;  %v2237_v53 = vpop.f32.mrf.mxu0  ;;  %v2439_v21 = vmul.f32 %v2415_v7, %v7889_v50 }
 0x75a   : > { %v6566_v44 = vpop.eup %6565  ;;  %v2348_v10 = vmul.f32 0.7978846, %v2324_v57  ;;  %v7964_v16 = vadd.f32 %v2237_v53, %v7874_v42  ;;  %v2442_v18 = vmul.f32 %v2418_v9, %v7892_v54 }
 0x75b   : > { %v6568_v37 = vpop.eup %6567  ;;  %v2392_v29 = vadd.f32 1.0, %v6566_v44  ;;  %v2349_v3 = vmul.f32 0.7978846, %v2325_v4  ;;  %v2255_v12 = vmul.f32 %v7961_v6, %v7961_v6 }
 0x75c   : > { %v6570_v41 = vpop.eup %6569  ;;  %v2393_v38 = vadd.f32 1.0, %v6568_v37  ;;  %6573 = vtanh.f32 %v2348_v10  ;;  %v2258_v17 = vmul.f32 %v7964_v16, %v7964_v16 }
 0x75d   : > { %v6572_v19 = vpop.eup %6571  ;;  %6575 = vtanh.f32 %v2349_v3  ;;  %v2279_v26 = vmul.f32 %v2255_v12, %v7961_v6  ;;  %v2395_v13 = vadd.f32 1.0, %v6570_v41  ;;  %v2416_v30 = vmul.f32 0.5, %v2392_v29 }
 0x75e   : > { %v2398_v48 = vadd.f32 1.0, %v6572_v19  ;;  %v2282_v25 = vmul.f32 %v2258_v17, %v7964_v16  ;;  %v2189_v15 = vpop.f32.mrf.mxu2  ;;  %v2417_v36 = vmul.f32 0.5, %v2393_v38 }
 0x75f   : > { %v2303_v31 = vmul.f32 0.044715, %v2279_v26  ;;  %v7975_v24 = vadd.f32 %v2189_v15, %v7902_v61  ;;  %v2213_v45 = vpop.f32.mrf.mxu3  ;;  %v2419_v35 = vmul.f32 0.5, %v2395_v13  ;;  %v2440_v29 = vmul.f32 %v2416_v30, %v7917_v40 }
 0x760   : > { %v2422_v28 = vmul.f32 0.5, %v2398_v48  ;;  %v2306_v0 = vmul.f32 0.044715, %v2282_v25  ;;  %v7978_v55 = vadd.f32 %v2213_v45, %v7906_v62  ;;  %v2167_v50 = vpop.f32.mrf.mxu1  ;;  %v2441_v3 = vmul.f32 %v2417_v36, %v7920_v49 }
 0x761   : > { %v2327_v54 = vadd.f32 %v2303_v31, %v7961_v6  ;;  %v2256_v14 = vmul.f32 %v7975_v24, %v7975_v24  ;;  %v7984_v43 = vadd.f32 %v2167_v50, %v7872_v39  ;;  %v2239_v46 = vpop.f32.mrf.mxu0  ;;  %v2443_v51 = vmul.f32 %v2419_v35, %v7926_v22 }
 0x762   : > { %v6574_v56 = vpop.eup %6573  ;;  %v2446_v59 = vmul.f32 %v2422_v28, %v7932_v58  ;;  %v2330_v60 = vadd.f32 %v2306_v0, %v7964_v16  ;;  %v2257_v52 = vmul.f32 %v7978_v55, %v7978_v55  ;;  %v7992_v63 = vadd.f32 %v2239_v46, %v7874_v42 }
 0x763   : > { %v6576_v2 = vpop.eup %6575  ;;  %v2396_v57 = vadd.f32 1.0, %v6574_v56  ;;  %v2280_v34 = vmul.f32 %v2256_v14, %v7975_v24  ;;  %v2259_v4 = vmul.f32 %v7984_v43, %v7984_v43  ;;  %v2463_v53 = vpack.c.bf16 %v2443_v51, %v2439_v21 }
 0x764   : > { %v2466_v22 = vpack.c.bf16 %v2446_v59, %v2442_v18  ;;  %v2354_v44 = vmul.f32 0.7978846, %v2330_v60  ;;  %v2281_v58 = vmul.f32 %v2257_v52, %v7978_v55  ;;  %v2262_v7 = vmul.f32 %v7992_v63, %v7992_v63 }
 0x765   : > { %v2420_v9 = vmul.f32 0.5, %v2396_v57  ;;  %v2283_v10 = vmul.f32 %v2259_v4, %v7984_v43  ;;  %2743 = vmatmul.bf16.vlgmr.msrb.gmra.mxu1 %v2463_v53  ;;  %v2397_v37 = vadd.f32 1.0, %v6576_v2  ;;  %v2304_v12 = vmul.f32 0.044715, %v2280_v34 }
 0x766   : > { %v2286_v41 = vmul.f32 %v2262_v7, %v7992_v63  ;;  %2815 = vmatmul.bf16.vlgmr.msrb.gmra.mxu0 %v2466_v22  ;;  %v2191_v38 = vpop.f32.mrf.mxu2  ;;  %6577 = vtanh.f32 %v2354_v44  ;;  %v2305_v19 = vmul.f32 0.044715, %v2281_v58  ;;  %v2351_v49 = vmul.f32 0.7978846, %v2327_v54 }
 0x767   : > { %v2444_v17 = vmul.f32 %v2420_v9, %v7944_v27  ;;  %v8006_v26 = vadd.f32 %v2191_v38, %v7902_v61  ;;  %v2215_v13 = vpop.f32.mrf.mxu3  ;;  %v2421_v48 = vmul.f32 0.5, %v2397_v37  ;;  %v2307_v15 = vmul.f32 0.044715, %v2283_v10 }
 0x768   : > { %v2310_v21 = vmul.f32 0.044715, %v2286_v41  ;;  %v8009_v18 = vadd.f32 %v2215_v13, %v7906_v62  ;;  %v2170_v40 = vpop.f32.mrf.mxu1  ;;  %v2328_v45 = vadd.f32 %v2304_v12, %v7975_v24  ;;  %v2329_v0 = vadd.f32 %v2305_v19, %v7978_v55 }
 0x769   : > { %v2464_v25 = vpack.c.bf16 %v2444_v17, %v2440_v29  ;;  %v2260_v30 = vmul.f32 %v8006_v26, %v8006_v26  ;;  %v8014_v27 = vadd.f32 %v2170_v40, %v7872_v39  ;;  %v2242_v31 = vpop.f32.mrf.mxu0  ;;  %v2445_v14 = vmul.f32 %v2421_v48, %v7948_v32 }
 0x76a   : > { %v2334_v35 = vadd.f32 %v2310_v21, %v7992_v63  ;;  %v2261_v36 = vmul.f32 %v8009_v18, %v8009_v18  ;;  %v8021_v28 = vadd.f32 %v2242_v31, %v7874_v42  ;;  %v2331_v2 = vadd.f32 %v2307_v15, %v7984_v43 }
 0x76b   : > { %v2284_v50 = vmul.f32 %v2260_v30, %v8006_v26  ;;  %v2263_v54 = vmul.f32 %v8014_v27, %v8014_v27  ;;  %2767 = vmatmul.bf16.vlgmr.msrb.gmra.mxu2 %v2464_v25  ;;  %v2465_v52 = vpack.c.bf16 %v2445_v14, %v2441_v3  ;;  %v2352_v57 = vmul.f32 0.7978846, %v2328_v45 }
 0x76c   : > { %v2358_v46 = vmul.f32 0.7978846, %v2334_v35  ;;  %v2285_v51 = vmul.f32 %v2261_v36, %v8009_v18  ;;  %v2266_v56 = vmul.f32 %v8021_v28, %v8021_v28  ;;  %v6578_v59 = vpop.eup %6577  ;;  %6579 = vtanh.f32 %v2351_v49 }
 0x76d   : > { %v2287_v60 = vmul.f32 %v2263_v54, %v8014_v27  ;;  %v2308_v34 = vmul.f32 0.044715, %v2284_v50  ;;  %v2353_v22 = vmul.f32 0.7978846, %v2329_v0  ;;  %2791 = vmatmul.bf16.vlgmr.msra.gmra.mxu3 %v2465_v52  ;;  %v2355_v7 = vmul.f32 0.7978846, %v2331_v2 }
 0x76e   : > { %v2290_v4 = vmul.f32 %v2266_v56, %v8021_v28  ;;  %v2194_v53 = vpop.f32.mrf.mxu2  ;;  %v2309_v9 = vmul.f32 0.044715, %v2285_v51  ;;  %6581 = vtanh.f32 %v2358_v46  ;;  %v2402_v17 = vadd.f32 1.0, %v6578_v59 }
 0x76f   : > { %v2311_v32 = vmul.f32 0.044715, %v2287_v60  ;;  %v8035_v44 = vadd.f32 %v2194_v53, %v7902_v61  ;;  %v2218_v58 = vpop.f32.mrf.mxu3  ;;  %v2332_v19 = vadd.f32 %v2308_v34, %v8006_v26  ;;  %6583 = vtanh.f32 %v2355_v7 }
 0x770   : > { %v2314_v10 = vmul.f32 0.044715, %v2290_v4  ;;  %v8038_v37 = vadd.f32 %v2218_v58, %v7906_v62  ;;  %v2172_v29 = vpop.f32.mrf.mxu1  ;;  %6585 = vtanh.f32 %v2352_v57  ;;  %v2333_v31 = vadd.f32 %v2309_v9, %v8009_v18 }
 0x771   : > { %v2335_v3 = vadd.f32 %v2311_v32, %v8014_v27  ;;  %v2264_v12 = vmul.f32 %v8035_v44, %v8035_v44  ;;  %v8044_v41 = vadd.f32 %v2172_v29, %v7872_v39  ;;  %v2244_v38 = vpop.f32.mrf.mxu0  ;;  %6587 = vtanh.f32 %v2353_v22 }
 0x772   : > { %v2338_v13 = vadd.f32 %v2314_v10, %v8021_v28  ;;  %v2265_v21 = vmul.f32 %v8038_v37, %v8038_v37  ;;  %v8051_v40 = vadd.f32 %v2244_v38, %v7874_v42  ;;  %v6580_v39 = vpop.eup %6579  ;;  %v2356_v36 = vmul.f32 0.7978846, %v2332_v19 }
 0x773   : > { %v2359_v48 = vmul.f32 0.7978846, %v2335_v3  ;;  %v2288_v49 = vmul.f32 %v2264_v12, %v8035_v44  ;;  %v2267_v25 = vmul.f32 %v8044_v41, %v8044_v41  ;;  %v2399_v54 = vadd.f32 1.0, %v6580_v39 }
 0x774   : > { %v2289_v15 = vmul.f32 %v2265_v21, %v8038_v37  ;;  %v2270_v30 = vmul.f32 %v8051_v40, %v8051_v40  ;;  %v2362_v45 = vmul.f32 0.7978846, %v2338_v13  ;;  %v6582_v35 = vpop.eup %6581  ;;  %v2426_v14 = vmul.f32 0.5, %v2402_v17 }
 0x775   : > { %v2291_v42 = vmul.f32 %v2267_v25, %v8044_v41  ;;  %6589 = vtanh.f32 %v2359_v48  ;;  %v2312_v46 = vmul.f32 0.044715, %v2288_v49  ;;  %v2406_v57 = vadd.f32 1.0, %v6582_v35  ;;  %v6584_v34 = vpop.eup %6583 }
 0x776   : > { %v2294_v0 = vmul.f32 %v2270_v30, %v8051_v40  ;;  %v2196_v50 = vpop.f32.mrf.mxu2  ;;  %v2313_v60 = vmul.f32 0.044715, %v2289_v15  ;;  %v2357_v4 = vmul.f32 0.7978846, %v2333_v31  ;;  %6591 = vtanh.f32 %v2362_v45  ;;  %v6586_v32 = vpop.eup %6585 }
 0x777   : > { %v2315_v51 = vmul.f32 0.044715, %v2291_v42  ;;  %v8063_v56 = vadd.f32 %v2196_v50, %v7902_v61  ;;  %v2220_v59 = vpop.f32.mrf.mxu3  ;;  %v2403_v7 = vadd.f32 1.0, %v6584_v34  ;;  %v2423_v9 = vmul.f32 0.5, %v2399_v54  ;;  %v6588_v10 = vpop.eup %6587 }
 0x778   : > { %v2318_v52 = vmul.f32 0.044715, %v2294_v0  ;;  %v8066_v2 = vadd.f32 %v2220_v59, %v7906_v62  ;;  %v2430_v3 = vmul.f32 0.5, %v2406_v57  ;;  %v2450_v12 = vmul.f32 %v2426_v14, %v7964_v16 }
 0x779   : > { %v2339_v53 = vadd.f32 %v2315_v51, %v8044_v41  ;;  %v2268_v22 = vmul.f32 %v8063_v56, %v8063_v56  ;;  %v2336_v38 = vadd.f32 %v2312_v46, %v8035_v44  ;;  %v2337_v17 = vadd.f32 %v2313_v60, %v8038_v37 }
 0x77a   : > { %v2342_v58 = vadd.f32 %v2318_v52, %v8051_v40  ;;  %v2269_v61 = vmul.f32 %v8066_v2, %v8066_v2  ;;  %v2427_v13 = vmul.f32 0.5, %v2403_v7  ;;  %v2454_v25 = vmul.f32 %v2430_v3, %v7992_v63 }
 0x77b   : > { %v2363_v62 = vmul.f32 0.7978846, %v2339_v53  ;;  %v2292_v29 = vmul.f32 %v2268_v22, %v8063_v56  ;;  %v6590_v21 = vpop.eup %6589  ;;  %6593 = vtanh.f32 %v2356_v36  ;;  %v2447_v15 = vmul.f32 %v2423_v9, %v7961_v6 }
 0x77c   : > { %v2293_v19 = vmul.f32 %v2269_v61, %v8066_v2  ;;  %v2366_v48 = vmul.f32 0.7978846, %v2342_v58  ;;  %v2451_v30 = vmul.f32 %v2427_v13, %v7984_v43  ;;  %6595 = vtanh.f32 %v2357_v4  ;;  %v6592_v16 = vpop.eup %6591 }
 0x77d   : > { %v2316_v49 = vmul.f32 0.044715, %v2292_v29  ;;  %v2470_v45 = vpack.c.bf16 %v2454_v25, %v2450_v12  ;;  %v2400_v42 = vadd.f32 1.0, %v6586_v32  ;;  %6597 = vtanh.f32 %v2363_v62 }
 0x77e   : > { %v2317_v39 = vmul.f32 0.044715, %v2293_v19  ;;  %v2467_v0 = vpack.c.bf16 %v2451_v30, %v2447_v15  ;;  %v2360_v50 = vmul.f32 0.7978846, %v2336_v38  ;;  %v2401_v63 = vadd.f32 1.0, %v6588_v10 }
 0x77f   : > { %v2340_v31 = vadd.f32 %v2316_v49, %v8063_v56  ;;  %2820 = vmatmul.bf16.gmra.mxu0 %v2470_v45  ;;  %6599 = vtanh.f32 %v2366_v48  ;;  %v2361_v36 = vmul.f32 0.7978846, %v2337_v17  ;;  %v2424_v43 = vmul.f32 0.5, %v2400_v42 }
 0x780   : > { %v2341_v35 = vadd.f32 %v2317_v39, %v8066_v2  ;;  %2748 = vmatmul.bf16.gmra.mxu1 %v2467_v0  ;;  %v2407_v46 = vadd.f32 1.0, %v6590_v21  ;;  %v2410_v60 = vadd.f32 1.0, %v6592_v16  ;;  %v2425_v34 = vmul.f32 0.5, %v2401_v63  ;;  %v6478_v63 = vld [vmem:[%s9296_s16] ss:$0 sm:$0xff] }
 0x781   : > { %v2364_v54 = vmul.f32 0.7978846, %v2340_v31  ;;  %v6594_v6 = vpop.eup %6593  ;;  %v2448_v32 = vmul.f32 %v2424_v43, %v7975_v24 }
 0x782   : > { %v2365_v14 = vmul.f32 0.7978846, %v2341_v35  ;;  %v6596_v51 = vpop.eup %6595  ;;  %v2404_v59 = vadd.f32 1.0, %v6594_v6  ;;  %v2431_v61 = vmul.f32 0.5, %v2407_v46  ;;  %v2434_v62 = vmul.f32 0.5, %v2410_v60 }
 0x783   : > { %6601 = vtanh.f32 %v2364_v54  ;;  %v6598_v52 = vpop.eup %6597  ;;  %v2405_v57 = vadd.f32 1.0, %v6596_v51  ;;  %v2449_v3 = vmul.f32 %v2425_v34, %v7978_v55 }
 0x784   : > { %6603 = vtanh.f32 %v2365_v14  ;;  %v2428_v4 = vmul.f32 0.5, %v2404_v59  ;;  %v2411_v53 = vadd.f32 1.0, %v6598_v52  ;;  %v2455_v49 = vmul.f32 %v2431_v61, %v8014_v27 }
 0x785   : > { %6605 = vtanh.f32 %v2360_v50  ;;  %v6600_v22 = vpop.eup %6599  ;;  %v2429_v58 = vmul.f32 0.5, %v2405_v57 }
 0x786   : > { %6607 = vtanh.f32 %v2361_v36  ;;  %v2452_v7 = vmul.f32 %v2428_v4, %v8006_v26  ;;  %v2435_v9 = vmul.f32 0.5, %v2411_v53  ;;  %v2414_v10 = vadd.f32 1.0, %v6600_v22 }
 0x787   : > { %v2453_v12 = vmul.f32 %v2429_v58, %v8009_v18  ;;  %v2458_v26 = vmul.f32 %v2434_v62, %v8021_v28 }
 0x788   : > { %v2468_v17 = vpack.c.bf16 %v2452_v7, %v2448_v32  ;;  %v2459_v19 = vmul.f32 %v2435_v9, %v8044_v41  ;;  %v2438_v13 = vmul.f32 0.5, %v2414_v10 }
 0x789   : > { %v6602_v29 = vpop.eup %6601  ;;  %v2469_v48 = vpack.c.bf16 %v2453_v12, %v2449_v3 }
 0x78a   : > { %v6604_v38 = vpop.eup %6603  ;;  %2772 = vmatmul.bf16.gmra.mxu2 %v2468_v17  ;;  %v2462_v25 = vmul.f32 %v2438_v13, %v8051_v40  ;;  %v2412_v39 = vadd.f32 1.0, %v6602_v29  ;;  %v2471_v15 = vpack.c.bf16 %v2459_v19, %v2455_v49 }
 0x78b   : > { %v6606_v21 = vpop.eup %6605  ;;  %2796 = vmatmul.bf16.gmra.mxu3 %v2469_v48  ;;  %v2413_v55 = vadd.f32 1.0, %v6604_v38 }
 0x78c   : > { %v6608_v24 = vpop.eup %6607  ;;  %v2474_v18 = vpack.c.bf16 %v2462_v25, %v2458_v26  ;;  %v2408_v30 = vadd.f32 1.0, %v6606_v21  ;;  %v2436_v31 = vmul.f32 0.5, %v2412_v39 }
 0x78d   : > { %v2409_v16 = vadd.f32 1.0, %v6608_v24  ;;  %v2437_v41 = vmul.f32 0.5, %v2413_v55 }
 0x78e   : > { %v2432_v45 = vmul.f32 0.5, %v2408_v30  ;;  %v2460_v35 = vmul.f32 %v2436_v31, %v8063_v56 }
 0x78f   : > { %2825 = vmatmul.bf16.gmra.mxu0 %v2474_v18  ;;  %v2433_v42 = vmul.f32 0.5, %v2409_v16  ;;  %v2461_v27 = vmul.f32 %v2437_v41, %v8066_v2 }
 0x790   : > { %2753 = vmatmul.bf16.gmra.mxu1 %v2471_v15  ;;  %v2456_v28 = vmul.f32 %v2432_v45, %v8035_v44 }
 0x791   : > { %v2457_v40 = vmul.f32 %v2433_v42, %v8038_v37 }
 0x792   : > { %v2472_v0 = vpack.c.bf16 %v2460_v35, %v2456_v28 }
 0x793   : > { %v2473_v50 = vpack.c.bf16 %v2461_v27, %v2457_v40 }
 0x79a   : > { %2777 = vmatmul.bf16.gmra.mxu2 %v2472_v0 }
 0x79b   : > { %2801 = vmatmul.bf16.gmra.mxu3 %v2473_v50 }
 0x7e2   : > { %v2744_v54 = vpop.f32.mrf.mxu1 }
 0x7e3   : > { %v2745_v36 = vadd.f32 %v6478_v63, %v2744_v54  ;;  %v2816_v43 = vpop.f32.mrf.mxu0 }
 0x7ea   : > { %v2746_v56 = vpop.f32.mrf.mxu1 }
 0x7eb   : > { %v2747_v51 = vadd.f32 %v6478_v63, %v2746_v56  ;;  %v2818_v34 = vpop.f32.mrf.mxu0 }
 0x7ee   : > { %v2768_v14 = vpop.f32.mrf.mxu2 }
 0x7ef   : > { %v2769_v6 = vadd.f32 %v2768_v14, %v2745_v36 }
 0x7f0   : > { %v2792_v46 = vpop.f32.mrf.mxu3 }
 0x7f1   : > { %v2793_v2 = vadd.f32 %v2792_v46, %v2769_v6 }
 0x7f3   : > { %v2817_v44 = vadd.f32 %v2816_v43, %v2793_v2 }
 0x7f5   : > { %v8100_v60 = vadd.f32 %v2817_v44, %v7517_v47 }
 0x7f6   : > { %v2770_v59 = vpop.f32.mrf.mxu2 }
 0x7f7   : > { %v2771_v37 = vadd.f32 %v2770_v59, %v2747_v51  ;;  %2841 = vadd.xlane.f32.xlu1 %v8100_v60 }
 0x7f8   : > { %v2794_v52 = vpop.f32.mrf.mxu3 }
 0x7f9   : > { %v2795_v57 = vadd.f32 %v2794_v52, %v2771_v37 }
 0x7fb   : > { %v2819_v4 = vadd.f32 %v2818_v34, %v2795_v57 }
 0x7fc   : > { %v2821_v32 = vpop.f32.mrf.mxu0 }
 0x7fd   : > { %v8104_v53 = vadd.f32 %v2819_v4, %v7520_v1  ;;  %v2749_v22 = vpop.f32.mrf.mxu1 }
 0x7fe   : > { %v2750_v58 = vadd.f32 %v6478_v63, %v2749_v22  ;;  %v5768_v22 = vld [vmem:[%s9336_s7 + $0x168] sm:$0xf] }
 0x7ff   : > { %2843 = vadd.xlane.f32.xlu2 %v8104_v53 }
 0x804   : > { %v2823_v12 = vpop.f32.mrf.mxu0 }
 0x805   : > { %v2751_v61 = vpop.f32.mrf.mxu1 }
 0x806   : > { %v2752_v29 = vadd.f32 %v6478_v63, %v2751_v61 }
 0x80d   : > { %v2773_v7 = vpop.f32.mrf.mxu2  ;;  %v2754_v19 = vpop.f32.mrf.mxu1 }
 0x80e   : > { %v2774_v9 = vadd.f32 %v2773_v7, %v2750_v58  ;;  %v2797_v10 = vpop.f32.mrf.mxu3  ;;  %v2755_v48 = vadd.f32 %v6478_v63, %v2754_v19  ;;  %v6336_v58 = vld [vmem:[%s9336_s7 + $0x16c] sm:$0xf]  ;;  %v5770_v7 = vld [vmem:[%s9336_s7 + $0x174] sm:$0xf0] }
 0x80f   : > { %v5764_v19 = vld [vmem:[%s9336_s7 + $0x158] sm:$0xf] }
 0x810   : > { %v2798_v47 = vadd.f32 %v2797_v10, %v2774_v9  ;;  %v5776_v9 = vld [vmem:[%s9336_s7 + $0x170] sm:$0xf]  ;;  %v6338_v10 = vld [vmem:[%s9336_s7 + $0x178] sm:$0xf0] }
 0x812   : > { %v2822_v62 = vadd.f32 %v2821_v32, %v2798_v47  ;;  %v6337_v32 = vld [vmem:[%s9336_s7 + $0x170] sm:$0xf0]  ;;  %v5773_v47 = vor.u32 %v6336_v58, %v5770_v7  ;;  %v5710_v58 = vld [vmem:[%s9336_s7 + $0xfc] sm:$0xf0] }
 0x813   : > { %v5769_v61 = vor.u32 %v6337_v32, %v5768_v22  ;;  %v6321_v32 = vld [vmem:[%s9336_s7 + $0xf4] sm:$0xf] }
 0x814   : > { %v8108_v3 = vadd.f32 %v2822_v62, %v7523_v33  ;;  %v2826_v33 = vpop.f32.mrf.mxu0  ;;  %v5777_v62 = vor.u32 %v6338_v10, %v5776_v9  ;;  %3176 = vmatpush.bf16.msra.mxu2 %v5773_v47  ;;  %v5713_v7 = vor.u32 %v6321_v32, %v5710_v58  ;;  %v6323_v9 = vld [vmem:[%s9336_s7 + $0x100] sm:$0xf0]  ;;  %v5696_v47 = vld [vmem:[%s9336_s7 + $0xd8] sm:$0xf] }
 0x815   : > { %v2775_v38 = vpop.f32.mrf.mxu2  ;;  %v2756_v55 = vpop.f32.mrf.mxu1  ;;  %3152 = vmatpush.bf16.msra.mxu1 %v5769_v61  ;;  %v5716_v61 = vld [vmem:[%s9336_s7 + $0xf8] sm:$0xf] }
 0x816   : > { %v2776_v17 = vadd.f32 %v2775_v38, %v2752_v29  ;;  %v2799_v1 = vpop.f32.mrf.mxu3  ;;  %2845 = vadd.xlane.f32.xlu0 %v8108_v3  ;;  %v2757_v18 = vadd.f32 %v6478_v63, %v2756_v55  ;;  %3200 = vmatpush.bf16.msrb.mxu3 %v5777_v62  ;;  %v5756_v29 = vld [vmem:[%s9336_s7 + $0x150] sm:$0xf]  ;;  %v6333_v38 = vld [vmem:[%s9336_s7 + $0x154] sm:$0xf]  ;;  %v5752_v55 = vld [vmem:[%s9336_s7 + $0x140] sm:$0xf]  ;;  %v5717_v10 = vor.u32 %v6323_v9, %v5716_v61 }
 0x817   : > { %v6319_v62 = vld [vmem:[%s9336_s7 + $0xe0] sm:$0xf0] }
 0x818   : > { %v2800_v13 = vadd.f32 %v2799_v1, %v2776_v17  ;;  %v5758_v1 = vld [vmem:[%s9336_s7 + $0x15c] sm:$0xf0] }
 0x81a   : > { %v2824_v21 = vadd.f32 %v2823_v12, %v2800_v13  ;;  %v6334_v12 = vld [vmem:[%s9336_s7 + $0x158] sm:$0xf0]  ;;  %v6335_v13 = vld [vmem:[%s9336_s7 + $0x160] sm:$0xf0] }
 0x81b   : > { %v5757_v17 = vor.u32 %v6334_v12, %v5756_v29  ;;  %v6318_v29 = vld [vmem:[%s9336_s7 + $0xdc] sm:$0xf] }
 0x81c   : > { %v8112_v24 = vadd.f32 %v2824_v21, %v7526_v8  ;;  %v2828_v45 = vpop.f32.mrf.mxu0  ;;  %v5761_v21 = vor.u32 %v6333_v38, %v5758_v1  ;;  %v5697_v38 = vor.u32 %v6319_v62, %v5696_v47  ;;  %v5704_v1 = vld [vmem:[%s9336_s7 + $0xe0] sm:$0xf] }
 0x81d   : > { %v2778_v49 = vpop.f32.mrf.mxu2  ;;  %3153 = vmatpush.bf16.msra.mxu1 %v5757_v17  ;;  %v5698_v17 = vld [vmem:[%s9336_s7 + $0xe4] sm:$0xf0] }
 0x81e   : > { %v2779_v26 = vadd.f32 %v2778_v49, %v2755_v48  ;;  %v2802_v25 = vpop.f32.mrf.mxu3  ;;  %2847 = vadd.xlane.f32.xlu1 %v8112_v24  ;;  %v5765_v48 = vor.u32 %v6335_v13, %v5764_v19  ;;  %3177 = vmatpush.bf16.msra.mxu2 %v5761_v21  ;;  %v5744_v49 = vld [vmem:[%s9336_s7 + $0x138] sm:$0xf]  ;;  %v6320_v19 = vld [vmem:[%s9336_s7 + $0xe8] sm:$0xf0]  ;;  %v5701_v21 = vor.u32 %v6318_v29, %v5698_v17 }
 0x820   : > { %v2803_v39 = vadd.f32 %v2802_v25, %v2779_v26  ;;  %3201 = vmatpush.bf16.msrb.mxu3 %v5765_v48  ;;  %v6331_v26 = vld [vmem:[%s9336_s7 + $0x140] sm:$0xf0]  ;;  %v6330_v25 = vld [vmem:[%s9336_s7 + $0x13c] sm:$0xf]  ;;  %v5705_v48 = vor.u32 %v6320_v19, %v5704_v1 }
 0x822   : > { %v2827_v15 = vadd.f32 %v2826_v33, %v2803_v39  ;;  %v5745_v33 = vor.u32 %v6331_v26, %v5744_v49  ;;  %v5746_v39 = vld [vmem:[%s9336_s7 + $0x144] sm:$0xf0] }
 0x824   : > { %v8116_v30 = vadd.f32 %v2827_v15, %v7529_v11  ;;  %v6332_v15 = vld [vmem:[%s9336_s7 + $0x148] sm:$0xf0]  ;;  %3154 = vmatpush.bf16.msra.mxu1 %v5745_v33 }
 0x825   : > { %v2780_v16 = vpop.f32.mrf.mxu2  ;;  %v6316_v33 = vld [vmem:[%s9336_s7 + $0xc8] sm:$0xf0] }
 0x826   : > { %v2781_v31 = vadd.f32 %v2780_v16, %v2757_v18  ;;  %2849 = vadd.xlane.f32.xlu2 %v8116_v30  ;;  %v2804_v41 = vpop.f32.mrf.mxu3  ;;  %v5749_v18 = vor.u32 %v6330_v25, %v5746_v39  ;;  %v5753_v16 = vor.u32 %v6332_v15, %v5752_v55  ;;  %v5684_v25 = vld [vmem:[%s9336_s7 + $0xc0] sm:$0xf]  ;;  %v6315_v15 = vld [vmem:[%s9336_s7 + $0xc4] sm:$0xf] }
 0x827   : > { %v5685_v55 = vor.u32 %v6316_v33, %v5684_v25 }
 0x828   : > { %v2805_v8 = vadd.f32 %v2804_v41, %v2781_v31  ;;  %3178 = vmatpush.bf16.msra.mxu2 %v5749_v18  ;;  %3202 = vmatpush.bf16.msrb.mxu3 %v5753_v16  ;;  %v5732_v31 = vld [vmem:[%s9336_s7 + $0x120] sm:$0xf]  ;;  %v6328_v41 = vld [vmem:[%s9336_s7 + $0x128] sm:$0xf0]  ;;  %v5686_v18 = vld [vmem:[%s9336_s7 + $0xcc] sm:$0xf0] }
 0x829   : > { %v5692_v16 = vld [vmem:[%s9336_s7 + $0xc8] sm:$0xf] }
 0x82a   : > { %v2829_v42 = vadd.f32 %v2828_v45, %v2805_v8  ;;  %v6327_v8 = vld [vmem:[%s9336_s7 + $0x124] sm:$0xf]  ;;  %v5733_v45 = vor.u32 %v6328_v41, %v5732_v31  ;;  %v5689_v31 = vor.u32 %v6315_v15, %v5686_v18  ;;  %v6317_v41 = vld [vmem:[%s9336_s7 + $0xd0] sm:$0xf0] }
 0x82c   : > { %v8120_v35 = vadd.f32 %v2829_v42, %v7532_v20  ;;  %v5734_v42 = vld [vmem:[%s9336_s7 + $0x12c] sm:$0xf0]  ;;  %3155 = vmatpush.bf16.msra.mxu1 %v5733_v45  ;;  %v5693_v45 = vor.u32 %v6317_v41, %v5692_v16 }
 0x82e   : > { %2851 = vadd.xlane.f32.xlu0 %v8120_v35 }
 0x86a   : > { %v2842_v27 = vpop.xlane.xlu1 %2841 }
 0x86b   : > { %v2853_v28 = vmul.f32 %v2842_v27, %v7032_v23  ;;  %v5740_v27 = vld [vmem:[%s9336_s7 + $0x128] sm:$0xf] }
 0x86d   : > { %v8125_v40 = vsub.f32 %v8100_v60, %v2853_v28  ;;  %v6329_v28 = vld [vmem:[%s9336_s7 + $0x130] sm:$0xf0] }
 0x86f   : > { %v2865_v11 = vmul.f32 %v8125_v40, %v8125_v40 }
 0x871   : > { %2871 = vadd.xlane.f32.xlu1 %v2865_v11  ;;  %v5737_v11 = vor.u32 %v6327_v8, %v5734_v42 }
 0x872   : > { %v2844_v0 = vpop.xlane.xlu2 %2843 }
 0x873   : > { %v2854_v50 = vmul.f32 %v2844_v0, %v7032_v23  ;;  %v5741_v0 = vor.u32 %v6329_v28, %v5740_v27  ;;  %3179 = vmatpush.bf16.msra.mxu2 %v5737_v11 }
 0x875   : > { %v8131_v54 = vsub.f32 %v8104_v53, %v2854_v50  ;;  %3203 = vmatpush.bf16.msrb.mxu3 %v5741_v0  ;;  %v5720_v50 = vld [vmem:[%s9336_s7 + $0x108] sm:$0xf] }
 0x877   : > { %v2866_v20 = vmul.f32 %v8131_v54, %v8131_v54 }
 0x879   : > { %2873 = vadd.xlane.f32.xlu2 %v2866_v20  ;;  %v6325_v20 = vld [vmem:[%s9336_s7 + $0x110] sm:$0xf0] }
 0x889   : > { %v2846_v63 = vpop.xlane.xlu0 %2845 }
 0x88a   : > { %v2855_v36 = vmul.f32 %v2846_v63, %v7032_v23  ;;  %v6324_v63 = vld [vmem:[%s9336_s7 + $0x10c] sm:$0xf] }
 0x88c   : > { %v8137_v14 = vsub.f32 %v8108_v3, %v2855_v36 }
 0x88e   : > { %v2867_v6 = vmul.f32 %v8137_v14, %v8137_v14 }
 0x890   : > { %2875 = vadd.xlane.f32.xlu0 %v2867_v6  ;;  %v5721_v6 = vor.u32 %v6325_v20, %v5720_v50 }
 0x891   : > { %v2848_v43 = vpop.xlane.xlu1 %2847 }
 0x892   : > { %v2856_v56 = vmul.f32 %v2848_v43, %v7032_v23  ;;  %v5722_v43 = vld [vmem:[%s9336_s7 + $0x114] sm:$0xf0]  ;;  %3156 = vmatpush.bf16.msra.mxu1 %v5721_v6  ;;  %v8308_v6 = vld [vmem:[%s9339_s5 + $0x1] ss:$0 sm:$0xff] }
 0x894   : > { %v8143_v46 = vsub.f32 %v8112_v24, %v2856_v56  ;;  %v5728_v56 = vld [vmem:[%s9336_s7 + $0x110] sm:$0xf] }
 0x896   : > { %v2868_v2 = vmul.f32 %v8143_v46, %v8143_v46 }
 0x898   : > { %2877 = vadd.xlane.f32.xlu1 %v2868_v2  ;;  %v6326_v2 = vld [vmem:[%s9336_s7 + $0x118] sm:$0xf0] }
 0x899   : > { %v2850_v51 = vpop.xlane.xlu2 %2849 }
 0x89a   : > { %v2857_v44 = vmul.f32 %v2850_v51, %v7032_v23 }
 0x89c   : > { %v8149_v59 = vsub.f32 %v8116_v30, %v2857_v44  ;;  %v5725_v44 = vor.u32 %v6324_v63, %v5722_v43 }
 0x89e   : > { %v2869_v37 = vmul.f32 %v8149_v59, %v8149_v59  ;;  %3180 = vmatpush.bf16.msra.mxu2 %v5725_v44 }
 0x8a0   : > { %2879 = vadd.xlane.f32.xlu2 %v2869_v37  ;;  %v5729_v37 = vor.u32 %v6326_v2, %v5728_v56 }
 0x8a1   : > { %v2852_v52 = vpop.xlane.xlu0 %2851 }
 0x8a2   : > { %v2858_v57 = vmul.f32 %v2852_v52, %v7032_v23  ;;  %3204 = vmatpush.bf16.msrb.mxu3 %v5729_v37  ;;  %3181 = vmatpush.bf16.msra.mxu2 %v5713_v7 }
 0x8a4   : > { %v8155_v34 = vsub.f32 %v8120_v35, %v2858_v57  ;;  %v5708_v57 = vld [vmem:[%s9336_s7 + $0xf0] sm:$0xf] }
 0x8a6   : > { %v2870_v4 = vmul.f32 %v8155_v34, %v8155_v34  ;;  %3205 = vmatpush.bf16.msrb.mxu3 %v5717_v10  ;;  %3182 = vmatpush.bf16.msra.mxu2 %v5701_v21 }
 0x8a8   : > { %2881 = vadd.xlane.f32.xlu0 %v2870_v4  ;;  %v6322_v4 = vld [vmem:[%s9336_s7 + $0xf8] sm:$0xf0] }
 0x8a9   : > { %v5709_v22 = vor.u32 %v6322_v4, %v5708_v57 }
 0x8aa   : > { %3206 = vmatpush.bf16.msrb.mxu3 %v5705_v48  ;;  %3183 = vmatpush.bf16.msra.mxu2 %v5689_v31 }
 0x8ab   : > { %3157 = vmatpush.bf16.msra.mxu1 %v5709_v22 }
 0x8ae   : > { %3207 = vmatpush.bf16.msrb.mxu3 %v5693_v45 }
 0x8af   : > { %3158 = vmatpush.bf16.msra.mxu1 %v5697_v38 }
 0x8b3   : > { %3159 = vmatpush.bf16.msra.mxu1 %v5685_v55 }
 0x8e4   : > { %v2872_v36 = vpop.xlane.xlu1 %2871 }
 0x8e5   : > { %v2883_v51 = vmul.f32 %v2872_v36, %v7032_v23 }
 0x8e7   : > { %v2889_v52 = vadd.f32 1e-06, %v2883_v51  ;;  %v8314_v51 = vld [vmem:[%s9340_s6 + $0x1] ss:$0 sm:$0xff] }
 0x8e9   : > { %6609 = vrsqrt.f32 %v2889_v52  ;;  %vm2901_vm15 = vweird.f32 %v2889_v52 }
 0x8ec   : > { %v2874_v12 = vpop.xlane.xlu2 %2873 }
 0x8ed   : > { %v2884_v13 = vmul.f32 %v2874_v12, %v7032_v23 }
 0x8ef   : > { %v6610_v49 = vpop.eup %6609  ;;  %v2890_v26 = vadd.f32 1e-06, %v2884_v13 }
 0x8f0   : > { %v2896_v39 = vmul.f32 %v6610_v49, %v2889_v52  ;;  %vm2902_vm14 = vweird.f32 %v6610_v49 }
 0x8f1   : > { %6611 = vrsqrt.f32 %v2890_v26  ;;  %vm2903_vm0 = vmor %vm2901_vm15, %vm2902_vm14  ;;  %vm2911_vm2 = vweird.f32 %v2890_v26 }
 0x8f2   : > { %v2897_v8 = vmul.f32 %v6610_v49, %v2896_v39 }
 0x8f4   : > { %v2898_v42 = vmul.f32 0.5, %v2897_v8 }
 0x8f6   : > { %v2899_v27 = vsub.f32 1.5, %v2898_v42 }
 0x8f7   : > { %v6612_v28 = vpop.eup %6611 }
 0x8f8   : > { %v2900_v11 = vmul.f32 %v6610_v49, %v2899_v27  ;;  %v2906_v0 = vmul.f32 %v6612_v28, %v2890_v26  ;;  %vm2912_vm1 = vweird.f32 %v6612_v28 }
 0x8f9   : > { %vm2913_vm3 = vmor %vm2911_vm2, %vm2912_vm1 }
 0x8fa   : > { %v2907_v50 = vmul.f32 %v6612_v28, %v2906_v0  ;;  %v2904_v20 = vsel %vm2903_vm0, %v6610_v49, %v2900_v11 }
 0x8fb   : > { %v2955_v43 = vmul.f32 %v2904_v20, %v8125_v40 }
 0x8fc   : > { %v2908_v63 = vmul.f32 0.5, %v2907_v50 }
 0x8fd   : > { %v2964_v44 = vmul.f32 %v8308_v6, %v2955_v43 }
 0x8fe   : > { %v2909_v36 = vsub.f32 1.5, %v2908_v63 }
 0x8ff   : > { %v2973_v40 = vadd.f32 %v8314_v51, %v2964_v44 }
 0x900   : > { %v2910_v56 = vmul.f32 %v6612_v28, %v2909_v36 }
 0x902   : > { %v2914_v2 = vsel %vm2913_vm3, %v6612_v28, %v2910_v56 }
 0x903   : > { %v2956_v37 = vmul.f32 %v2914_v2, %v8131_v54  ;;  %v2876_v52 = vpop.xlane.xlu0 %2875 }
 0x904   : > { %v2885_v57 = vmul.f32 %v2876_v52, %v7032_v23 }
 0x905   : > { %v2965_v4 = vmul.f32 %v8308_v6, %v2956_v37 }
 0x906   : > { %v2891_v22 = vadd.f32 1e-06, %v2885_v57 }
 0x907   : > { %v2974_v32 = vadd.f32 %v8314_v51, %v2965_v4 }
 0x908   : > { %6613 = vrsqrt.f32 %v2891_v22  ;;  %vm2921_vm9 = vweird.f32 %v2891_v22 }
 0x909   : > { %v2979_v58 = vpack.c.bf16 %v2974_v32, %v2973_v40 }
 0x90b   : > { %v2878_v61 = vpop.xlane.xlu1 %2877  ;;  %3160 = vmatmul.bf16.vlgmr.msra.gmra.mxu1 %v2979_v58  ;;  %3184 = vmatmul.bf16.vlgmr.msra.gmra.mxu2 %v2979_v58 }
 0x90c   : > { %v2886_v7 = vmul.f32 %v2878_v61, %v7032_v23  ;;  %3208 = vmatmul.bf16.vlgmr.msrb.gmra.mxu3 %v2979_v58 }
 0x90e   : > { %v6614_v9 = vpop.eup %6613  ;;  %v2892_v54 = vadd.f32 1e-06, %v2886_v7 }
 0x90f   : > { %v2916_v10 = vmul.f32 %v6614_v9, %v2891_v22  ;;  %vm2922_vm8 = vweird.f32 %v6614_v9 }
 0x910   : > { %6615 = vrsqrt.f32 %v2892_v54  ;;  %vm2923_vm10 = vmor %vm2921_vm9, %vm2922_vm8  ;;  %vm2931_vm12 = vweird.f32 %v2892_v54 }
 0x911   : > { %v2917_v47 = vmul.f32 %v6614_v9, %v2916_v10 }
 0x913   : > { %v2918_v62 = vmul.f32 0.5, %v2917_v47  ;;  %v2880_v29 = vpop.xlane.xlu2 %2879 }
 0x914   : > { %v2887_v12 = vmul.f32 %v2880_v29, %v7032_v23 }
 0x915   : > { %v2919_v38 = vsub.f32 1.5, %v2918_v62 }
 0x916   : > { %v6616_v17 = vpop.eup %6615  ;;  %v2893_v1 = vadd.f32 1e-06, %v2887_v12 }
 0x917   : > { %v2920_v19 = vmul.f32 %v6614_v9, %v2919_v38  ;;  %v2926_v13 = vmul.f32 %v6616_v17, %v2892_v54  ;;  %vm2932_vm11 = vweird.f32 %v6616_v17 }
 0x918   : > { %6617 = vrsqrt.f32 %v2893_v1  ;;  %vm2933_vm13 = vmor %vm2931_vm12, %vm2932_vm11  ;;  %vm2941_vm15 = vweird.f32 %v2893_v1 }
 0x919   : > { %v2927_v21 = vmul.f32 %v6616_v17, %v2926_v13  ;;  %v2924_v48 = vsel %vm2923_vm10, %v6614_v9, %v2920_v19 }
 0x91a   : > { %v2957_v55 = vmul.f32 %v2924_v48, %v8137_v14 }
 0x91b   : > { %v2928_v49 = vmul.f32 0.5, %v2927_v21  ;;  %v2882_v26 = vpop.xlane.xlu0 %2881 }
 0x91c   : > { %v2888_v25 = vmul.f32 %v2882_v26, %v7032_v23  ;;  %v2966_v45 = vmul.f32 %v8308_v6, %v2957_v55 }
 0x91d   : > { %v2929_v33 = vsub.f32 1.5, %v2928_v49 }
 0x91e   : > { %v6618_v39 = vpop.eup %6617  ;;  %v2894_v15 = vadd.f32 1e-06, %v2888_v25  ;;  %v2975_v0 = vadd.f32 %v8314_v51, %v2966_v45 }
 0x91f   : > { %v2930_v18 = vmul.f32 %v6616_v17, %v2929_v33  ;;  %v2936_v16 = vmul.f32 %v6618_v39, %v2893_v1  ;;  %vm2942_vm14 = vweird.f32 %v6618_v39 }
 0x920   : > { %6619 = vrsqrt.f32 %v2894_v15  ;;  %vm2943_vm0 = vmor %vm2941_vm15, %vm2942_vm14  ;;  %vm2951_vm2 = vweird.f32 %v2894_v15 }
 0x921   : > { %v2934_v31 = vsel %vm2933_vm13, %v6616_v17, %v2930_v18  ;;  %v2937_v41 = vmul.f32 %v6618_v39, %v2936_v16 }
 0x922   : > { %v2958_v8 = vmul.f32 %v2934_v31, %v8143_v46 }
 0x923   : > { %v2938_v42 = vmul.f32 0.5, %v2937_v41 }
 0x924   : > { %v2967_v27 = vmul.f32 %v8308_v6, %v2958_v8 }
 0x925   : > { %v2939_v28 = vsub.f32 1.5, %v2938_v42 }
 0x926   : > { %v6620_v11 = vpop.eup %6619  ;;  %v2976_v14 = vadd.f32 %v8314_v51, %v2967_v27 }
 0x927   : > { %v2940_v50 = vmul.f32 %v6618_v39, %v2939_v28  ;;  %v2946_v20 = vmul.f32 %v6620_v11, %v2894_v15  ;;  %vm2952_vm1 = vweird.f32 %v6620_v11 }
 0x928   : > { %v2980_v63 = vpack.c.bf16 %v2976_v14, %v2975_v0  ;;  %vm2953_vm3 = vmor %vm2951_vm2, %vm2952_vm1 }
 0x929   : > { %v2947_v36 = vmul.f32 %v6620_v11, %v2946_v20  ;;  %v2944_v46 = vsel %vm2943_vm0, %v6618_v39, %v2940_v50 }
 0x92a   : > { %3165 = vmatmul.bf16.gmra.mxu1 %v2980_v63  ;;  %3189 = vmatmul.bf16.gmra.mxu2 %v2980_v63  ;;  %v2959_v2 = vmul.f32 %v2944_v46, %v8149_v59  ;;  %v5681_v59 = vld [vmem:[%s9288_s8 + $0x3] sm:$0x7] }
 0x92b   : > { %v2948_v43 = vmul.f32 0.5, %v2947_v36  ;;  %3213 = vmatmul.bf16.gmra.mxu3 %v2980_v63  ;;  %v8340_v58 = vperm.slane %v5681_v59, 0  ;;  %v3020_v55 = vperm.slane %v5681_v59, 2 }
 0x92c   : > { %v2968_v57 = vmul.f32 %v8308_v6, %v2959_v2 }
 0x92d   : > { %v2949_v56 = vsub.f32 1.5, %v2948_v43 }
 0x92e   : > { %v2977_v22 = vadd.f32 %v8314_v51, %v2968_v57 }
 0x92f   : > { %v2950_v44 = vmul.f32 %v6620_v11, %v2949_v56 }
 0x931   : > { %v2954_v37 = vsel %vm2953_vm3, %v6620_v11, %v2950_v44 }
 0x932   : > { %v2960_v52 = vmul.f32 %v2954_v37, %v8155_v34 }
 0x934   : > { %v2969_v4 = vmul.f32 %v8308_v6, %v2960_v52  ;;  %v8343_v6 = vperm.slane %v5681_v59, 1 }
 0x936   : > { %v2978_v40 = vadd.f32 %v8314_v51, %v2969_v4 }
 0x938   : > { %v2981_v32 = vpack.c.bf16 %v2978_v40, %v2977_v22 }
 0x93a   : > { %3170 = vmatmul.bf16.gmra.mxu1 %v2981_v32  ;;  %3194 = vmatmul.bf16.gmra.mxu2 %v2981_v32 }
 0x93b   : > { %3218 = vmatmul.bf16.gmra.mxu3 %v2981_v32 }
 0x988   : > { %v3161_v61 = vpop.f32.mrf.mxu1 }
 0x989   : > { %v3162_v34 = vadd.f32 %v3161_v61, %v8340_v58 }
 0x98b   : > { %v3224_v9 = vmul.f32 0.125, %v3162_v34 }
 0x98d   : > { %v3230_v10 = vpack.c.bf16 %v3224_v9, %v3224_v9 }
 0x98e   : > { %v3185_v7 = vpop.f32.mrf.mxu2 }
 0x98f   : > { %v3186_v47 = vadd.f32 %v3185_v7, %v8343_v6  ;;  %v3268_v38 = vunpack.c.l.b16 %v3230_v10  ;;  %v3209_v26 = vpop.f32.mrf.mxu3 }
 0x990   : > { %v3163_v54 = vpop.f32.mrf.mxu1  ;;  %v3210_v45 = vadd.f32 %v3209_v26, %v3020_v55 }
 0x991   : > { %v3164_v51 = vadd.f32 %v3163_v54, %v8340_v58  ;;  %v3236_v17 = vpack.c.bf16 %v3186_v47, %v3186_v47 }
 0x992   : > { %v3242_v50 = vpack.c.bf16 %v3210_v45, %v3210_v45 }
 0x993   : > { %v3225_v62 = vmul.f32 0.125, %v3164_v51  ;;  %v3276_v48 = vunpack.c.l.b16 %v3236_v17 }
 0x994   : > { %v3446_v52 = vunpack.c.l.b16 %v3242_v50 }
 0x995   : > { %v3231_v29 = vpack.c.bf16 %v3225_v62, %v3225_v62 }
 0x996   : > { %v3187_v12 = vpop.f32.mrf.mxu2 }
 0x997   : > { %v3269_v1 = vunpack.c.l.b16 %v3231_v29  ;;  %v3188_v19 = vadd.f32 %v3187_v12, %v8343_v6  ;;  %v3211_v33 = vpop.f32.mrf.mxu3 }
 0x998   : > { %v3212_v18 = vadd.f32 %v3211_v33, %v3020_v55 }
 0x999   : > { %v3237_v13 = vpack.c.bf16 %v3188_v19, %v3188_v19  ;;  %v8348_v21 = vpack.c.b16 %v3269_v1, %v3268_v38 }
 0x99a   : > { %v3243_v28 = vpack.c.bf16 %v3212_v18, %v3212_v18 }
 0x99b   : > { %v3277_v49 = vunpack.c.l.b16 %v3237_v13  ;;  %3526 = vrot.lane.b32.xlu0 %v8348_v21, %s9341_s23 }
 0x99c   : > { %v3447_v46 = vunpack.c.l.b16 %v3243_v28 }
 0x99d   : > { %v3279_v25 = vpack.c.b16 %v3277_v49, %v3276_v48 }
 0x99e   : > { %v8363_v32 = vpack.c.b16 %v3447_v46, %v3446_v52 }
 0x99f   : > { %3530 = vrot.lane.b32.xlu2 %v3279_v25, %s9341_s23  ;;  %v3288_v34 = vsel %vm1189_vm5, %v3279_v25, 0 }
 0x9a7   : > { %v3166_v39 = vpop.f32.mrf.mxu1 }
 0x9a8   : > { %v3167_v19 = vadd.f32 %v3166_v39, %v8340_v58 }
 0x9aa   : > { %v3226_v18 = vmul.f32 0.125, %v3167_v19 }
 0x9ad   : > { %v3190_v15 = vpop.f32.mrf.mxu2 }
 0x9ae   : > { %v3191_v16 = vadd.f32 %v3190_v15, %v8343_v6  ;;  %v3214_v31 = vpop.f32.mrf.mxu3 }
 0x9af   : > { %v3215_v41 = vadd.f32 %v3214_v31, %v3020_v55  ;;  %v3168_v8 = vpop.f32.mrf.mxu1 }
 0x9b0   : > { %v3238_v42 = vpack.c.bf16 %v3191_v16, %v3191_v16  ;;  %v3169_v0 = vadd.f32 %v3168_v8, %v8340_v58 }
 0x9b1   : > { %v3244_v27 = vpack.c.bf16 %v3215_v41, %v3215_v41 }
 0x9b2   : > { %v3278_v11 = vunpack.c.l.b16 %v3238_v42  ;;  %v3227_v43 = vmul.f32 0.125, %v3169_v0  ;;  %v3232_v42 = vpack.c.bf16 %v3226_v18, %v3226_v18 }
 0x9b3   : > { %v3448_v14 = vunpack.c.l.b16 %v3244_v27 }
 0x9b4   : > { %v3280_v20 = vpack.c.b16 %v3278_v11, %v3278_v11  ;;  %v3233_v4 = vpack.c.bf16 %v3227_v43, %v3227_v43 }
 0x9b5   : > { %v8355_v63 = vpack.c.b16 %v3448_v14, %v3448_v14  ;;  %v3192_v36 = vpop.f32.mrf.mxu2  ;;  %v3270_v14 = vunpack.c.l.b16 %v3232_v42 }
 0x9b6   : > { %v3216_v56 = vpop.f32.mrf.mxu3  ;;  %3532 = vrot.lane.b32.xlu1 %v3280_v20, %s9341_s23  ;;  %v3291_v2 = vsel %vm1189_vm5, %v3280_v20, 0  ;;  %v3193_v22 = vadd.f32 %v3192_v36, %v8343_v6  ;;  %v3314_v7 = vunpack.c.l.b16 %v3233_v4 }
 0x9b7   : > { %v3171_v44 = vpop.f32.mrf.mxu1  ;;  %3299 = vmatpush.bf16.xpose.msra.mxu0 %v3291_v2  ;;  %v3459_v37 = vsel %vm1370_vm4, %v8355_v63, 0  ;;  %v3217_v16 = vadd.f32 %v3216_v56, %v3020_v55  ;;  %v3272_v36 = vpack.c.b16 %v3270_v14, %v3270_v14 }
 0x9b8   : > { %v3172_v57 = vadd.f32 %v3171_v44, %v8340_v58  ;;  %3467 = vmatpush.bf16.msrb.mxu2 %v3459_v37  ;;  %v3239_v9 = vpack.c.bf16 %v3193_v22, %v3193_v22 }
 0x9b9   : > { %v3245_v27 = vpack.c.bf16 %v3217_v16, %v3217_v16 }
 0x9ba   : > { %v3228_v40 = vmul.f32 0.125, %v3172_v57  ;;  %v3322_v38 = vunpack.c.l.b16 %v3239_v9 }
 0x9bb   : > { %v3490_v50 = vunpack.c.l.b16 %v3245_v27 }
 0x9bc   : > { %v3234_v59 = vpack.c.bf16 %v3228_v40, %v3228_v40  ;;  %3468 = vmatpush.bf16.msrb.mxu2 %v8363_v32 }
 0x9bd   : > { %v3195_v61 = vpop.f32.mrf.mxu2 }
 0x9be   : > { %v3315_v54 = vunpack.c.l.b16 %v3234_v59  ;;  %v3196_v51 = vadd.f32 %v3195_v61, %v8343_v6  ;;  %v3219_v10 = vpop.f32.mrf.mxu3 }
 0x9bf   : > { %v3173_v47 = vpop.f32.mrf.mxu1  ;;  %3300 = vmatpush.bf16.xpose.msra.mxu0 %v3288_v34  ;;  %v3220_v26 = vadd.f32 %v3219_v10, %v3020_v55 }
 0x9c0   : > { %v3240_v62 = vpack.c.bf16 %v3196_v51, %v3196_v51  ;;  %v3174_v29 = vadd.f32 %v3173_v47, %v8340_v58  ;;  %v3317_v12 = vpack.c.b16 %v3315_v54, %v3314_v7 }
 0x9c1   : > { %v3246_v45 = vpack.c.bf16 %v3220_v26, %v3220_v26 }
 0x9c2   : > { %v3323_v17 = vunpack.c.l.b16 %v3240_v62  ;;  %v3229_v1 = vmul.f32 0.125, %v3174_v29  ;;  %3564 = vrot.lane.b32.xlu2 %v3317_v12, %s9341_s23 }
 0x9c3   : > { %v3491_v0 = vunpack.c.l.b16 %v3246_v45 }
 0x9c4   : > { %v3325_v13 = vpack.c.b16 %v3323_v17, %v3322_v38  ;;  %v3235_v48 = vpack.c.bf16 %v3229_v1, %v3229_v1 }
 0x9c5   : > { %v3197_v49 = vpop.f32.mrf.mxu2  ;;  %v8382_v20 = vpack.c.b16 %v3491_v0, %v3490_v50 }
 0x9c6   : > { %v3198_v25 = vadd.f32 %v3197_v49, %v8343_v6  ;;  %v3221_v33 = vpop.f32.mrf.mxu3  ;;  %5794 = vmatmul.msk.bf16.vlgmr.msra.gmra.mxu0 %vm1189_vm5, %v8348_v21  ;;  %3568 = vrot.lane.b32.xlu0 %v3325_v13, %s9341_s23  ;;  %v3316_v31 = vunpack.c.l.b16 %v3235_v48  ;;  %v3334_v46 = vsel %vm1189_vm5, %v3325_v13, 0 }
 0x9c7   : > { %v3222_v15 = vadd.f32 %v3221_v33, %v3020_v55 }
 0x9c8   : > { %v3241_v41 = vpack.c.bf16 %v3198_v25, %v3198_v25  ;;  %v3318_v28 = vpack.c.b16 %v3316_v31, %v3316_v31 }
 0x9c9   : > { %v3247_v8 = vpack.c.bf16 %v3222_v15, %v3222_v15 }
 0x9ca   : > { %v3324_v58 = vunpack.c.l.b16 %v3241_v41 }
 0x9cb   : > { %v3492_v39 = vunpack.c.l.b16 %v3247_v8 }
 0x9cc   : > { %v3326_v11 = vpack.c.b16 %v3324_v58, %v3324_v58 }
 0x9cd   : > { %v8375_v6 = vpack.c.b16 %v3492_v39, %v3492_v39 }
 0x9ce   : > { %3570 = vrot.lane.b32.xlu1 %v3326_v11, %s9341_s23  ;;  %3566 = vrot.lane.b32.xlu0 %v3318_v28, %s9341_s23  ;;  %v3337_v21 = vsel %vm1189_vm5, %v3326_v11, 0 }
 0x9cf   : > { %3345 = vmatpush.bf16.xpose.msrb.mxu1 %v3337_v21  ;;  %v3503_v55 = vsel %vm1370_vm4, %v8375_v6, 0 }
 0x9d0   : > { %3511 = vmatpush.bf16.msra.mxu3 %v3503_v55 }
 0x9d4   : > { %3512 = vmatpush.bf16.msra.mxu3 %v8382_v20 }
 0x9d6   : > { %5795 = vmatmul.msk.bf16.gmra.mxu0 %vm1189_vm5, %v3272_v36  ;;  %3528 = vrot.lane.b32.xlu1 %v3272_v36, %s9341_s23 }
 0x9d7   : > { %3346 = vmatpush.bf16.xpose.msrb.mxu1 %v3334_v46 }
 0x9de   : > { %5796 = vmatmul.msk.bf16.vlgmr.msrb.gmra.mxu1 %vm1189_vm5, %v3317_v12 }
 0x9ee   : > { %5797 = vmatmul.msk.bf16.gmra.mxu1 %vm1189_vm5, %v3318_v28 }
 0x9f9   : > { %v3531_v2 = vpop.permute.xlu2 %3530 }
 0x9fa   : > { %v3541_v44 = vsel %vm1189_vm5, %v3531_v2, 0 }
 0xa0d   : > { %v3527_v37 = vpop.permute.xlu0 %3526 }
 0xa1c   : > { %v3565_v51 = vpop.permute.xlu2 %3564 }
 0xa28   : > { %v3533_v43 = vpop.permute.xlu1 %3532 }
 0xa29   : > { %v3544_v56 = vsel %vm1189_vm5, %v3533_v43, 0 }
 0xa2a   : > { %3552 = vmatpush.bf16.xpose.msrb.mxu0 %v3544_v56 }
 0xa32   : > { %3553 = vmatpush.bf16.xpose.msrb.mxu0 %v3541_v44 }
 0xa38   : > { %v3569_v59 = vpop.permute.xlu0 %3568 }
 0xa39   : > { %5802 = vmatmul.msk.bf16.vlgmr.msrb.gmra.mxu0 %vm1189_vm5, %v3527_v37  ;;  %v3579_v34 = vsel %vm1189_vm5, %v3569_v59, 0 }
 0xa40   : > { %v3571_v52 = vpop.permute.xlu1 %3570  ;;  %v3567_v38 = vpop.permute.xlu0 %3566 }
 0xa41   : > { %v3582_v57 = vsel %vm1189_vm5, %v3571_v52, 0 }
 0xa42   : > { %3590 = vmatpush.bf16.xpose.msra.mxu1 %v3582_v57 }
 0xa43   : > { %v3302_v4 = vpop.f32.mrf.mxu0 }
 0xa44   : > { %v3357_v22 = vsel %vm742_vm6, %v3302_v4, -1e+30 }
 0xa45   : > { %v3363_v40 = vsel %vm1274_vm7, %v3357_v22, -inf }
 0xa46   : > { %3364 = vmax.xlane.f32.xlu2 %v3363_v40 }
 0xa48   : > { %v3529_v61 = vpop.permute.xlu1 %3528 }
 0xa49   : > { %5803 = vmatmul.msk.bf16.gmra.mxu0 %vm1189_vm5, %v3529_v61 }
 0xa4a   : > { %3591 = vmatpush.bf16.xpose.msra.mxu1 %v3579_v34 }
 0xa4b   : > { %v3304_v7 = vpop.f32.mrf.mxu0 }
 0xa4c   : > { %v3358_v9 = vsel %vm742_vm6, %v3304_v7, -1e+30 }
 0xa4d   : > { %v3366_v54 = vsel %vm1274_vm7, %v3358_v9, -inf }
 0xa4e   : > { %3367 = vmax.xlane.f32.xlu1 %v3366_v54 }
 0xa51   : > { %5804 = vmatmul.msk.bf16.vlgmr.msra.gmra.mxu1 %vm1189_vm5, %v3565_v51 }
 0xa53   : > { %v3307_v10 = vpop.f32.mrf.mxu0 }
 0xa54   : > { %v3359_v47 = vsel %vm742_vm6, %v3307_v10, -1e+30 }
 0xa55   : > { %v3369_v62 = vsel %vm1274_vm7, %v3359_v47, -inf }
 0xa56   : > { %3370 = vmax.xlane.f32.xlu0 %v3369_v62 }
 0xa5b   : > { %v3309_v29 = vpop.f32.mrf.mxu0  ;;  %v3348_v12 = vpop.f32.mrf.mxu1 }
 0xa5c   : > { %v8420_v26 = vsel %vm742_vm6, %v3348_v12, -1e+30 }
 0xa5d   : > { %v3372_v25 = vsel %vm1274_vm7, %v8420_v26, -inf }
 0xa5e   : > { %3690 = vrot.lane.b32.xlu2 %v8355_v63, %s9341_s23 }
 0xa61   : > { %5805 = vmatmul.msk.bf16.gmra.mxu1 %vm1189_vm5, %v3567_v38 }
 0xa63   : > { %v3350_v17 = vpop.f32.mrf.mxu1 }
 0xa64   : > { %v3361_v1 = vsel %vm742_vm6, %v3350_v17, -1e+30 }
 0xa65   : > { %v3375_v19 = vsel %vm1274_vm7, %v3361_v1, -inf }
 0xa66   : > { %3376 = vmax.xlane.f32.xlu1 %v3375_v19 }
 0xa6b   : > { %v3353_v13 = vpop.f32.mrf.mxu1 }
 0xa6c   : > { %v8414_v48 = vsel %vm742_vm6, %v3353_v13, -1e+30 }
 0xa6d   : > { %v3378_v49 = vsel %vm1274_vm7, %v8414_v48, -inf }
 0xa6e   : > { %3379 = vmax.xlane.f32.xlu1 %v3378_v49 }
 0xa73   : > { %v3355_v63 = vpop.f32.mrf.mxu1 }
 0xa87   : > { %3373 = vmax.xlane.f32.xlu2 %v3372_v25 }
 0xab6   : > { %v3555_v33 = vpop.f32.mrf.mxu0 }
 0xab7   : > { %v8426_v15 = vsel %vm742_vm6, %v3555_v33, -1e+30 }
 0xab8   : > { %v3608_v18 = vsel %vm1274_vm7, %v8426_v15, -inf }
 0xab9   : > { %3609 = vmax.xlane.f32.xlu2 %v3608_v18  ;;  %v3365_v16 = vpop.xlane.xlu2 %3364 }
 0xaba   : > { %v3381_v31 = vsub.f32 %v3357_v22, %v3365_v16 }
 0xabc   : > { %v3387_v41 = vmul.f32 1.442695, %v3381_v31 }
 0xabe   : > { %6621 = vpow2.f32 %v3387_v41  ;;  %v3557_v8 = vpop.f32.mrf.mxu0 }
 0xabf   : > { %v8432_v45 = vsel %vm742_vm6, %v3557_v8, -1e+30 }
 0xac0   : > { %v3611_v58 = vsel %vm1274_vm7, %v8432_v45, -inf }
 0xac1   : > { %v3368_v39 = vpop.xlane.xlu1 %3367  ;;  %3612 = vmax.xlane.f32.xlu0 %v3611_v58  ;;  %v3691_v42 = vpop.permute.xlu2 %3690 }
 0xac2   : > { %v3382_v27 = vsub.f32 %v3358_v9, %v3368_v39  ;;  %v3700_v28 = vsel %vm1370_vm4, %v3691_v42, 0 }
 0xac3   : > { %3708 = vmatpush.bf16.msra.mxu2 %v3700_v28 }
 0xac4   : > { %v8437_v11 = vpop.eup %6621  ;;  %v3389_v0 = vmul.f32 1.442695, %v3382_v27 }
 0xac5   : > { %v3399_v21 = vsel %vm1274_vm7, %v8437_v11, 0.0 }
 0xac6   : > { %6623 = vpow2.f32 %v3389_v0  ;;  %v3560_v55 = vpop.f32.mrf.mxu0  ;;  %3400 = vadd.xlane.f32.xlu2 %v3399_v21 }
 0xac7   : > { %v8443_v14 = vsel %vm742_vm6, %v3560_v55, -1e+30 }
 0xac8   : > { %v3614_v50 = vsel %vm1274_vm7, %v8443_v14, -inf }
 0xac9   : > { %v3371_v36 = vpop.xlane.xlu0 %3370  ;;  %3615 = vmax.xlane.f32.xlu1 %v3614_v50 }
 0xaca   : > { %v3383_v46 = vsub.f32 %v3359_v47, %v3371_v36 }
 0xacc   : > { %v8447_v43 = vpop.eup %6623  ;;  %v3391_v56 = vmul.f32 1.442695, %v3383_v46 }
 0xacd   : > { %v3402_v2 = vsel %vm1274_vm7, %v8447_v43, 0.0 }
 0xace   : > { %6625 = vpow2.f32 %v3391_v56  ;;  %3403 = vadd.xlane.f32.xlu0 %v3402_v2  ;;  %v3562_v44 = vpop.f32.mrf.mxu0  ;;  %v3593_v37 = vpop.f32.mrf.mxu1 }
 0xacf   : > { %v8453_v52 = vsel %vm742_vm6, %v3593_v37, -1e+30 }
 0xad0   : > { %v3617_v57 = vsel %vm1274_vm7, %v8453_v52, -inf }
 0xad1   : > { %3618 = vmax.xlane.f32.xlu2 %v3617_v57 }
 0xad4   : > { %v8457_v4 = vpop.eup %6625 }
 0xad5   : > { %v3405_v22 = vsel %vm1274_vm7, %v8457_v4, 0.0 }
 0xad6   : > { %3406 = vadd.xlane.f32.xlu1 %v3405_v22  ;;  %v3595_v40 = vpop.f32.mrf.mxu1 }
 0xad7   : > { %v8463_v59 = vsel %vm742_vm6, %v3595_v40, -1e+30 }
 0xad8   : > { %v3620_v61 = vsel %vm1274_vm7, %v8463_v59, -inf }
 0xad9   : > { %v3377_v34 = vpop.xlane.xlu1 %3376  ;;  %3621 = vmax.xlane.f32.xlu0 %v3620_v61 }
 0xada   : > { %v3385_v7 = vsub.f32 %v3361_v1, %v3377_v34 }
 0xadc   : > { %v3395_v9 = vmul.f32 1.442695, %v3385_v7 }
 0xade   : > { %6627 = vpow2.f32 %v3395_v9  ;;  %v3598_v54 = vpop.f32.mrf.mxu1 }
 0xadf   : > { %v8469_v51 = vsel %vm742_vm6, %v3598_v54, -1e+30 }
 0xae0   : > { %v3623_v10 = vsel %vm1274_vm7, %v8469_v51, -inf }
 0xae1   : > { %v3380_v47 = vpop.xlane.xlu1 %3379  ;;  %3624 = vmax.xlane.f32.xlu2 %v3623_v10 }
 0xae2   : > { %v3386_v62 = vsub.f32 %v8414_v48, %v3380_v47 }
 0xae4   : > { %v8474_v29 = vpop.eup %6627  ;;  %v3397_v12 = vmul.f32 1.442695, %v3386_v62 }
 0xae5   : > { %v3411_v38 = vsel %vm1274_vm7, %v8474_v29, 0.0 }
 0xae6   : > { %6629 = vpow2.f32 %v3397_v12  ;;  %3412 = vadd.xlane.f32.xlu1 %v3411_v38  ;;  %v3600_v17 = vpop.f32.mrf.mxu1 }
 0xaec   : > { %v8478_v1 = vpop.eup %6629 }
 0xaed   : > { %v3414_v5 = vsel %vm1274_vm7, %v8478_v1, 0.0 }
 0xaee   : > { %3415 = vadd.xlane.f32.xlu1 %v3414_v5 }
 0xafa   : > { %v3374_v19 = vpop.xlane.xlu2 %3373 }
 0xafb   : > { %v3384_v13 = vsub.f32 %v8420_v26, %v3374_v19 }
 0xafd   : > { %v3393_v49 = vmul.f32 1.442695, %v3384_v13 }
 0xaff   : > { %6631 = vpow2.f32 %v3393_v49 }
 0xb05   : > { %v8483_v48 = vpop.eup %6631 }
 0xb06   : > { %v3408_v63 = vsel %vm1274_vm7, %v8483_v48, 0.0 }
 0xb07   : > { %3409 = vadd.xlane.f32.xlu0 %v3408_v63 }
 0xb2c   : > { %v3610_v25 = vpop.xlane.xlu2 %3609 }
 0xb2d   : > { %v3626_v33 = vsub.f32 %v8426_v15, %v3610_v25 }
 0xb2f   : > { %v3632_v18 = vmul.f32 1.442695, %v3626_v33 }
 0xb31   : > { %6633 = vpow2.f32 %v3632_v18 }
 0xb34   : > { %v3613_v16 = vpop.xlane.xlu0 %3612 }
 0xb35   : > { %v3627_v31 = vsub.f32 %v8432_v45, %v3613_v16 }
 0xb37   : > { %v8489_v41 = vpop.eup %6633  ;;  %v3634_v8 = vmul.f32 1.442695, %v3627_v31 }
 0xb38   : > { %v3644_v26 = vsel %vm1274_vm7, %v8489_v41, 0.0 }
 0xb39   : > { %6635 = vpow2.f32 %v3634_v8  ;;  %3645 = vadd.xlane.f32.xlu2 %v3644_v26  ;;  %v3401_v58 = vpop.xlane.xlu2 %3400 }
 0xb3a   : > { %6637 = vrcp.f32 %v3401_v58 }
 0xb3c   : > { %v3616_v39 = vpop.xlane.xlu1 %3615 }
 0xb3d   : > { %v3628_v42 = vsub.f32 %v8443_v14, %v3616_v39 }
 0xb3f   : > { %v8494_v27 = vpop.eup %6635  ;;  %v3636_v15 = vmul.f32 1.442695, %v3628_v42  ;;  %v6342_v42 = vld [vmem:[%s9289_s9 + $0x58] sm:$0xff] }
 0xb40   : > { %v3647_v28 = vsel %vm1274_vm7, %v8494_v27, 0.0  ;;  %v6638_v0 = vpop.eup %6637  ;;  %3857 = vmatpush.bf16.msrb.mxu1 %v6342_v42 }
 0xb41   : > { %6639 = vpow2.f32 %v3636_v15  ;;  %v3404_v45 = vpop.xlane.xlu0 %3403  ;;  %3648 = vadd.xlane.f32.xlu0 %v3647_v28  ;;  %v3423_v55 = vmul.f32 %v6638_v0, %v8437_v11  ;;  %v6341_v28 = vld [vmem:[%s9289_s9 + $0x50] sm:$0xff] }
 0xb42   : > { %6641 = vrcp.f32 %v3404_v45 }
 0xb43   : > { %v3429_v2 = vpack.c.bf16 %v3423_v55, %v3423_v55 }
 0xb44   : > { %v3619_v21 = vpop.xlane.xlu2 %3618  ;;  %3858 = vmatpush.bf16.msrb.mxu1 %v6341_v28 }
 0xb45   : > { %v3629_v50 = vsub.f32 %v8453_v52, %v3619_v21  ;;  %v3438_v22 = vunpack.c.l.b16 %v3429_v2  ;;  %v6339_v21 = vld [vmem:[%s9289_s9 + $0x40] sm:$0xff] }
 0xb47   : > { %v8500_v36 = vpop.eup %6639  ;;  %v3638_v46 = vmul.f32 1.442695, %v3629_v50 }
 0xb48   : > { %v6642_v14 = vpop.eup %6641  ;;  %v3650_v56 = vsel %vm1274_vm7, %v8500_v36, 0.0 }
 0xb49   : > { %v3424_v44 = vmul.f32 %v6642_v14, %v8447_v43  ;;  %6643 = vpow2.f32 %v3638_v46  ;;  %3651 = vadd.xlane.f32.xlu1 %v3650_v56  ;;  %v3407_v37 = vpop.xlane.xlu1 %3406 }
 0xb4a   : > { %6645 = vrcp.f32 %v3407_v37 }
 0xb4b   : > { %v3430_v57 = vpack.c.bf16 %v3424_v44, %v3424_v44 }
 0xb4c   : > { %v3622_v62 = vpop.xlane.xlu0 %3621 }
 0xb4d   : > { %v3439_v40 = vunpack.c.l.b16 %v3430_v57 }
 0xb4f   : > { %v8505_v11 = vpop.eup %6643  ;;  %v3441_v52 = vpack.c.b16 %v3439_v40, %v3438_v22 }
 0xb50   : > { %v6646_v61 = vpop.eup %6645  ;;  %v3653_v34 = vsel %vm1274_vm7, %v8505_v11, 0.0 }
 0xb51   : > { %3728 = vrot.lane.b32.xlu2 %v8382_v20, %s9341_s23  ;;  %5798 = vmatmul.msk.bf16.vlgmr.msrb.gmra.mxu2 %vm1274_vm7, %v3441_v52  ;;  %v3425_v43 = vmul.f32 %v6646_v61, %v8457_v4  ;;  %v3630_v20 = vsub.f32 %v8463_v59, %v3622_v62 }
 0xb52   : > { %3654 = vadd.xlane.f32.xlu1 %v3653_v34 }
 0xb53   : > { %v3431_v7 = vpack.c.bf16 %v3425_v43, %v3425_v43  ;;  %v3640_v38 = vmul.f32 1.442695, %v3630_v20 }
 0xb54   : > { %v3625_v10 = vpop.xlane.xlu2 %3624 }
 0xb55   : > { %3688 = vrot.lane.b32.xlu0 %v8363_v32, %s9341_s23  ;;  %v3440_v9 = vunpack.c.l.b16 %v3431_v7  ;;  %v3631_v47 = vsub.f32 %v8469_v51, %v3625_v10 }
 0xb57   : > { %v3442_v54 = vpack.c.b16 %v3440_v9, %v3440_v9  ;;  %v3642_v12 = vmul.f32 1.442695, %v3631_v47 }
 0xb59   : > { %6647 = vpow2.f32 %v3642_v12  ;;  %v3413_v4 = vpop.xlane.xlu1 %3412 }
 0xb5a   : > { %6649 = vpow2.f32 %v3640_v38 }
 0xb5b   : > { %6651 = vrcp.f32 %v3413_v4 }
 0xb5f   : > { %v8520_v32 = vpop.eup %6647 }
 0xb60   : > { %v3659_v17 = vsel %vm1274_vm7, %v8520_v32, 0.0  ;;  %v8524_v5 = vpop.eup %6649 }
 0xb61   : > { %5799 = vmatmul.msk.bf16.gmra.mxu2 %vm1274_vm7, %v3442_v54  ;;  %v6652_v19 = vpop.eup %6651  ;;  %v3656_v59 = vsel %vm1274_vm7, %v8524_v5, 0.0  ;;  %v3416_v13 = vpop.xlane.xlu1 %3415 }
 0xb6b   : > { %3730 = vrot.lane.b32.xlu1 %v8375_v6, %s9341_s23  ;;  %v3427_v6 = vmul.f32 %v6652_v19, %v8474_v29  ;;  %s6761_s23 = sshra.s32 %s5115_s21, 4  ;;  %s6762_s23 = int_to_ptr.hbm [resolvable:$true] %s6761_s23 }
 0xb6c   : > { %s6763_s19 = scalar_lea.hbm %s6762_s23, 32  ;;  %p6768_p0 = scmp.lt.s32.totalorder %s6762_s23, %s9300_s20 }
 0xb6d   : > { %v3433_v63 = vpack.c.bf16 %v3427_v6, %v3427_v6  ;;  %p6764_p11 = scmp.ne.s32.totalorder %s6762_s23, %s6763_s19  ;;  %p6769_p1 = scmp.lt.s32.totalorder %s6767_s25, %s6763_s19 }
 0xb6f   : > { %v3483_v18 = vunpack.c.l.b16 %v3433_v63  ;;  %p6765_p12 = pnand %p6764_p11, %p6993_p5  ;;  %p6770_p2 = por %p6769_p1, %p6768_p0 }
 0xb71   : > { %p6766_p13 = pneg %p6765_p12 }
 0xb73   : > { %p6771_p3 = pnand %p6770_p2, %p6766_p13 }
 0xb7a   : > { %v3410_v51 = vpop.xlane.xlu0 %3409  ;;  %3660 = vadd.xlane.f32.xlu2 %v3659_v17 }
 0xb7b   : > { %6653 = vrcp.f32 %v3410_v51 }
 0xb7c   : > { %6655 = vrcp.f32 %v3416_v13 }
 0xb7f   : > { %3657 = vadd.xlane.f32.xlu0 %v3656_v59 }
 0xb81   : > { %v6654_v49 = vpop.eup %6653 }
 0xb82   : > { %v3426_v25 = vmul.f32 %v6654_v49, %v8483_v48  ;;  %v6656_v8 = vpop.eup %6655 }
 0xb83   : > { %v3428_v26 = vmul.f32 %v6656_v8, %v8478_v1  ;;  %v6340_v1 = vld [vmem:[%s9289_s9 + $0x48] sm:$0xff] }
 0xb84   : > { %v3432_v33 = vpack.c.bf16 %v3426_v25, %v3426_v25  ;;  %3859 = vmatpush.bf16.msrb.mxu1 %v6340_v1  ;;  %v6346_v25 = vld [vmem:[%s9289_s9 + $0x78] sm:$0xff] }
 0xb85   : > { %v3434_v29 = vpack.c.bf16 %v3428_v26, %v3428_v26  ;;  %3800 = vmatpush.bf16.msra.mxu0 %v6346_v25 }
 0xb86   : > { %v3482_v16 = vunpack.c.l.b16 %v3432_v33 }
 0xb87   : > { %v3484_v58 = vunpack.c.l.b16 %v3434_v29  ;;  %v6345_v29 = vld [vmem:[%s9289_s9 + $0x70] sm:$0xff] }
 0xb88   : > { %v3485_v31 = vpack.c.b16 %v3483_v18, %v3482_v16  ;;  %3860 = vmatpush.bf16.msrb.mxu1 %v6339_v21 }
 0xb89   : > { %v3486_v39 = vpack.c.b16 %v3484_v58, %v3484_v58  ;;  %3801 = vmatpush.bf16.msra.mxu0 %v6345_v29  ;;  %v6344_v58 = vld [vmem:[%s9289_s9 + $0x68] sm:$0xff] }
 0xb8a   : > { %5800 = vmatmul.msk.bf16.vlgmr.msra.gmra.mxu3 %vm1274_vm7, %v3485_v31 }
 0xb8d   : > { %3802 = vmatpush.bf16.msra.mxu0 %v6344_v58 }
 0xb9a   : > { %5801 = vmatmul.msk.bf16.gmra.mxu3 %vm1274_vm7, %v3486_v39  ;;  %v6343_v39 = vld [vmem:[%s9289_s9 + $0x60] sm:$0xff] }
 0xb9b   : > { %3803 = vmatpush.bf16.msra.mxu0 %v6343_v39 }
 0xbac   : > { %v3646_v48 = vpop.xlane.xlu2 %3645 }
 0xbb4   : > { %v3649_v15 = vpop.xlane.xlu0 %3648  ;;  %v3729_v10 = vpop.permute.xlu2 %3728 }
 0xbb5   : > { %6657 = vrcp.f32 %v3649_v15 }
 0xbb6   : > { %6659 = vrcp.f32 %v3646_v48 }
 0xbbb   : > { %v6658_v45 = vpop.eup %6657 }
 0xbbc   : > { %v6660_v0 = vpop.eup %6659  ;;  %v3669_v55 = vmul.f32 %v6658_v45, %v8494_v27  ;;  %v3652_v14 = vpop.xlane.xlu1 %3651 }
 0xbbd   : > { %v3668_v50 = vmul.f32 %v6660_v0, %v8489_v41  ;;  %6661 = vrcp.f32 %v3652_v14 }
 0xbbe   : > { %v3675_v46 = vpack.c.bf16 %v3669_v55, %v3669_v55 }
 0xbbf   : > { %v3674_v56 = vpack.c.bf16 %v3668_v50, %v3668_v50 }
 0xbc0   : > { %v3684_v2 = vunpack.c.l.b16 %v3675_v46 }
 0xbc1   : > { %v3683_v44 = vunpack.c.l.b16 %v3674_v56 }
 0xbc3   : > { %v3686_v57 = vpack.c.b16 %v3684_v2, %v3683_v44  ;;  %v6662_v22 = vpop.eup %6661  ;;  %v6481_v44 = vld [vmem:[%s9290_s10 + $0x1] ss:$0 sm:$0xff] }
 0xbc4   : > { %v3670_v40 = vmul.f32 %v6662_v22, %v8500_v36 }
 0xbc5   : > { %v3655_v27 = vpop.xlane.xlu1 %3654 }
 0xbc6   : > { %v3676_v52 = vpack.c.bf16 %v3670_v40, %v3670_v40  ;;  %6663 = vrcp.f32 %v3655_v27 }
 0xbc7   : > { %v3689_v37 = vpop.permute.xlu0 %3688 }
 0xbc8   : > { %3709 = vmatpush.bf16.msra.mxu2 %v3689_v37  ;;  %v3685_v34 = vunpack.c.l.b16 %v3676_v52 }
 0xbca   : > { %v3687_v43 = vpack.c.b16 %v3685_v34, %v3685_v34 }
 0xbcb   : > { %5806 = vmatmul.msk.bf16.vlgmr.msra.gmra.mxu2 %vm1274_vm7, %v3686_v57 }
 0xbcc   : > { %v6664_v20 = vpop.eup %6663 }
 0xbcd   : > { %v3671_v12 = vmul.f32 %v6664_v20, %v8505_v11 }
 0xbcf   : > { %v3677_v17 = vpack.c.bf16 %v3671_v12, %v3671_v12 }
 0xbd1   : > { %v3723_v6 = vunpack.c.l.b16 %v3677_v17 }
 0xbd4   : > { %v3470_v61 = vpop.f32.mrf.mxu2 }
 0xbdb   : > { %5807 = vmatmul.msk.bf16.gmra.mxu2 %vm1274_vm7, %v3687_v43 }
 0xbdc   : > { %v3472_v41 = vpop.f32.mrf.mxu2 }
 0xbdd   : > { %v3523_v7 = vpack.c.bf16 %v3472_v41, %v3470_v61  ;;  %v3731_v9 = vpop.permute.xlu1 %3730 }
 0xbde   : > { %v3740_v54 = vsel %vm1370_vm4, %v3731_v9, 0 }
 0xbdf   : > { %3748 = vmatpush.bf16.msrb.mxu3 %v3740_v54  ;;  %5845 = vmatmul.msk.bf16.vlgmr.msrb.gmra.mxu1 %vm1189_vm5, %v3523_v7 }
 0xbe3   : > { %3749 = vmatpush.bf16.msrb.mxu3 %v3729_v10 }
 0xbe4   : > { %v3475_v47 = vpop.f32.mrf.mxu2 }
 0xbec   : > { %v3477_v62 = vpop.f32.mrf.mxu2 }
 0xbed   : > { %v3661_v38 = vpop.xlane.xlu2 %3660 }
 0xbf2   : > { %v3658_v36 = vpop.xlane.xlu0 %3657 }
 0xbf3   : > { %6665 = vrcp.f32 %v3658_v36 }
 0xbf4   : > { %6667 = vrcp.f32 %v3661_v38 }
 0xbf9   : > { %v6666_v4 = vpop.eup %6665 }
 0xbfa   : > { %v3672_v51 = vmul.f32 %v6666_v4, %v8524_v5  ;;  %v6668_v49 = vpop.eup %6667 }
 0xbfb   : > { %v3673_v63 = vmul.f32 %v6668_v49, %v8520_v32 }
 0xbfc   : > { %v3678_v19 = vpack.c.bf16 %v3672_v51, %v3672_v51 }
 0xbfd   : > { %v3679_v11 = vpack.c.bf16 %v3673_v63, %v3673_v63 }
 0xbfe   : > { %v3724_v59 = vunpack.c.l.b16 %v3678_v19 }
 0xbff   : > { %v3725_v33 = vunpack.c.l.b16 %v3679_v11 }
 0xc00   : > { %v3726_v13 = vpack.c.b16 %v3724_v59, %v3723_v6 }
 0xc01   : > { %v3727_v5 = vpack.c.b16 %v3725_v33, %v3725_v33 }
 0xc02   : > { %5808 = vmatmul.msk.bf16.vlgmr.msrb.gmra.mxu3 %vm1274_vm7, %v3726_v13 }
 0xc0d   : > { %v3514_v18 = vpop.f32.mrf.mxu3 }
 0xc0e   : > { %v3524_v16 = vpack.c.bf16 %v3514_v18, %v3475_v47 }
 0xc10   : > { %5846 = vmatmul.msk.bf16.gmra.mxu1 %vm1189_vm5, %v3524_v16 }
 0xc12   : > { %5809 = vmatmul.msk.bf16.gmra.mxu3 %vm1274_vm7, %v3727_v5 }
 0xc15   : > { %v3516_v31 = vpop.f32.mrf.mxu3 }
 0xc1d   : > { %v3519_v8 = vpop.f32.mrf.mxu3 }
 0xc1e   : > { %v3525_v26 = vpack.c.bf16 %v3519_v8, %v3516_v31 }
 0xc20   : > { %5847 = vmatmul.msk.bf16.gmra.mxu1 %vm1189_vm5, %v3525_v26 }
 0xc25   : > { %v3521_v32 = vpop.f32.mrf.mxu3 }
 0xc4e   : > { %v3711_v42 = vpop.f32.mrf.mxu2 }
 0xc56   : > { %v3713_v48 = vpop.f32.mrf.mxu2 }
 0xc57   : > { %v3760_v15 = vpack.c.bf16 %v3713_v48, %v3711_v42 }
 0xc59   : > { %5826 = vmatmul.msk.bf16.vlgmr.msra.gmra.mxu0 %vm1189_vm5, %v3760_v15 }
 0xc5c   : > { %v3862_v14 = vpop.f32.mrf.mxu1 }
 0xc5e   : > { %v3716_v28 = vpop.f32.mrf.mxu2 }
 0xc64   : > { %v3864_v22 = vpop.f32.mrf.mxu1 }
 0xc66   : > { %v3718_v1 = vpop.f32.mrf.mxu2 }
 0xc67   : > { %v6377_v1 = vld [vmem:[%s9293_s13 + $0x1ec] sm:$0xf0] }
 0xc85   : > { %v3751_v45 = vpop.f32.mrf.mxu3 }
 0xc86   : > { %v3761_v0 = vpack.c.bf16 %v3751_v45, %v3716_v28  ;;  %v5998_v28 = vld [vmem:[%s9293_s13 + $0x1e0] sm:$0xf]  ;;  %v6006_v45 = vld [vmem:[%s9293_s13 + $0x1e8] sm:$0xf] }
 0xc88   : > { %5827 = vmatmul.msk.bf16.gmra.mxu0 %vm1189_vm5, %v3761_v0  ;;  %v5999_v0 = vor.u32 %v6377_v1, %v5998_v28  ;;  %v5936_v1 = vld [vmem:[%s9293_s13 + $0x170] sm:$0xf0] }
 0xc8a   : > { %4243 = vmatpush.bf16.msrb.mxu2 %v5999_v0  ;;  %v6362_v0 = vld [vmem:[%s9293_s13 + $0x174] sm:$0xf0] }
 0xc8d   : > { %v3753_v21 = vpop.f32.mrf.mxu3  ;;  %v3867_v34 = vpop.f32.mrf.mxu1 }
 0xc95   : > { %v3756_v55 = vpop.f32.mrf.mxu3  ;;  %v3869_v9 = vpop.f32.mrf.mxu1 }
 0xc96   : > { %v3762_v50 = vpack.c.bf16 %v3756_v55, %v3753_v21  ;;  %v6378_v21 = vld [vmem:[%s9293_s13 + $0x1f4] sm:$0xf0]  ;;  %v6376_v55 = vld [vmem:[%s9293_s13 + $0x1ec] sm:$0xf] }
 0xc98   : > { %5828 = vmatmul.msk.bf16.gmra.mxu0 %vm1189_vm5, %v3762_v50  ;;  %v6008_v50 = vld [vmem:[%s9293_s13 + $0x1f8] sm:$0xf0] }
 0xc9d   : > { %v3758_v46 = vpop.f32.mrf.mxu3 }
 0xc9e   : > { %v6007_v46 = vor.u32 %v6378_v21, %v6006_v45  ;;  %v5942_v45 = vld [vmem:[%s9293_s13 + $0x168] sm:$0xf] }
 0xca0   : > { %4291 = vmatpush.bf16.msrb.mxu0 %v6007_v46  ;;  %v5944_v46 = vld [vmem:[%s9293_s13 + $0x178] sm:$0xf0] }
 0xcd6   : > { %v3805_v56 = vpop.f32.mrf.mxu0 }
 0xcd7   : > { %v3863_v2 = vadd.f32 %v3862_v14, %v3805_v56  ;;  %v6011_v14 = vor.u32 %v6376_v55, %v6008_v50  ;;  %v6375_v56 = vld [vmem:[%s9293_s13 + $0x1e4] sm:$0xf]  ;;  %v5943_v55 = vor.u32 %v6362_v0, %v5942_v45  ;;  %v6360_v50 = vld [vmem:[%s9293_s13 + $0x16c] sm:$0xf] }
 0xcd9   : > { %v3877_v37 = vadd.f32 %v3863_v2, %v8100_v60  ;;  %v6000_v2 = vld [vmem:[%s9293_s13 + $0x1f0] sm:$0xf0]  ;;  %4315 = vmatpush.bf16.msra.mxu1 %v6011_v14  ;;  %v5947_v14 = vor.u32 %v6360_v50, %v5944_v46 }
 0xcdb   : > { %v8578_v57 = vadd.f32 %v6481_v44, %v3877_v37  ;;  %v5982_v37 = vld [vmem:[%s9293_s13 + $0x1c0] sm:$0xf] }
 0xcdd   : > { %3898 = vadd.xlane.f32.xlu1 %v8578_v57 }
 0xcde   : > { %v3807_v40 = vpop.f32.mrf.mxu0 }
 0xcdf   : > { %v3865_v52 = vadd.f32 %v3864_v22, %v3807_v40  ;;  %v6373_v22 = vld [vmem:[%s9293_s13 + $0x1cc] sm:$0xf0]  ;;  %v6371_v40 = vld [vmem:[%s9293_s13 + $0x1c4] sm:$0xf] }
 0xce1   : > { %v3878_v61 = vadd.f32 %v3865_v52, %v8104_v53  ;;  %v3872_v53 = vpop.f32.mrf.mxu1  ;;  %v5983_v52 = vor.u32 %v6373_v22, %v5982_v37  ;;  %v5920_v22 = vld [vmem:[%s9293_s13 + $0x150] sm:$0xf0] }
 0xce3   : > { %v8582_v27 = vadd.f32 %v6481_v44, %v3878_v61  ;;  %v5984_v61 = vld [vmem:[%s9293_s13 + $0x1d0] sm:$0xf0]  ;;  %4244 = vmatpush.bf16.msrb.mxu2 %v5983_v52  ;;  %v6358_v52 = vld [vmem:[%s9293_s13 + $0x154] sm:$0xf0] }
 0xce5   : > { %3900 = vadd.xlane.f32.xlu0 %v8582_v27 }
 0xd05   : > { %v3810_v43 = vpop.f32.mrf.mxu0 }
 0xd06   : > { %v3868_v41 = vadd.f32 %v3867_v34, %v3810_v43  ;;  %v5990_v34 = vld [vmem:[%s9293_s13 + $0x1c8] sm:$0xf]  ;;  %v6374_v43 = vld [vmem:[%s9293_s13 + $0x1d4] sm:$0xf0] }
 0xd08   : > { %v3879_v7 = vadd.f32 %v3868_v41, %v8108_v3  ;;  %v3874_v3 = vpop.f32.mrf.mxu1  ;;  %v5987_v41 = vor.u32 %v6371_v40, %v5984_v61  ;;  %v5926_v40 = vld [vmem:[%s9293_s13 + $0x148] sm:$0xf] }
 0xd0a   : > { %v8586_v60 = vadd.f32 %v6481_v44, %v3879_v7  ;;  %v5991_v7 = vor.u32 %v6374_v43, %v5990_v34  ;;  %v5927_v34 = vor.u32 %v6358_v52, %v5926_v40  ;;  %v6356_v43 = vld [vmem:[%s9293_s13 + $0x14c] sm:$0xf] }
 0xd0c   : > { %3902 = vadd.xlane.f32.xlu0 %v8586_v60  ;;  %4292 = vmatpush.bf16.msrb.mxu0 %v5991_v7 }
 0xd0d   : > { %v3812_v54 = vpop.f32.mrf.mxu0 }
 0xd0e   : > { %v3870_v10 = vadd.f32 %v3869_v9, %v3812_v54  ;;  %v6372_v9 = vld [vmem:[%s9293_s13 + $0x1cc] sm:$0xf]  ;;  %v5992_v54 = vld [vmem:[%s9293_s13 + $0x1d8] sm:$0xf0] }
 0xd10   : > { %v3880_v47 = vadd.f32 %v3870_v10, %v8112_v24  ;;  %v5995_v10 = vor.u32 %v6372_v9, %v5992_v54  ;;  %v5902_v9 = vld [vmem:[%s9293_s13 + $0x120] sm:$0xf]  ;;  %v6353_v54 = vld [vmem:[%s9293_s13 + $0x12c] sm:$0xf0] }
 0xd12   : > { %v8590_v62 = vadd.f32 %v6481_v44, %v3880_v47  ;;  %v5966_v47 = vld [vmem:[%s9293_s13 + $0x1a0] sm:$0xf]  ;;  %4316 = vmatpush.bf16.msra.mxu1 %v5995_v10  ;;  %v6351_v10 = vld [vmem:[%s9293_s13 + $0x124] sm:$0xf] }
 0xd14   : > { %3904 = vadd.xlane.f32.xlu2 %v8590_v62 }
 0xd15   : > { %v3815_v36 = vpop.f32.mrf.mxu0 }
 0xd16   : > { %v3873_v20 = vadd.f32 %v3872_v53, %v3815_v36  ;;  %v6369_v53 = vld [vmem:[%s9293_s13 + $0x1ac] sm:$0xf0]  ;;  %v6367_v36 = vld [vmem:[%s9293_s13 + $0x1a4] sm:$0xf] }
 0xd18   : > { %v3881_v12 = vadd.f32 %v3873_v20, %v8116_v30  ;;  %v5967_v20 = vor.u32 %v6369_v53, %v5966_v47  ;;  %v5903_v53 = vor.u32 %v6353_v54, %v5902_v9 }
 0xd1a   : > { %v8594_v38 = vadd.f32 %v6481_v44, %v3881_v12  ;;  %v5968_v12 = vld [vmem:[%s9293_s13 + $0x1b0] sm:$0xf0]  ;;  %4245 = vmatpush.bf16.msrb.mxu2 %v5967_v20  ;;  %v5910_v20 = vld [vmem:[%s9293_s13 + $0x128] sm:$0xf] }
 0xd1c   : > { %3906 = vadd.xlane.f32.xlu0 %v8594_v38 }
 0xd1d   : > { %v3817_v4 = vpop.f32.mrf.mxu0 }
 0xd1e   : > { %v3875_v17 = vadd.f32 %v3874_v3, %v3817_v4  ;;  %v5974_v3 = vld [vmem:[%s9293_s13 + $0x1a8] sm:$0xf]  ;;  %v6370_v4 = vld [vmem:[%s9293_s13 + $0x1b4] sm:$0xf0] }
 0xd20   : > { %v3882_v51 = vadd.f32 %v3875_v17, %v8120_v35  ;;  %v5971_v17 = vor.u32 %v6367_v36, %v5968_v12  ;;  %v5904_v36 = vld [vmem:[%s9293_s13 + $0x130] sm:$0xf0]  ;;  %v6354_v12 = vld [vmem:[%s9293_s13 + $0x134] sm:$0xf0] }
 0xd22   : > { %v8598_v19 = vadd.f32 %v6481_v44, %v3882_v51  ;;  %v6003_v44 = vor.u32 %v6375_v56, %v6000_v2  ;;  %v5975_v51 = vor.u32 %v6370_v4, %v5974_v3  ;;  %v5918_v56 = vld [vmem:[%s9293_s13 + $0x140] sm:$0xf]  ;;  %v6357_v2 = vld [vmem:[%s9293_s13 + $0x14c] sm:$0xf0]  ;;  %v5907_v4 = vor.u32 %v6351_v10, %v5904_v36 }
 0xd23   : > { %v5919_v37 = vor.u32 %v6357_v2, %v5918_v56 }
 0xd24   : > { %3908 = vadd.xlane.f32.xlu2 %v8598_v19  ;;  %4267 = vmatpush.bf16.msra.mxu3 %v6003_v44  ;;  %v6355_v44 = vld [vmem:[%s9293_s13 + $0x144] sm:$0xf] }
 0xd25   : > { %4293 = vmatpush.bf16.msrb.mxu0 %v5975_v51  ;;  %v5923_v61 = vor.u32 %v6355_v44, %v5920_v22  ;;  %v6352_v51 = vld [vmem:[%s9293_s13 + $0x12c] sm:$0xf] }
 0xd28   : > { %4268 = vmatpush.bf16.msra.mxu3 %v5987_v41  ;;  %v5928_v41 = vld [vmem:[%s9293_s13 + $0x158] sm:$0xf0] }
 0xd29   : > { %v5931_v7 = vor.u32 %v6356_v43, %v5928_v41 }
 0xd2c   : > { %4269 = vmatpush.bf16.msra.mxu3 %v5971_v17  ;;  %v5911_v17 = vor.u32 %v6354_v12, %v5910_v20 }
 0xd50   : > { %v3899_v24 = vpop.xlane.xlu1 %3898 }
 0xd51   : > { %v3910_v6 = vmul.f32 %v3899_v24, %v7032_v23  ;;  %v6368_v24 = vld [vmem:[%s9293_s13 + $0x1ac] sm:$0xf] }
 0xd53   : > { %v8603_v59 = vsub.f32 %v8578_v57, %v3910_v6  ;;  %v5976_v6 = vld [vmem:[%s9293_s13 + $0x1b8] sm:$0xf0] }
 0xd55   : > { %v3922_v30 = vmul.f32 %v8603_v59, %v8603_v59 }
 0xd57   : > { %3928 = vadd.xlane.f32.xlu0 %v3922_v30  ;;  %v5979_v30 = vor.u32 %v6368_v24, %v5976_v6  ;;  %v5912_v24 = vld [vmem:[%s9293_s13 + $0x138] sm:$0xf0] }
 0xd58   : > { %v3901_v13 = vpop.xlane.xlu0 %3900  ;;  %v5915_v6 = vor.u32 %v6352_v51, %v5912_v24 }
 0xd59   : > { %v3911_v49 = vmul.f32 %v3901_v13, %v7032_v23  ;;  %v5950_v13 = vld [vmem:[%s9293_s13 + $0x180] sm:$0xf]  ;;  %4317 = vmatpush.bf16.msra.mxu1 %v5979_v30 }
 0xd5b   : > { %v8609_v63 = vsub.f32 %v8582_v27, %v3911_v49  ;;  %v6365_v49 = vld [vmem:[%s9293_s13 + $0x18c] sm:$0xf0] }
 0xd5d   : > { %v3923_v35 = vmul.f32 %v8609_v63, %v8609_v63 }
 0xd5f   : > { %3930 = vadd.xlane.f32.xlu1 %v3923_v35  ;;  %v6363_v35 = vld [vmem:[%s9293_s13 + $0x184] sm:$0xf] }
 0xd7f   : > { %v3903_v25 = vpop.xlane.xlu0 %3902 }
 0xd80   : > { %v3912_v11 = vmul.f32 %v3903_v25, %v7032_v23  ;;  %v5951_v25 = vor.u32 %v6365_v49, %v5950_v13  ;;  %v5886_v13 = vld [vmem:[%s9293_s13 + $0x100] sm:$0xf]  ;;  %v6349_v49 = vld [vmem:[%s9293_s13 + $0x10c] sm:$0xf0] }
 0xd82   : > { %v8615_v33 = vsub.f32 %v8586_v60, %v3912_v11  ;;  %v5952_v11 = vld [vmem:[%s9293_s13 + $0x190] sm:$0xf0]  ;;  %4246 = vmatpush.bf16.msrb.mxu2 %v5951_v25  ;;  %v6347_v25 = vld [vmem:[%s9293_s13 + $0x104] sm:$0xf] }
 0xd84   : > { %v3924_v18 = vmul.f32 %v8615_v33, %v8615_v33 }
 0xd86   : > { %3932 = vadd.xlane.f32.xlu2 %v3924_v18  ;;  %v5958_v18 = vld [vmem:[%s9293_s13 + $0x188] sm:$0xf] }
 0xd87   : > { %v3905_v16 = vpop.xlane.xlu2 %3904 }
 0xd88   : > { %v3913_v5 = vmul.f32 %v3905_v16, %v7032_v23  ;;  %v6366_v16 = vld [vmem:[%s9293_s13 + $0x194] sm:$0xf0] }
 0xd8a   : > { %v8621_v31 = vsub.f32 %v8590_v62, %v3913_v5  ;;  %v5955_v5 = vor.u32 %v6363_v35, %v5952_v11  ;;  %v5887_v35 = vor.u32 %v6349_v49, %v5886_v13  ;;  %v5888_v11 = vld [vmem:[%s9293_s13 + $0x110] sm:$0xf0] }
 0xd8c   : > { %v3925_v8 = vmul.f32 %v8621_v31, %v8621_v31  ;;  %4270 = vmatpush.bf16.msra.mxu3 %v5955_v5  ;;  %v6350_v5 = vld [vmem:[%s9293_s13 + $0x114] sm:$0xf0] }
 0xd8e   : > { %3934 = vadd.xlane.f32.xlu0 %v3925_v8  ;;  %v5959_v8 = vor.u32 %v6366_v16, %v5958_v18  ;;  %v5894_v18 = vld [vmem:[%s9293_s13 + $0x108] sm:$0xf]  ;;  %v5891_v16 = vor.u32 %v6347_v25, %v5888_v11 }
 0xd8f   : > { %v3907_v26 = vpop.xlane.xlu0 %3906 }
 0xd90   : > { %v3914_v32 = vmul.f32 %v3907_v26, %v7032_v23  ;;  %v6364_v26 = vld [vmem:[%s9293_s13 + $0x18c] sm:$0xf]  ;;  %4294 = vmatpush.bf16.msrb.mxu0 %v5959_v8 }
 0xd91   : > { %v6348_v8 = vld [vmem:[%s9293_s13 + $0x10c] sm:$0xf] }
 0xd92   : > { %v8627_v29 = vsub.f32 %v8594_v38, %v3914_v32  ;;  %v5960_v32 = vld [vmem:[%s9293_s13 + $0x198] sm:$0xf0] }
 0xd94   : > { %v3926_v58 = vmul.f32 %v8627_v29, %v8627_v29  ;;  %4295 = vmatpush.bf16.msrb.mxu0 %v5943_v55 }
 0xd96   : > { %3936 = vadd.xlane.f32.xlu1 %v3926_v58  ;;  %v5963_v58 = vor.u32 %v6364_v26, %v5960_v32  ;;  %v5896_v26 = vld [vmem:[%s9293_s13 + $0x118] sm:$0xf0]  ;;  %v5895_v32 = vor.u32 %v6350_v5, %v5894_v18 }
 0xd97   : > { %v3909_v39 = vpop.xlane.xlu2 %3908 }
 0xd98   : > { %v3915_v42 = vmul.f32 %v3909_v39, %v7032_v23  ;;  %v5934_v39 = vld [vmem:[%s9293_s13 + $0x160] sm:$0xf]  ;;  %4318 = vmatpush.bf16.msra.mxu1 %v5963_v58  ;;  %4296 = vmatpush.bf16.msrb.mxu0 %v5927_v34  ;;  %v5899_v58 = vor.u32 %v6348_v8, %v5896_v26 }
 0xd9a   : > { %v8633_v48 = vsub.f32 %v8598_v19, %v3915_v42  ;;  %v6361_v42 = vld [vmem:[%s9293_s13 + $0x16c] sm:$0xf0] }
 0xd9b   : > { %v5935_v28 = vor.u32 %v6361_v42, %v5934_v39 }
 0xd9c   : > { %v3927_v15 = vmul.f32 %v8633_v48, %v8633_v48  ;;  %4319 = vmatpush.bf16.msra.mxu1 %v5947_v14  ;;  %4297 = vmatpush.bf16.msrb.mxu0 %v5911_v17 }
 0xd9d   : > { %4247 = vmatpush.bf16.msrb.mxu2 %v5935_v28 }
 0xd9e   : > { %3938 = vadd.xlane.f32.xlu2 %v3927_v15  ;;  %v6359_v15 = vld [vmem:[%s9293_s13 + $0x164] sm:$0xf] }
 0xd9f   : > { %v5939_v21 = vor.u32 %v6359_v15, %v5936_v1 }
 0xda0   : > { %4320 = vmatpush.bf16.msra.mxu1 %v5931_v7  ;;  %4298 = vmatpush.bf16.msrb.mxu0 %v5895_v32 }
 0xda1   : > { %4271 = vmatpush.bf16.msra.mxu3 %v5939_v21  ;;  %4248 = vmatpush.bf16.msrb.mxu2 %v5919_v37  ;;  %v8834_v37 = vld [vmem:[%s9291_s11 + $0x1] ss:$0 sm:$0xff] }
 0xda4   : > { %4321 = vmatpush.bf16.msra.mxu1 %v5915_v6 }
 0xda5   : > { %4272 = vmatpush.bf16.msra.mxu3 %v5923_v61  ;;  %4249 = vmatpush.bf16.msrb.mxu2 %v5903_v53  ;;  %v8840_v61 = vld [vmem:[%s9292_s12 + $0x1] ss:$0 sm:$0xff] }
 0xda8   : > { %4322 = vmatpush.bf16.msra.mxu1 %v5899_v58 }
 0xda9   : > { %4273 = vmatpush.bf16.msra.mxu3 %v5907_v4  ;;  %4250 = vmatpush.bf16.msrb.mxu2 %v5887_v35 }
 0xdad   : > { %4274 = vmatpush.bf16.msra.mxu3 %v5891_v16 }
 0xdca   : > { %v3929_v47 = vpop.xlane.xlu0 %3928 }
 0xdcb   : > { %v3940_v3 = vmul.f32 %v3929_v47, %v7032_v23 }
 0xdcd   : > { %v3946_v30 = vadd.f32 1e-06, %v3940_v3 }
 0xdcf   : > { %6669 = vrsqrt.f32 %v3946_v30  ;;  %vm3958_vm5 = vweird.f32 %v3946_v30 }
 0xdd2   : > { %v3931_v39 = vpop.xlane.xlu1 %3930 }
 0xdd3   : > { %v3941_v42 = vmul.f32 %v3931_v39, %v7032_v23 }
 0xdd5   : > { %v6670_v15 = vpop.eup %6669  ;;  %v3947_v28 = vadd.f32 1e-06, %v3941_v42 }
 0xdd6   : > { %v3953_v1 = vmul.f32 %v6670_v15, %v3946_v30  ;;  %vm3959_vm4 = vweird.f32 %v6670_v15 }
 0xdd7   : > { %6671 = vrsqrt.f32 %v3947_v28  ;;  %vm3960_vm6 = vmor %vm3958_vm5, %vm3959_vm4  ;;  %vm3968_vm8 = vweird.f32 %v3947_v28 }
 0xdd8   : > { %v3954_v45 = vmul.f32 %v6670_v15, %v3953_v1 }
 0xdda   : > { %v3955_v0 = vmul.f32 0.5, %v3954_v45 }
 0xddc   : > { %v3956_v21 = vsub.f32 1.5, %v3955_v0 }
 0xddd   : > { %v6672_v55 = vpop.eup %6671 }
 0xdde   : > { %v3957_v50 = vmul.f32 %v6670_v15, %v3956_v21  ;;  %v3963_v46 = vmul.f32 %v6672_v55, %v3947_v28  ;;  %vm3969_vm7 = vweird.f32 %v6672_v55 }
 0xddf   : > { %vm3970_vm9 = vmor %vm3968_vm8, %vm3969_vm7 }
 0xde0   : > { %v3964_v14 = vmul.f32 %v6672_v55, %v3963_v46  ;;  %v3961_v56 = vsel %vm3960_vm6, %v6670_v15, %v3957_v50 }
 0xde1   : > { %v4012_v22 = vmul.f32 %v3961_v56, %v8603_v59 }
 0xde2   : > { %v3965_v2 = vmul.f32 0.5, %v3964_v14 }
 0xde3   : > { %v4021_v34 = vmul.f32 %v8834_v37, %v4012_v22 }
 0xde4   : > { %v3966_v44 = vsub.f32 1.5, %v3965_v2 }
 0xde5   : > { %v4030_v7 = vadd.f32 %v8840_v61, %v4021_v34 }
 0xde6   : > { %v3967_v40 = vmul.f32 %v6672_v55, %v3966_v44 }
 0xde8   : > { %v3971_v52 = vsel %vm3970_vm9, %v6672_v55, %v3967_v40 }
 0xde9   : > { %v4013_v43 = vmul.f32 %v3971_v52, %v8609_v63 }
 0xdeb   : > { %v4022_v41 = vmul.f32 %v8834_v37, %v4013_v43 }
 0xded   : > { %v4031_v9 = vadd.f32 %v8840_v61, %v4022_v41 }
 0xdef   : > { %v4036_v59 = vpack.c.bf16 %v4031_v9, %v4030_v7 }
 0xdf1   : > { %4251 = vmatmul.bf16.vlgmr.msrb.gmra.mxu2 %v4036_v59  ;;  %4275 = vmatmul.bf16.vlgmr.msra.gmra.mxu3 %v4036_v59 }
 0xdf2   : > { %4299 = vmatmul.bf16.vlgmr.msrb.gmra.mxu0 %v4036_v59  ;;  %4323 = vmatmul.bf16.vlgmr.msra.gmra.mxu1 %v4036_v59 }
 0xdf9   : > { %v3933_v54 = vpop.xlane.xlu2 %3932 }
 0xdfa   : > { %v3942_v10 = vmul.f32 %v3933_v54, %v7032_v23  ;;  %v6402_v54 = vld [vmem:[%s9295_s15 + $0x1b8] sm:$0xff] }
 0xdfb   : > { %4877 = vmatpush.bf16.msra.mxu0 %v6402_v54 }
 0xdfc   : > { %v3948_v47 = vadd.f32 1e-06, %v3942_v10  ;;  %v6410_v10 = vld [vmem:[%s9295_s15 + $0x1f8] sm:$0xff] }
 0xdfd   : > { %4901 = vmatpush.bf16.msrb.mxu1 %v6410_v10 }
 0xdfe   : > { %6673 = vrsqrt.f32 %v3948_v47  ;;  %vm3978_vm11 = vweird.f32 %v3948_v47 }
 0xe01   : > { %v3935_v53 = vpop.xlane.xlu0 %3934 }
 0xe02   : > { %v3943_v36 = vmul.f32 %v3935_v53, %v7032_v23  ;;  %v6400_v53 = vld [vmem:[%s9295_s15 + $0x1a8] sm:$0xff] }
 0xe04   : > { %v6674_v63 = vpop.eup %6673  ;;  %v3949_v20 = vadd.f32 1e-06, %v3943_v36  ;;  %v6408_v36 = vld [vmem:[%s9295_s15 + $0x1e8] sm:$0xff] }
 0xe05   : > { %v3973_v12 = vmul.f32 %v6674_v63, %v3948_v47  ;;  %vm3979_vm10 = vweird.f32 %v6674_v63  ;;  %v6394_v47 = vld [vmem:[%s9295_s15 + $0x178] sm:$0xff] }
 0xe06   : > { %6675 = vrsqrt.f32 %v3949_v20  ;;  %vm3980_vm12 = vmor %vm3978_vm11, %vm3979_vm10  ;;  %vm3988_vm14 = vweird.f32 %v3949_v20  ;;  %4853 = vmatpush.bf16.msrb.mxu3 %v6394_v47 }
 0xe07   : > { %v3974_v3 = vmul.f32 %v6674_v63, %v3973_v12  ;;  %v6399_v12 = vld [vmem:[%s9295_s15 + $0x1a0] sm:$0xff] }
 0xe09   : > { %v3975_v4 = vmul.f32 0.5, %v3974_v3  ;;  %v3937_v17 = vpop.xlane.xlu1 %3936  ;;  %v6407_v3 = vld [vmem:[%s9295_s15 + $0x1e0] sm:$0xff] }
 0xe0a   : > { %v3944_v51 = vmul.f32 %v3937_v17, %v7032_v23  ;;  %v6392_v17 = vld [vmem:[%s9295_s15 + $0x168] sm:$0xff] }
 0xe0b   : > { %v3976_v24 = vsub.f32 1.5, %v3975_v4  ;;  %v6384_v4 = vld [vmem:[%s9295_s15 + $0x128] sm:$0xff] }
 0xe0c   : > { %v6676_v6 = vpop.eup %6675  ;;  %v3950_v30 = vadd.f32 1e-06, %v3944_v51  ;;  %v6398_v51 = vld [vmem:[%s9295_s15 + $0x198] sm:$0xff] }
 0xe0d   : > { %v3977_v13 = vmul.f32 %v6674_v63, %v3976_v24  ;;  %v3983_v49 = vmul.f32 %v6676_v6, %v3949_v20  ;;  %vm3989_vm13 = vweird.f32 %v6676_v6  ;;  %v6393_v20 = vld [vmem:[%s9295_s15 + $0x170] sm:$0xff]  ;;  %v6406_v24 = vld [vmem:[%s9295_s15 + $0x1d8] sm:$0xff] }
 0xe0e   : > { %6677 = vrsqrt.f32 %v3950_v30  ;;  %vm3990_vm15 = vmor %vm3988_vm14, %vm3989_vm13  ;;  %vm3998_vm1 = vweird.f32 %v3950_v30  ;;  %4854 = vmatpush.bf16.msrb.mxu3 %v6393_v20 }
 0xe0f   : > { %v3984_v35 = vmul.f32 %v6676_v6, %v3983_v49  ;;  %v3981_v25 = vsel %vm3980_vm12, %v6674_v63, %v3977_v13  ;;  %v6385_v63 = vld [vmem:[%s9295_s15 + $0x130] sm:$0xff] }
 0xe10   : > { %v4014_v26 = vmul.f32 %v3981_v25, %v8615_v33  ;;  %v6397_v13 = vld [vmem:[%s9295_s15 + $0x190] sm:$0xff]  ;;  %v6382_v25 = vld [vmem:[%s9295_s15 + $0x118] sm:$0xff] }
 0xe11   : > { %v3985_v11 = vmul.f32 0.5, %v3984_v35  ;;  %v3939_v18 = vpop.xlane.xlu2 %3938  ;;  %v6405_v49 = vld [vmem:[%s9295_s15 + $0x1d0] sm:$0xff]  ;;  %v5883_v35 = vld [vmem:[%s9294_s14 + $0x4] sm:$0xf] }
 0xe12   : > { %v3945_v16 = vmul.f32 %v3939_v18, %v7032_v23  ;;  %v4023_v1 = vmul.f32 %v8834_v37, %v4014_v26  ;;  %4855 = vmatpush.bf16.msrb.mxu3 %v6392_v17  ;;  %v6396_v18 = vld [vmem:[%s9295_s15 + $0x188] sm:$0xff]  ;;  %v6381_v26 = vld [vmem:[%s9295_s15 + $0x110] sm:$0xff] }
 0xe13   : > { %v3986_v5 = vsub.f32 1.5, %v3985_v11  ;;  %v6390_v11 = vld [vmem:[%s9295_s15 + $0x158] sm:$0xff] }
 0xe14   : > { %v6678_v8 = vpop.eup %6677  ;;  %v3951_v32 = vadd.f32 1e-06, %v3945_v16  ;;  %v4032_v33 = vadd.f32 %v8840_v61, %v4023_v1  ;;  %v6404_v16 = vld [vmem:[%s9295_s15 + $0x1c8] sm:$0xff] }
 0xe15   : > { %v3987_v58 = vmul.f32 %v6676_v6, %v3986_v5  ;;  %v3993_v39 = vmul.f32 %v6678_v8, %v3950_v30  ;;  %vm3999_vm0 = vweird.f32 %v6678_v8  ;;  %v6391_v30 = vld [vmem:[%s9295_s15 + $0x160] sm:$0xff]  ;;  %v8938_v5 = vperm.slane %v5883_v35, 2 }
 0xe16   : > { %6679 = vrsqrt.f32 %v3951_v32  ;;  %vm4000_vm2 = vmor %vm3998_vm1, %vm3999_vm0  ;;  %vm4008_vm4 = vweird.f32 %v3951_v32  ;;  %4856 = vmatpush.bf16.msrb.mxu3 %v6391_v30 }
 0xe17   : > { %v3991_v42 = vsel %vm3990_vm15, %v6676_v6, %v3987_v58  ;;  %v3994_v15 = vmul.f32 %v6678_v8, %v3993_v39  ;;  %v6383_v6 = vld [vmem:[%s9295_s15 + $0x120] sm:$0xff] }
 0xe18   : > { %v4015_v28 = vmul.f32 %v3991_v42, %v8621_v31  ;;  %v6395_v42 = vld [vmem:[%s9295_s15 + $0x180] sm:$0xff] }
 0xe19   : > { %v3995_v45 = vmul.f32 0.5, %v3994_v15  ;;  %v6403_v15 = vld [vmem:[%s9295_s15 + $0x1c0] sm:$0xff] }
 0xe1a   : > { %v4024_v0 = vmul.f32 %v8834_v37, %v4015_v28  ;;  %4857 = vmatpush.bf16.msrb.mxu3 %v6390_v11 }
 0xe1b   : > { %v3996_v21 = vsub.f32 1.5, %v3995_v45  ;;  %v8960_v45 = vperm.slane %v5883_v35, 0 }
 0xe1c   : > { %v6680_v55 = vpop.eup %6679  ;;  %v4033_v50 = vadd.f32 %v8840_v61, %v4024_v0  ;;  %v8962_v0 = vperm.slane %v5883_v35, 1 }
 0xe1d   : > { %v3997_v46 = vmul.f32 %v6678_v8, %v3996_v21  ;;  %v4003_v14 = vmul.f32 %v6680_v55, %v3951_v32  ;;  %vm4009_vm3 = vweird.f32 %v6680_v55  ;;  %v6389_v32 = vld [vmem:[%s9295_s15 + $0x150] sm:$0xff]  ;;  %v6380_v21 = vld [vmem:[%s9295_s15 + $0x108] sm:$0xff] }
 0xe1e   : > { %v4037_v56 = vpack.c.bf16 %v4033_v50, %v4032_v33  ;;  %vm4010_vm5 = vmor %vm4008_vm4, %vm4009_vm3  ;;  %4858 = vmatpush.bf16.msrb.mxu3 %v6389_v32 }
 0xe1f   : > { %v4001_v2 = vsel %vm4000_vm2, %v6678_v8, %v3997_v46  ;;  %v4004_v44 = vmul.f32 %v6680_v55, %v4003_v14  ;;  %v8940_v8 = vperm.slane %v5883_v35, 3 }
 0xe20   : > { %v4016_v31 = vmul.f32 %v4001_v2, %v8627_v29  ;;  %4256 = vmatmul.bf16.gmra.mxu2 %v4037_v56  ;;  %4280 = vmatmul.bf16.gmra.mxu3 %v4037_v56 }
 0xe21   : > { %v4005_v22 = vmul.f32 0.5, %v4004_v44  ;;  %4304 = vmatmul.bf16.gmra.mxu0 %v4037_v56  ;;  %4328 = vmatmul.bf16.gmra.mxu1 %v4037_v56 }
 0xe22   : > { %v4025_v40 = vmul.f32 %v8834_v37, %v4016_v31 }
 0xe23   : > { %v4006_v52 = vsub.f32 1.5, %v4005_v22  ;;  %v6379_v22 = vld [vmem:[%s9295_s15 + $0x100] sm:$0xff] }
 0xe24   : > { %v4034_v34 = vadd.f32 %v8840_v61, %v4025_v40  ;;  %v6387_v40 = vld [vmem:[%s9295_s15 + $0x140] sm:$0xff] }
 0xe25   : > { %v4007_v43 = vmul.f32 %v6680_v55, %v4006_v52 }
 0xe27   : > { %v4011_v41 = vsel %vm4010_vm5, %v6680_v55, %v4007_v43  ;;  %v6388_v55 = vld [vmem:[%s9295_s15 + $0x148] sm:$0xff] }
 0xe28   : > { %v4017_v7 = vmul.f32 %v4011_v41, %v8633_v48  ;;  %v6401_v48 = vld [vmem:[%s9295_s15 + $0x1b0] sm:$0xff]  ;;  %4859 = vmatpush.bf16.msrb.mxu3 %v6388_v55 }
 0xe29   : > { %4878 = vmatpush.bf16.msra.mxu0 %v6401_v48 }
 0xe2a   : > { %v4026_v9 = vmul.f32 %v8834_v37, %v4017_v7  ;;  %v6409_v37 = vld [vmem:[%s9295_s15 + $0x1f0] sm:$0xff] }
 0xe2b   : > { %4902 = vmatpush.bf16.msrb.mxu1 %v6409_v37 }
 0xe2c   : > { %v4035_v29 = vadd.f32 %v8840_v61, %v4026_v9  ;;  %v6386_v61 = vld [vmem:[%s9295_s15 + $0x138] sm:$0xff]  ;;  %4860 = vmatpush.bf16.msrb.mxu3 %v6387_v40 }
 0xe2d   : > { %4829 = vmatpush.bf16.msra.mxu2 %v6386_v61  ;;  %4879 = vmatpush.bf16.msra.mxu0 %v6400_v53 }
 0xe2e   : > { %v4038_v59 = vpack.c.bf16 %v4035_v29, %v4034_v34 }
 0xe2f   : > { %4903 = vmatpush.bf16.msrb.mxu1 %v6408_v36 }
 0xe30   : > { %4261 = vmatmul.bf16.gmra.mxu2 %v4038_v59  ;;  %4285 = vmatmul.bf16.gmra.mxu3 %v4038_v59 }
 0xe31   : > { %4309 = vmatmul.bf16.gmra.mxu0 %v4038_v59  ;;  %4333 = vmatmul.bf16.gmra.mxu1 %v4038_v59 }
 0xe32   : > { %4830 = vmatpush.bf16.msra.mxu2 %v6385_v63  ;;  %4880 = vmatpush.bf16.msra.mxu0 %v6399_v12 }
 0xe33   : > { %4904 = vmatpush.bf16.msrb.mxu1 %v6407_v3 }
 0xe36   : > { %4831 = vmatpush.bf16.msra.mxu2 %v6384_v4  ;;  %4881 = vmatpush.bf16.msra.mxu0 %v6398_v51 }
 0xe37   : > { %4905 = vmatpush.bf16.msrb.mxu1 %v6406_v24 }
 0xe3a   : > { %4832 = vmatpush.bf16.msra.mxu2 %v6383_v6  ;;  %4882 = vmatpush.bf16.msra.mxu0 %v6397_v13 }
 0xe3b   : > { %4906 = vmatpush.bf16.msrb.mxu1 %v6405_v49 }
 0xe3e   : > { %4833 = vmatpush.bf16.msra.mxu2 %v6382_v25  ;;  %4883 = vmatpush.bf16.msra.mxu0 %v6396_v18 }
 0xe3f   : > { %4907 = vmatpush.bf16.msrb.mxu1 %v6404_v16 }
 0xe42   : > { %4834 = vmatpush.bf16.msra.mxu2 %v6381_v26  ;;  %4884 = vmatpush.bf16.msra.mxu0 %v6395_v42 }
 0xe43   : > { %4908 = vmatpush.bf16.msrb.mxu1 %v6403_v15 }
 0xe46   : > { %4835 = vmatpush.bf16.msra.mxu2 %v6380_v21 }
 0xe4a   : > { %4836 = vmatpush.bf16.msra.mxu2 %v6379_v22 }
 0xe6f   : > { %v4300_v58 = vpop.f32.mrf.mxu0  ;;  %v4324_v39 = vpop.f32.mrf.mxu1 }
 0xe70   : > { %v8955_v28 = vadd.f32 %v4300_v58, %v8938_v5  ;;  %v8958_v1 = vadd.f32 %v4324_v39, %v8940_v8 }
 0xe72   : > { %v4341_v33 = vmul.f32 %v8955_v28, %v8955_v28  ;;  %v4342_v50 = vmul.f32 %v8958_v1, %v8958_v1 }
 0xe74   : > { %v4365_v46 = vmul.f32 %v4341_v33, %v8955_v28  ;;  %v4366_v14 = vmul.f32 %v4342_v50, %v8958_v1  ;;  %v4252_v56 = vpop.f32.mrf.mxu2  ;;  %v4276_v2 = vpop.f32.mrf.mxu3 }
 0xe75   : > { %v8977_v44 = vadd.f32 %v4252_v56, %v8960_v45  ;;  %v8980_v31 = vadd.f32 %v4276_v2, %v8962_v0 }
 0xe76   : > { %v4389_v52 = vmul.f32 0.044715, %v4365_v46  ;;  %v4390_v34 = vmul.f32 0.044715, %v4366_v14 }
 0xe77   : > { %v4339_v43 = vmul.f32 %v8977_v44, %v8977_v44  ;;  %v4340_v41 = vmul.f32 %v8980_v31, %v8980_v31  ;;  %v4302_v7 = vpop.f32.mrf.mxu0  ;;  %v4326_v9 = vpop.f32.mrf.mxu1 }
 0xe78   : > { %v4413_v29 = vadd.f32 %v4389_v52, %v8955_v28  ;;  %v4414_v59 = vadd.f32 %v4390_v34, %v8958_v1  ;;  %v4303_v54 = vadd.f32 %v4302_v7, %v8938_v5  ;;  %v8996_v10 = vadd.f32 %v4326_v9, %v8940_v8 }
 0xe79   : > { %v4363_v48 = vmul.f32 %v4339_v43, %v8977_v44  ;;  %v4364_v37 = vmul.f32 %v4340_v41, %v8980_v31 }
 0xe7a   : > { %v4437_v61 = vmul.f32 0.7978846, %v4413_v29  ;;  %v4345_v47 = vmul.f32 %v4303_v54, %v4303_v54  ;;  %v4346_v53 = vmul.f32 %v8996_v10, %v8996_v10  ;;  %v4438_v36 = vmul.f32 0.7978846, %v4414_v59 }
 0xe7b   : > { %v4387_v63 = vmul.f32 0.044715, %v4363_v48  ;;  %v4388_v20 = vmul.f32 0.044715, %v4364_v37 }
 0xe7c   : > { %v4369_v12 = vmul.f32 %v4345_v47, %v4303_v54  ;;  %v4370_v3 = vmul.f32 %v4346_v53, %v8996_v10  ;;  %v4254_v4 = vpop.f32.mrf.mxu2  ;;  %v4278_v17 = vpop.f32.mrf.mxu3  ;;  %6681 = vtanh.f32 %v4437_v61 }
 0xe7d   : > { %v4411_v51 = vadd.f32 %v4387_v63, %v8977_v44  ;;  %v4412_v24 = vadd.f32 %v4388_v20, %v8980_v31  ;;  %v4255_v6 = vadd.f32 %v4254_v4, %v8960_v45  ;;  %v4279_v49 = vadd.f32 %v4278_v17, %v8962_v0 }
 0xe7e   : > { %v4393_v30 = vmul.f32 0.044715, %v4369_v12  ;;  %v4394_v13 = vmul.f32 0.044715, %v4370_v3  ;;  %6683 = vtanh.f32 %v4438_v36 }
 0xe7f   : > { %v4435_v35 = vmul.f32 0.7978846, %v4411_v51  ;;  %v4436_v25 = vmul.f32 0.7978846, %v4412_v24  ;;  %v4343_v11 = vmul.f32 %v4255_v6, %v4255_v6  ;;  %v4344_v26 = vmul.f32 %v4279_v49, %v4279_v49 }
 0xe80   : > { %v4417_v18 = vadd.f32 %v4393_v30, %v4303_v54  ;;  %v4418_v16 = vadd.f32 %v4394_v13, %v8996_v10 }
 0xe81   : > { %v4367_v32 = vmul.f32 %v4343_v11, %v4255_v6  ;;  %6685 = vtanh.f32 %v4435_v35  ;;  %v4368_v42 = vmul.f32 %v4344_v26, %v4279_v49 }
 0xe82   : > { %v4441_v58 = vmul.f32 0.7978846, %v4417_v18  ;;  %v4442_v39 = vmul.f32 0.7978846, %v4418_v16  ;;  %6687 = vtanh.f32 %v4436_v25  ;;  %v6682_v21 = vpop.eup %6681 }
 0xe83   : > { %v4391_v15 = vmul.f32 0.044715, %v4367_v32  ;;  %v4392_v55 = vmul.f32 0.044715, %v4368_v42  ;;  %v4485_v14 = vadd.f32 1.0, %v6682_v21 }
 0xe84   : > { %6689 = vtanh.f32 %v4441_v58  ;;  %v6684_v33 = vpop.eup %6683 }
 0xe85   : > { %6691 = vtanh.f32 %v4442_v39  ;;  %v4415_v50 = vadd.f32 %v4391_v15, %v4255_v6  ;;  %v4416_v46 = vadd.f32 %v4392_v55, %v4279_v49  ;;  %v4486_v22 = vadd.f32 1.0, %v6684_v33 }
 0xe86   : > { %v4509_v41 = vmul.f32 0.5, %v4485_v14 }
 0xe87   : > { %v4439_v56 = vmul.f32 0.7978846, %v4415_v50  ;;  %v6686_v2 = vpop.eup %6685  ;;  %v4440_v40 = vmul.f32 0.7978846, %v4416_v46  ;;  %v4510_v9 = vmul.f32 0.5, %v4486_v22 }
 0xe88   : > { %v6688_v52 = vpop.eup %6687  ;;  %v4483_v29 = vadd.f32 1.0, %v6686_v2  ;;  %v4533_v53 = vmul.f32 %v4509_v41, %v8955_v28 }
 0xe89   : > { %6693 = vtanh.f32 %v4439_v56  ;;  %v4484_v48 = vadd.f32 1.0, %v6688_v52  ;;  %v4534_v20 = vmul.f32 %v4510_v9, %v8958_v1 }
 0xe8a   : > { %v6690_v34 = vpop.eup %6689  ;;  %6695 = vtanh.f32 %v4440_v40  ;;  %v4507_v12 = vmul.f32 0.5, %v4483_v29 }
 0xe8b   : > { %v6692_v43 = vpop.eup %6691  ;;  %v4489_v7 = vadd.f32 1.0, %v6690_v34  ;;  %v4508_v17 = vmul.f32 0.5, %v4484_v48 }
 0xe8c   : > { %v4490_v59 = vadd.f32 1.0, %v6692_v43  ;;  %v4531_v25 = vmul.f32 %v4507_v12, %v8977_v44 }
 0xe8d   : > { %v4513_v37 = vmul.f32 0.5, %v4489_v7  ;;  %v4532_v28 = vmul.f32 %v4508_v17, %v8980_v31 }
 0xe8e   : > { %v4514_v61 = vmul.f32 0.5, %v4490_v59 }
 0xe8f   : > { %v6694_v47 = vpop.eup %6693  ;;  %v4537_v36 = vmul.f32 %v4513_v37, %v4303_v54 }
 0xe90   : > { %v6696_v63 = vpop.eup %6695  ;;  %v4538_v3 = vmul.f32 %v4514_v61, %v8996_v10  ;;  %v4487_v4 = vadd.f32 1.0, %v6694_v47 }
 0xe91   : > { %v4557_v51 = vpack.c.bf16 %v4537_v36, %v4533_v53  ;;  %v4488_v24 = vadd.f32 1.0, %v6696_v63 }
 0xe92   : > { %v4558_v30 = vpack.c.bf16 %v4538_v3, %v4534_v20  ;;  %v4511_v13 = vmul.f32 0.5, %v4487_v4 }
 0xe93   : > { %v4512_v35 = vmul.f32 0.5, %v4488_v24  ;;  %4885 = vmatmul.bf16.vlgmr.msra.gmra.mxu0 %v4557_v51 }
 0xe94   : > { %v4535_v11 = vmul.f32 %v4511_v13, %v4255_v6  ;;  %4909 = vmatmul.bf16.vlgmr.msrb.gmra.mxu1 %v4558_v30 }
 0xe95   : > { %v4536_v54 = vmul.f32 %v4512_v35, %v4279_v49 }
 0xe96   : > { %v4555_v18 = vpack.c.bf16 %v4535_v11, %v4531_v25 }
 0xe97   : > { %v4556_v1 = vpack.c.bf16 %v4536_v54, %v4532_v28 }
 0xe98   : > { %4837 = vmatmul.bf16.vlgmr.msra.gmra.mxu2 %v4555_v18 }
 0xe99   : > { %4861 = vmatmul.bf16.vlgmr.msrb.gmra.mxu3 %v4556_v1 }
 0xe9e   : > { %v4305_v10 = vpop.f32.mrf.mxu0  ;;  %v4329_v16 = vpop.f32.mrf.mxu1 }
 0xe9f   : > { %v9014_v26 = vadd.f32 %v4305_v10, %v8938_v5  ;;  %v9017_v32 = vadd.f32 %v4329_v16, %v8940_v8 }
 0xea1   : > { %v4349_v44 = vmul.f32 %v9014_v26, %v9014_v26  ;;  %v4350_v6 = vmul.f32 %v9017_v32, %v9017_v32 }
 0xea3   : > { %v4373_v31 = vmul.f32 %v4349_v44, %v9014_v26  ;;  %v4374_v49 = vmul.f32 %v4350_v6, %v9017_v32  ;;  %v4257_v58 = vpop.f32.mrf.mxu2  ;;  %v4281_v39 = vpop.f32.mrf.mxu3 }
 0xea4   : > { %v9026_v42 = vadd.f32 %v4257_v58, %v8960_v45  ;;  %v9029_v15 = vadd.f32 %v4281_v39, %v8962_v0 }
 0xea5   : > { %v4397_v21 = vmul.f32 0.044715, %v4373_v31  ;;  %v4398_v55 = vmul.f32 0.044715, %v4374_v49 }
 0xea6   : > { %v4347_v33 = vmul.f32 %v9026_v42, %v9026_v42  ;;  %v4348_v50 = vmul.f32 %v9029_v15, %v9029_v15  ;;  %v4307_v46 = vpop.f32.mrf.mxu0  ;;  %v4331_v14 = vpop.f32.mrf.mxu1 }
 0xea7   : > { %v4421_v56 = vadd.f32 %v4397_v21, %v9014_v26  ;;  %v4422_v2 = vadd.f32 %v4398_v55, %v9017_v32  ;;  %v9038_v22 = vadd.f32 %v4307_v46, %v8938_v5  ;;  %v9041_v40 = vadd.f32 %v4331_v14, %v8940_v8 }
 0xea8   : > { %v4371_v52 = vmul.f32 %v4347_v33, %v9026_v42  ;;  %v4372_v34 = vmul.f32 %v4348_v50, %v9029_v15 }
 0xea9   : > { %v4445_v43 = vmul.f32 0.7978846, %v4421_v56  ;;  %v4446_v41 = vmul.f32 0.7978846, %v4422_v2  ;;  %v4353_v7 = vmul.f32 %v9038_v22, %v9038_v22  ;;  %v4354_v9 = vmul.f32 %v9041_v40, %v9041_v40 }
 0xeaa   : > { %v4395_v29 = vmul.f32 0.044715, %v4371_v52  ;;  %v4396_v59 = vmul.f32 0.044715, %v4372_v34 }
 0xeab   : > { %6697 = vtanh.f32 %v4445_v43  ;;  %v4377_v48 = vmul.f32 %v4353_v7, %v9038_v22  ;;  %v4378_v37 = vmul.f32 %v4354_v9, %v9041_v40  ;;  %v4259_v61 = vpop.f32.mrf.mxu2  ;;  %v4283_v47 = vpop.f32.mrf.mxu3 }
 0xeac   : > { %6699 = vtanh.f32 %v4446_v41  ;;  %v4419_v53 = vadd.f32 %v4395_v29, %v9026_v42  ;;  %v4420_v36 = vadd.f32 %v4396_v59, %v9029_v15  ;;  %v9054_v63 = vadd.f32 %v4259_v61, %v8960_v45 }
 0xead   : > { %v4401_v20 = vmul.f32 0.044715, %v4377_v48  ;;  %v4402_v12 = vmul.f32 0.044715, %v4378_v37  ;;  %v9057_v3 = vadd.f32 %v4283_v47, %v8962_v0 }
 0xeae   : > { %v4443_v4 = vmul.f32 0.7978846, %v4419_v53  ;;  %v4444_v17 = vmul.f32 0.7978846, %v4420_v36  ;;  %v4351_v51 = vmul.f32 %v9054_v63, %v9054_v63  ;;  %v4310_v24 = vpop.f32.mrf.mxu0  ;;  %v4334_v30 = vpop.f32.mrf.mxu1 }
 0xeaf   : > { %v4425_v13 = vadd.f32 %v4401_v20, %v9038_v22  ;;  %v4426_v35 = vadd.f32 %v4402_v12, %v9041_v40  ;;  %v4352_v25 = vmul.f32 %v9057_v3, %v9057_v3  ;;  %v9066_v11 = vadd.f32 %v4310_v24, %v8938_v5 }
 0xeb0   : > { %6701 = vtanh.f32 %v4443_v4  ;;  %v4375_v28 = vmul.f32 %v4351_v51, %v9054_v63  ;;  %v9070_v54 = vadd.f32 %v4334_v30, %v8940_v8 }
 0xeb1   : > { %v6698_v18 = vpop.eup %6697  ;;  %6703 = vtanh.f32 %v4444_v17  ;;  %v4449_v1 = vmul.f32 0.7978846, %v4425_v13  ;;  %v4376_v10 = vmul.f32 %v4352_v25, %v9057_v3  ;;  %v4450_v44 = vmul.f32 0.7978846, %v4426_v35 }
 0xeb2   : > { %v6700_v16 = vpop.eup %6699  ;;  %v4399_v6 = vmul.f32 0.044715, %v4375_v28  ;;  %v4357_v31 = vmul.f32 %v9066_v11, %v9066_v11  ;;  %v4358_v49 = vmul.f32 %v9070_v54, %v9070_v54  ;;  %v4493_v46 = vadd.f32 1.0, %v6698_v18 }
 0xeb3   : > { %6705 = vtanh.f32 %v4449_v1  ;;  %v4400_v58 = vmul.f32 0.044715, %v4376_v10  ;;  %v4262_v39 = vpop.f32.mrf.mxu2  ;;  %v4286_v21 = vpop.f32.mrf.mxu3  ;;  %v4494_v52 = vadd.f32 1.0, %v6700_v16 }
 0xeb4   : > { %v4423_v55 = vadd.f32 %v4399_v6, %v9054_v63  ;;  %v4381_v33 = vmul.f32 %v4357_v31, %v9066_v11  ;;  %v4382_v50 = vmul.f32 %v4358_v49, %v9070_v54  ;;  %v9082_v56 = vadd.f32 %v4262_v39, %v8960_v45 }
 0xeb5   : > { %v4424_v14 = vadd.f32 %v4400_v58, %v9057_v3  ;;  %v9085_v2 = vadd.f32 %v4286_v21, %v8962_v0  ;;  %6707 = vtanh.f32 %v4450_v44  ;;  %v4517_v12 = vmul.f32 0.5, %v4493_v46 }
 0xeb6   : > { %v9087_v34 = vpop.eup %6701  ;;  %v4447_v43 = vmul.f32 0.7978846, %v4423_v55  ;;  %v4405_v41 = vmul.f32 0.044715, %v4381_v33  ;;  %v4406_v7 = vmul.f32 0.044715, %v4382_v50  ;;  %v4312_v9 = vpop.f32.mrf.mxu0  ;;  %v4355_v37 = vmul.f32 %v9082_v56, %v9082_v56 }
 0xeb7   : > { %v4336_v29 = vpop.f32.mrf.mxu1  ;;  %v9089_v59 = vpop.eup %6703  ;;  %v4448_v48 = vmul.f32 0.7978846, %v4424_v14  ;;  %v4356_v61 = vmul.f32 %v9085_v2, %v9085_v2  ;;  %v9096_v47 = vadd.f32 %v4312_v9, %v8938_v5  ;;  %v4541_v31 = vmul.f32 %v4517_v12, %v9014_v26 }
 0xeb8   : > { %v4429_v53 = vadd.f32 %v4405_v41, %v9066_v11  ;;  %v4430_v36 = vadd.f32 %v4406_v7, %v9070_v54  ;;  %v9101_v20 = vadd.f32 %v4336_v29, %v8940_v8  ;;  %6709 = vtanh.f32 %v4447_v43 }
 0xeb9   : > { %v6706_v4 = vpop.eup %6705  ;;  %v4379_v17 = vmul.f32 %v4355_v37, %v9082_v56  ;;  %v4380_v51 = vmul.f32 %v4356_v61, %v9085_v2  ;;  %v4361_v24 = vmul.f32 %v9096_v47, %v9096_v47  ;;  %6711 = vtanh.f32 %v4448_v48 }
 0xeba   : > { %v4453_v5 = vmul.f32 0.7978846, %v4429_v53  ;;  %v4362_v30 = vmul.f32 %v9101_v20, %v9101_v20  ;;  %v4497_v13 = vadd.f32 1.0, %v6706_v4  ;;  %v4454_v35 = vmul.f32 0.7978846, %v4430_v36 }
 0xebb   : > { %v4403_v25 = vmul.f32 0.044715, %v4379_v17  ;;  %v4404_v8 = vmul.f32 0.044715, %v4380_v51  ;;  %v4385_v28 = vmul.f32 %v4361_v24, %v9096_v47  ;;  %v4264_v18 = vpop.f32.mrf.mxu2  ;;  %v4288_v1 = vpop.f32.mrf.mxu3  ;;  %v4518_v37 = vmul.f32 0.5, %v4494_v52 }
 0xebc   : > { %v6708_v10 = vpop.eup %6707  ;;  %v4386_v16 = vmul.f32 %v4362_v30, %v9101_v20  ;;  %v9112_v44 = vadd.f32 %v4264_v18, %v8960_v45  ;;  %v9115_v6 = vadd.f32 %v4288_v1, %v8962_v0  ;;  %6713 = vtanh.f32 %v4453_v5 }
 0xebd   : > { %v4427_v49 = vadd.f32 %v4403_v25, %v9082_v56  ;;  %v4428_v58 = vadd.f32 %v4404_v8, %v9085_v2  ;;  %v4409_v39 = vmul.f32 0.044715, %v4385_v28  ;;  %v4521_v45 = vmul.f32 0.5, %v4497_v13 }
 0xebe   : > { %v4410_v21 = vmul.f32 0.044715, %v4386_v16  ;;  %v4359_v55 = vmul.f32 %v9112_v44, %v9112_v44  ;;  %v4360_v33 = vmul.f32 %v9115_v6, %v9115_v6  ;;  %v6710_v50 = vpop.eup %6709  ;;  %6715 = vtanh.f32 %v4454_v35 }
 0xebf   : > { %v4451_v0 = vmul.f32 0.7978846, %v4427_v49  ;;  %v4433_v46 = vadd.f32 %v4409_v39, %v9096_v47  ;;  %v4498_v26 = vadd.f32 1.0, %v6708_v10  ;;  %v6712_v14 = vpop.eup %6711  ;;  %v4545_v9 = vmul.f32 %v4521_v45, %v9038_v22 }
 0xec0   : > { %v4434_v43 = vadd.f32 %v4410_v21, %v9101_v20  ;;  %v4383_v41 = vmul.f32 %v4359_v55, %v9112_v44  ;;  %v4384_v7 = vmul.f32 %v4360_v33, %v9115_v6  ;;  %v4452_v29 = vmul.f32 0.7978846, %v4428_v58 }
 0xec1   : > { %v4457_v48 = vmul.f32 0.7978846, %v4433_v46  ;;  %v4522_v61 = vmul.f32 0.5, %v4498_v26  ;;  %6717 = vtanh.f32 %v4451_v0  ;;  %v4561_v17 = vpack.c.bf16 %v4545_v9, %v4541_v31 }
 0xec2   : > { %v4458_v53 = vmul.f32 0.7978846, %v4434_v43  ;;  %v4407_v36 = vmul.f32 0.044715, %v4383_v41  ;;  %v4408_v12 = vmul.f32 0.044715, %v4384_v7  ;;  %v6714_v4 = vpop.eup %6713  ;;  %v4542_v51 = vmul.f32 %v4518_v37, %v9017_v32 }
 0xec3   : > { %6719 = vtanh.f32 %v4457_v48  ;;  %v4546_v24 = vmul.f32 %v4522_v61, %v9041_v40  ;;  %v4491_v30 = vadd.f32 1.0, %v9087_v34  ;;  %4890 = vmatmul.bf16.gmra.mxu0 %v4561_v17  ;;  %v4495_v35 = vadd.f32 1.0, %v6710_v50 }
 0xec4   : > { %6721 = vtanh.f32 %v4458_v53  ;;  %v4431_v5 = vadd.f32 %v4407_v36, %v9112_v44  ;;  %v4432_v22 = vadd.f32 %v4408_v12, %v9115_v6  ;;  %v6716_v52 = vpop.eup %6715  ;;  %v4492_v25 = vadd.f32 1.0, %v9089_v59 }
 0xec5   : > { %v4562_v13 = vpack.c.bf16 %v4546_v24, %v4542_v51  ;;  %v4496_v8 = vadd.f32 1.0, %v6712_v14  ;;  %6723 = vtanh.f32 %v4452_v29  ;;  %v4515_v32 = vmul.f32 0.5, %v4491_v30 }
 0xec6   : > { %v4455_v28 = vmul.f32 0.7978846, %v4431_v5  ;;  %v4456_v18 = vmul.f32 0.7978846, %v4432_v22  ;;  %v4519_v40 = vmul.f32 0.5, %v4495_v35  ;;  %v4516_v1 = vmul.f32 0.5, %v4492_v25 }
 0xec7   : > { %4914 = vmatmul.bf16.gmra.mxu1 %v4562_v13  ;;  %v4520_v10 = vmul.f32 0.5, %v4496_v8  ;;  %v4501_v16 = vadd.f32 1.0, %v6714_v4  ;;  %v6718_v31 = vpop.eup %6717  ;;  %v4539_v34 = vmul.f32 %v4515_v32, %v9026_v42  ;;  %v4502_v49 = vadd.f32 1.0, %v6716_v52 }
 0xec8   : > { %6725 = vtanh.f32 %v4455_v28  ;;  %v4543_v39 = vmul.f32 %v4519_v40, %v9054_v63  ;;  %v4540_v59 = vmul.f32 %v4516_v1, %v9029_v15  ;;  %v4499_v63 = vadd.f32 1.0, %v6718_v31 }
 0xec9   : > { %v6720_v58 = vpop.eup %6719  ;;  %6727 = vtanh.f32 %v4456_v18  ;;  %v4544_v21 = vmul.f32 %v4520_v10, %v9057_v3  ;;  %v4525_v0 = vmul.f32 0.5, %v4501_v16  ;;  %v4526_v42 = vmul.f32 0.5, %v4502_v49 }
 0xeca   : > { %v6722_v55 = vpop.eup %6721  ;;  %v4505_v33 = vadd.f32 1.0, %v6720_v58  ;;  %v4559_v45 = vpack.c.bf16 %v4543_v39, %v4539_v34  ;;  %v4523_v17 = vmul.f32 0.5, %v4499_v63 }
 0xecb   : > { %v4560_v50 = vpack.c.bf16 %v4544_v21, %v4540_v59  ;;  %v4506_v46 = vadd.f32 1.0, %v6722_v55  ;;  %v6724_v26 = vpop.eup %6723  ;;  %v4549_v15 = vmul.f32 %v4525_v0, %v9066_v11  ;;  %v4550_v53 = vmul.f32 %v4526_v42, %v9070_v54  ;;  %v6484_v54 = vld [vmem:[%s9296_s16 + $0x1] ss:$0 sm:$0xff] }
 0xecc   : > { %v4529_v14 = vmul.f32 0.5, %v4505_v33  ;;  %4842 = vmatmul.bf16.gmra.mxu2 %v4559_v45  ;;  %v4500_v48 = vadd.f32 1.0, %v6724_v26  ;;  %v4547_v11 = vmul.f32 %v4523_v17, %v9082_v56 }
 0xecd   : > { %4866 = vmatmul.bf16.gmra.mxu3 %v4560_v50  ;;  %v4530_v43 = vmul.f32 0.5, %v4506_v46 }
 0xece   : > { %v6726_v41 = vpop.eup %6725  ;;  %v4553_v7 = vmul.f32 %v4529_v14, %v9096_v47  ;;  %v4524_v51 = vmul.f32 0.5, %v4500_v48 }
 0xecf   : > { %v6728_v9 = vpop.eup %6727  ;;  %v4554_v3 = vmul.f32 %v4530_v43, %v9101_v20  ;;  %v4503_v29 = vadd.f32 1.0, %v6726_v41 }
 0xed0   : > { %v4504_v37 = vadd.f32 1.0, %v6728_v9  ;;  %v4565_v61 = vpack.c.bf16 %v4553_v7, %v4549_v15  ;;  %v4548_v20 = vmul.f32 %v4524_v51, %v9085_v2 }
 0xed1   : > { %v4527_v36 = vmul.f32 0.5, %v4503_v29  ;;  %v4566_v4 = vpack.c.bf16 %v4554_v3, %v4550_v53 }
 0xed2   : > { %v4528_v12 = vmul.f32 0.5, %v4504_v37 }
 0xed3   : > { %4895 = vmatmul.bf16.gmra.mxu0 %v4565_v61  ;;  %v4551_v47 = vmul.f32 %v4527_v36, %v9112_v44 }
 0xed4   : > { %v4552_v24 = vmul.f32 %v4528_v12, %v9115_v6 }
 0xed5   : > { %v4563_v5 = vpack.c.bf16 %v4551_v47, %v4547_v11 }
 0xed6   : > { %v4564_v22 = vpack.c.bf16 %v4552_v24, %v4548_v20 }
 0xed7   : > { %4919 = vmatmul.bf16.gmra.mxu1 %v4566_v4 }
 0xedc   : > { %4847 = vmatmul.bf16.gmra.mxu2 %v4563_v5 }
 0xedd   : > { %4871 = vmatmul.bf16.gmra.mxu3 %v4564_v22 }
 0xf10   : > { %v4886_v35 = vpop.f32.mrf.mxu0 }
 0xf11   : > { %v4910_v25 = vpop.f32.mrf.mxu1 }
 0xf18   : > { %v4888_v40 = vpop.f32.mrf.mxu0 }
 0xf19   : > { %v4912_v10 = vpop.f32.mrf.mxu1 }
 0xf1b   : > { %v4838_v30 = vpop.f32.mrf.mxu2 }
 0xf1c   : > { %v4839_v52 = vadd.f32 %v6484_v54, %v4838_v30  ;;  %v4862_v13 = vpop.f32.mrf.mxu3 }
 0xf1e   : > { %v4863_v44 = vadd.f32 %v4862_v13, %v4839_v52 }
 0xf20   : > { %v4887_v6 = vadd.f32 %v4886_v35, %v4863_v44 }
 0xf22   : > { %v4911_v8 = vadd.f32 %v4910_v25, %v4887_v6 }
 0xf23   : > { %v4840_v28 = vpop.f32.mrf.mxu2 }
 0xf24   : > { %v4841_v56 = vadd.f32 %v6484_v54, %v4840_v28  ;;  %v4925_v2 = vadd.f32 %v4911_v8, %v8578_v57  ;;  %v4864_v18 = vpop.f32.mrf.mxu3 }
 0xf26   : > { %v4865_v32 = vadd.f32 %v4864_v18, %v4841_v56  ;;  %4933 = vadd.xlane.f32.xlu0 %v4925_v2 }
 0xf28   : > { %v4889_v1 = vadd.f32 %v4888_v40, %v4865_v32 }
 0xf2a   : > { %v4913_v16 = vadd.f32 %v4912_v10, %v4889_v1 }
 0xf2c   : > { %v4926_v31 = vadd.f32 %v4913_v16, %v8582_v27 }
 0xf2e   : > { %4935 = vadd.xlane.f32.xlu1 %v4926_v31 }
 0xf40   : > { %v4891_v34 = vpop.f32.mrf.mxu0 }
 0xf44   : > { %v4915_v49 = vpop.f32.mrf.mxu1 }
 0xf48   : > { %v4893_v33 = vpop.f32.mrf.mxu0 }
 0xf4c   : > { %v4917_v26 = vpop.f32.mrf.mxu1 }
 0xf4f   : > { %v4843_v58 = vpop.f32.mrf.mxu2 }
 0xf50   : > { %v4867_v39 = vpop.f32.mrf.mxu3  ;;  %v4844_v59 = vadd.f32 %v6484_v54, %v4843_v58  ;;  %v4896_v9 = vpop.f32.mrf.mxu0 }
 0xf52   : > { %v4868_v21 = vadd.f32 %v4867_v39, %v4844_v59 }
 0xf54   : > { %v4892_v55 = vadd.f32 %v4891_v34, %v4868_v21  ;;  %v4920_v3 = vpop.f32.mrf.mxu1 }
 0xf56   : > { %v4916_v45 = vadd.f32 %v4915_v49, %v4892_v55 }
 0xf57   : > { %v4845_v57 = vpop.f32.mrf.mxu2 }
 0xf58   : > { %v4869_v50 = vpop.f32.mrf.mxu3  ;;  %v4846_v0 = vadd.f32 %v6484_v54, %v4845_v57  ;;  %v4927_v46 = vadd.f32 %v4916_v45, %v8586_v60  ;;  %v4898_v12 = vpop.f32.mrf.mxu0 }
 0xf5a   : > { %v4870_v14 = vadd.f32 %v4869_v50, %v4846_v0  ;;  %4937 = vadd.xlane.f32.xlu2 %v4927_v46  ;;  %v9186_v0 = vld [vmem:[%s9297_s17] ss:$0 sm:$0xff] }
 0xf5c   : > { %v4894_v42 = vadd.f32 %v4893_v33, %v4870_v14  ;;  %v4922_v17 = vpop.f32.mrf.mxu1  ;;  %v9191_v14 = vld [vmem:[%s9298_s18] ss:$0 sm:$0xff] }
 0xf5e   : > { %v4918_v27 = vadd.f32 %v4917_v26, %v4894_v42 }
 0xf5f   : > { %v4848_v43 = vpop.f32.mrf.mxu2 }
 0xf60   : > { %v4872_v41 = vpop.f32.mrf.mxu3  ;;  %v4849_v7 = vadd.f32 %v6484_v54, %v4848_v43  ;;  %v4928_v63 = vadd.f32 %v4918_v27, %v8590_v62 }
 0xf62   : > { %v4873_v15 = vadd.f32 %v4872_v41, %v4849_v7  ;;  %4939 = vadd.xlane.f32.xlu0 %v4928_v63 }
 0xf64   : > { %v4897_v29 = vadd.f32 %v4896_v9, %v4873_v15 }
 0xf66   : > { %v4921_v48 = vadd.f32 %v4920_v3, %v4897_v29 }
 0xf67   : > { %v4850_v37 = vpop.f32.mrf.mxu2 }
 0xf68   : > { %v4851_v61 = vadd.f32 %v6484_v54, %v4850_v37  ;;  %v4929_v60 = vadd.f32 %v4921_v48, %v8594_v38  ;;  %v4874_v53 = vpop.f32.mrf.mxu3 }
 0xf6a   : > { %v4875_v36 = vadd.f32 %v4874_v53, %v4851_v61  ;;  %4941 = vadd.xlane.f32.xlu1 %v4929_v60 }
 0xf6c   : > { %v4899_v4 = vadd.f32 %v4898_v12, %v4875_v36 }
 0xf6e   : > { %v4923_v51 = vadd.f32 %v4922_v17, %v4899_v4 }
 0xf70   : > { %v4930_v47 = vadd.f32 %v4923_v51, %v8598_v19 }
 0xf72   : > { %4943 = vadd.xlane.f32.xlu2 %v4930_v47 }
 0xf99   : > { %v4934_v62 = vpop.xlane.xlu0 %4933 }
 0xf9a   : > { %v4945_v24 = vmul.f32 %v4934_v62, %v7032_v23 }
 0xf9c   : > { %v4951_v11 = vsub.f32 %v4925_v2, %v4945_v24 }
 0xf9e   : > { %v4957_v20 = vmul.f32 %v4951_v11, %v4951_v11 }
 0xfa0   : > { %4963 = vadd.xlane.f32.xlu0 %v4957_v20 }
 0xfa1   : > { %v4936_v5 = vpop.xlane.xlu1 %4935 }
 0xfa2   : > { %v4946_v22 = vmul.f32 %v4936_v5, %v7032_v23 }
 0xfa4   : > { %v4952_v38 = vsub.f32 %v4926_v31, %v4946_v22 }
 0xfa6   : > { %v4958_v54 = vmul.f32 %v4952_v38, %v4952_v38 }
 0xfa8   : > { %4965 = vadd.xlane.f32.xlu1 %v4958_v54 }
 0xfcd   : > { %v4938_v30 = vpop.xlane.xlu2 %4937 }
 0xfce   : > { %v4947_v52 = vmul.f32 %v4938_v30, %v7032_v23 }
 0xfd0   : > { %v9159_v13 = vsub.f32 %v4927_v46, %v4947_v52 }
 0xfd2   : > { %v4959_v19 = vmul.f32 %v9159_v13, %v9159_v13 }
 0xfd4   : > { %4967 = vadd.xlane.f32.xlu2 %v4959_v19 }
 0xfd5   : > { %v4940_v35 = vpop.xlane.xlu0 %4939 }
 0xfd6   : > { %v4948_v44 = vmul.f32 %v4940_v35, %v7032_v23 }
 0xfd8   : > { %v9164_v25 = vsub.f32 %v4928_v63, %v4948_v44 }
 0xfda   : > { %v4960_v6 = vmul.f32 %v9164_v25, %v9164_v25 }
 0xfdc   : > { %4969 = vadd.xlane.f32.xlu0 %v4960_v6 }
 0xfdd   : > { %v4942_v8 = vpop.xlane.xlu1 %4941 }
 0xfde   : > { %v4949_v28 = vmul.f32 %v4942_v8, %v7032_v23 }
 0xfe0   : > { %v9169_v56 = vsub.f32 %v4929_v60, %v4949_v28 }
 0xfe2   : > { %v4961_v2 = vmul.f32 %v9169_v56, %v9169_v56 }
 0xfe4   : > { %4971 = vadd.xlane.f32.xlu1 %v4961_v2 }
 0xfe5   : > { %v4944_v18 = vpop.xlane.xlu2 %4943 }
 0xfe6   : > { %v4950_v32 = vmul.f32 %v4944_v18, %v7032_v23 }
 0xfe8   : > { %v9174_v40 = vsub.f32 %v4930_v47, %v4950_v32 }
 0xfea   : > { %v4962_v1 = vmul.f32 %v9174_v40, %v9174_v40 }
 0xfec   : > { %4973 = vadd.xlane.f32.xlu2 %v4962_v1 }
0x1013   : > { %v4964_v10 = vpop.xlane.xlu0 %4963 }
0x1014   : > { %v4975_v16 = vmul.f32 %v4964_v10, %v7032_v23 }
0x1016   : > { %v4981_v31 = vadd.f32 1e-06, %v4975_v16 }
0x1018   : > { %6729 = vrsqrt.f32 %v4981_v31  ;;  %vm4993_vm7 = vweird.f32 %v4981_v31 }
0x101b   : > { %v4966_v34 = vpop.xlane.xlu1 %4965 }
0x101c   : > { %v4976_v49 = vmul.f32 %v4966_v34, %v7032_v23 }
0x101e   : > { %v6730_v58 = vpop.eup %6729  ;;  %v4982_v39 = vadd.f32 1e-06, %v4976_v49 }
0x101f   : > { %v4988_v59 = vmul.f32 %v6730_v58, %v4981_v31  ;;  %vm4994_vm6 = vweird.f32 %v6730_v58 }
0x1020   : > { %6731 = vrsqrt.f32 %v4982_v39  ;;  %vm4995_vm8 = vmor %vm4993_vm7, %vm4994_vm6  ;;  %vm5003_vm10 = vweird.f32 %v4982_v39 }
0x1021   : > { %v4989_v21 = vmul.f32 %v6730_v58, %v4988_v59 }
0x1023   : > { %v4990_v55 = vmul.f32 0.5, %v4989_v21 }
0x1025   : > { %v4991_v33 = vsub.f32 1.5, %v4990_v55 }
0x1026   : > { %v6732_v45 = vpop.eup %6731 }
0x1027   : > { %v4992_v57 = vmul.f32 %v6730_v58, %v4991_v33  ;;  %v4998_v50 = vmul.f32 %v6732_v45, %v4982_v39  ;;  %vm5004_vm9 = vweird.f32 %v6732_v45 }
0x1028   : > { %vm5005_vm11 = vmor %vm5003_vm10, %vm5004_vm9 }
0x1029   : > { %v4996_v46 = vsel %vm4995_vm8, %v6730_v58, %v4992_v57  ;;  %v4999_v26 = vmul.f32 %v6732_v45, %v4998_v50 }
0x102a   : > { %v5047_v42 = vmul.f32 %v4996_v46, %v4951_v11 }
0x102b   : > { %v5000_v27 = vmul.f32 0.5, %v4999_v26 }
0x102c   : > { %v5056_v43 = vmul.f32 %v9186_v0, %v5047_v42 }
0x102d   : > { %v5001_v41 = vsub.f32 1.5, %v5000_v27 }
0x102e   : > { %v5065_v7 = vadd.f32 %v9191_v14, %v5056_v43 }
0x102f   : > { %v5002_v63 = vmul.f32 %v6732_v45, %v5001_v41 }
0x1030   : > { %5073 = vst [vmem:[%s9196_s27] sm:$0xff] %v5065_v7 }
0x1031   : > { %v5006_v9 = vsel %vm5005_vm11, %v6732_v45, %v5002_v63 }
0x1032   : > { %v5048_v15 = vmul.f32 %v5006_v9, %v4952_v38 }
0x1034   : > { %v5057_v3 = vmul.f32 %v9186_v0, %v5048_v15 }
0x1036   : > { %v5066_v29 = vadd.f32 %v9191_v14, %v5057_v3 }
0x1038   : > { %5074 = vst [vmem:[%s9196_s27 + $0x8] sm:$0xff] %v5066_v29 }
0x1047   : > { %v4968_v48 = vpop.xlane.xlu2 %4967 }
0x1048   : > { %v4977_v37 = vmul.f32 %v4968_v48, %v7032_v23 }
0x104a   : > { %v4983_v61 = vadd.f32 1e-06, %v4977_v37 }
0x104c   : > { %6733 = vrsqrt.f32 %v4983_v61  ;;  %vm5013_vm13 = vweird.f32 %v4983_v61 }
0x104f   : > { %v4970_v60 = vpop.xlane.xlu0 %4969 }
0x1050   : > { %v4978_v53 = vmul.f32 %v4970_v60, %v7032_v23 }
0x1052   : > { %v6734_v36 = vpop.eup %6733  ;;  %v4984_v12 = vadd.f32 1e-06, %v4978_v53 }
0x1053   : > { %v5008_v4 = vmul.f32 %v6734_v36, %v4983_v61  ;;  %vm5014_vm12 = vweird.f32 %v6734_v36 }
0x1054   : > { %6735 = vrsqrt.f32 %v4984_v12  ;;  %vm5015_vm14 = vmor %vm5013_vm13, %vm5014_vm12  ;;  %vm5023_vm0 = vweird.f32 %v4984_v12 }
0x1055   : > { %v5009_v17 = vmul.f32 %v6734_v36, %v5008_v4 }
0x1057   : > { %v5010_v51 = vmul.f32 0.5, %v5009_v17  ;;  %v4972_v47 = vpop.xlane.xlu1 %4971 }
0x1058   : > { %v4979_v62 = vmul.f32 %v4972_v47, %v7032_v23 }
0x1059   : > { %v5011_v24 = vsub.f32 1.5, %v5010_v51 }
0x105a   : > { %v6736_v11 = vpop.eup %6735  ;;  %v4985_v20 = vadd.f32 1e-06, %v4979_v62 }
0x105b   : > { %v5012_v5 = vmul.f32 %v6734_v36, %v5011_v24  ;;  %v5018_v22 = vmul.f32 %v6736_v11, %v4984_v12  ;;  %vm5024_vm15 = vweird.f32 %v6736_v11 }
0x105c   : > { %6737 = vrsqrt.f32 %v4985_v20  ;;  %vm5025_vm1 = vmor %vm5023_vm0, %vm5024_vm15  ;;  %vm5033_vm3 = vweird.f32 %v4985_v20 }
0x105d   : > { %v5016_v38 = vsel %vm5015_vm14, %v6734_v36, %v5012_v5  ;;  %v5019_v54 = vmul.f32 %v6736_v11, %v5018_v22 }
0x105e   : > { %v5049_v30 = vmul.f32 %v5016_v38, %v9159_v13 }
0x105f   : > { %v5020_v52 = vmul.f32 0.5, %v5019_v54  ;;  %v4974_v19 = vpop.xlane.xlu2 %4973 }
0x1060   : > { %v5058_v35 = vmul.f32 %v9186_v0, %v5049_v30  ;;  %v4980_v44 = vmul.f32 %v4974_v19, %v7032_v23 }
0x1061   : > { %v5021_v6 = vsub.f32 1.5, %v5020_v52 }
0x1062   : > { %v6738_v8 = vpop.eup %6737  ;;  %v4986_v28 = vadd.f32 1e-06, %v4980_v44  ;;  %v5067_v2 = vadd.f32 %v9191_v14, %v5058_v35 }
0x1063   : > { %v5022_v18 = vmul.f32 %v6736_v11, %v5021_v6  ;;  %v5028_v32 = vmul.f32 %v6738_v8, %v4985_v20  ;;  %vm5034_vm2 = vweird.f32 %v6738_v8 }
0x1064   : > { %6739 = vrsqrt.f32 %v4986_v28  ;;  %5071 = vst [vmem:[%s9210_s28] sm:$0x1] %v5067_v2  ;;  %vm5035_vm4 = vmor %vm5033_vm3, %vm5034_vm2  ;;  %vm5043_vm6 = vweird.f32 %v4986_v28 }
0x1065   : > { %v5026_v13 = vsel %vm5025_vm1, %v6736_v11, %v5022_v18  ;;  %v5029_v1 = vmul.f32 %v6738_v8, %v5028_v32 }
0x1066   : > { %v5050_v23 = vmul.f32 %v5026_v13, %v9164_v25 }
0x1067   : > { %v5030_v10 = vmul.f32 0.5, %v5029_v1 }
0x1068   : > { %v5059_v16 = vmul.f32 %v9186_v0, %v5050_v23 }
0x1069   : > { %v5031_v31 = vsub.f32 1.5, %v5030_v10 }
0x106a   : > { %v6740_v34 = vpop.eup %6739  ;;  %v5068_v49 = vadd.f32 %v9191_v14, %v5059_v16 }
0x106b   : > { %v5032_v58 = vmul.f32 %v6738_v8, %v5031_v31  ;;  %v5038_v39 = vmul.f32 %v6740_v34, %v4986_v28  ;;  %vm5044_vm5 = vweird.f32 %v6740_v34 }
0x106c   : > { %5075 = vst [vmem:[%s9196_s27 + $0x10] sm:$0xff] %v5068_v49  ;;  %vm9230_vm7 = vmor %vm5043_vm6, %vm5044_vm5 }
0x106d   : > { %v5036_v25 = vsel %vm5035_vm4, %v6738_v8, %v5032_v58  ;;  %v5039_v59 = vmul.f32 %v6740_v34, %v5038_v39 }
0x106e   : > { %v5051_v21 = vmul.f32 %v5036_v25, %v9169_v56 }
0x106f   : > { %v5040_v55 = vmul.f32 0.5, %v5039_v59 }
0x1070   : > { %v5060_v33 = vmul.f32 %v9186_v0, %v5051_v21 }
0x1071   : > { %v5041_v45 = vsub.f32 1.5, %v5040_v55 }
0x1072   : > { %v5069_v57 = vadd.f32 %v9191_v14, %v5060_v33 }
0x1073   : > { %v5042_v50 = vmul.f32 %v6740_v34, %v5041_v45 }
0x1074   : > { %5076 = vst [vmem:[%s9196_s27 + $0x18] sm:$0xff] %v5069_v57 }
0x1075   : > { %v5046_v46 = vsel %vm9230_vm7, %v6740_v34, %v5042_v50 }
0x1076   : > { %6774 = shalt.err (!%p6771_p3)
}
0x1077   : > { %s6846_s26 = smov 128   ;;  %s6847_s7 = smov 8   ;;  %v5052_v26 = vmul.f32 %v5046_v46, %v9174_v40 }
0x1078   : > { %6422 = dma.vmem_to_hbm [thread:$0]  (%p6993_p5), %s5113_s2, 512, %s5115_s21, %s5083_s1, %s6846_s26, %s6846_s26, %s6847_s7  }
0x1079   : > { %s5094_s5 = sshll.u32 %s9210_s28, 4  ;;  %s5096_s6 = sshll.u32 %s5093_s29, 4  ;;  %v5061_v42 = vmul.f32 %v9186_v0, %v5052_v26  ;;  %s5095_s5 = int_to_ptr.vmem [resolvable:$true] %s5094_s5  ;;  %s5097_s6 = int_to_ptr.hbm [resolvable:$true] %s5096_s6 }
0x107a   : > { %s5078_s23 = scalar_lea.sflag [#allocation4], %s9181_s24  ;;  %s6789_s19 = sshra.s32 %s5097_s6, 4  ;;  %s6790_s19 = int_to_ptr.hbm [resolvable:$true] %s6789_s19 }
0x107b   : > { %v5070_v27 = vadd.f32 %v9191_v14, %v5061_v42  ;;  %s6791_s25 = scalar_lea.hbm %s6790_s19, 2  ;;  %s6795_s21 = scalar_lea.hbm %s9342_s3, 4 }
0x107c   : > { %p6792_p4 = scmp.ne.s32.totalorder %s6790_s19, %s6791_s25  ;;  %p6796_p9 = scmp.lt.s32.totalorder %s6790_s19, %s9342_s3 }
0x107d   : > { %5072 = vst [vmem:[%s9210_s28 + $0x1] sm:$0x1] %v5070_v27  ;;  %p6797_p10 = scmp.lt.s32.totalorder %s6795_s21, %s6791_s25 }
0x107e   : > { %p6793_p7 = pnand %p6792_p4, %p6993_p5 }
0x107f   : > { %p6798_p11 = por %p6797_p10, %p6796_p9 }
0x1080   : > { %p6794_p8 = pneg %p6793_p7 }
0x1082   : > { %p6799_p12 = pnand %p6798_p11, %p6794_p8 }
0x1084   : > { %6802 = shalt.err (!%p6799_p12)
}
0x1085   : > { %s6848_s24 = smov 16   ;;  %s6849_s28 = smov 1  }
0x1086   : > { %6421 = dma.vmem_to_hbm [thread:$0]  (%p6993_p5), %s5095_s5, 32, %s5097_s6, %s5078_s23, %s6848_s24, %s6848_s24, %s6849_s28  }
0x1087 PF: > { %s9345_s27 = sld [smem:[#allocation11_spill]] }
0x1088   : > { %s9346_s0 = sld [smem:[#allocation9_spill]] }
0x108d   : > { %p6432_p13 = scmp.ge.s32.totalorder %s9345_s27, 2 }
0x108e   : > { %s5129_s7 = sand.u32 1, %s9346_s0  }
0x108f   : > { %p6426_p0 = pnand %p6432_p13, %p6997_p6  ;;  %s5130_s2 = scalar_lea.sflag [#allocation4], %s5129_s7 }
0x1091   : > { %p6427_p1 = pneg %p6426_p0 }
0x1093   : > { %6820 = dma.done.wait (%p6427_p1), %s5130_s2, 32  }
0x1094   : > { %6822 = vsyncadd (%p6427_p1), %s5130_s2, 4294967264  ;;  %s5140_s19 = scalar_lea.sflag [#allocation6], %s5129_s7 }
0x1095   : > { %6824 = dma.done.wait (%p6427_p1), %s5140_s19, 512  }
0x1096   : > { %6826 = vsyncadd (%p6427_p1), %s5140_s19, 4294966784  ;;  %s9348_s24 = sld [smem:[#allocation12_spill]]  ;;  %s9351_s1 = smov %s6833_s22 }
0x1097   : > { %s9349_s25 = sld [smem:[#allocation10_spill]] }
0x1098   : > { %s9350_s23 = sld [smem:[#allocation13_spill]] }
0x109c   : > { %p34_p5 = scmp.ge.s32.totalorder %s9348_s24, 4  }
0x109d   : > { %s9352_s22 = smov %s9349_s25 }
0x109e   :  { %36 = sbr.rel (!%p34_p5) target bundleno = 15 (0xf), region = 160 }
0x10a3   :  { %5146 = vsyncpa [#allocation4], 1 }
0x10a4   :  { %5148 = vsyncpa [#allocation4 + $0x1], 1 }
0x10a5   :  { %5149 = vsyncpa [#allocation6], 1 }
0x10a6   :  { %5151 = vsyncpa [#allocation6 + $0x1], 1 }

</bundles_post_ra>
